<compile_context>
chip_gen: v7x
topology: tpu7x:2x2x1
jax: 0.10.0
libtpu: 0.0.40
codegen_flags: <defaults>
</compile_context>

<pallas_src>
import functools

import numpy as np
import jax
import jax.numpy as jnp
from jax.experimental import pallas as pl
from jax.experimental.pallas import tpu as pltpu

H = W = 4
HW = H * W


def _round_up(x, m):
    return (x + m - 1) // m * m


# --------------------------------------------------------------------------
# Kernel: five chained matmuls, f32 bias add, bf16 ReLU; activations stay in
# VMEM/vregs for the whole network.
# --------------------------------------------------------------------------
def _dqn_kernel(x_ref, w1_ref, w2_ref, w3_ref, w4_ref, w5_ref, b_ref, o_ref,
                *, bias_slices, compute_dtype):
    def layer(h, w_ref, b_slice, relu):
        lo, hi = b_slice
        acc = jnp.dot(h, w_ref[...], preferred_element_type=jnp.float32)
        acc = acc + b_ref[:, lo:hi]               # f32 bias (accuracy)
        if relu:
            # cast first -> ReLU runs on packed bf16 vregs (v6e/v7x VPU)
            return jnp.maximum(acc.astype(compute_dtype), 0.0)
        return acc

    h = layer(x_ref[...], w1_ref, bias_slices[0], True)    # conv1
    h = layer(h, w2_ref, bias_slices[1], True)              # conv2
    h = layer(h, w3_ref, bias_slices[2], True)              # conv3
    h = layer(h, w4_ref, bias_slices[3], True)              # fc1
    o = layer(h, w5_ref, bias_slices[4], False)              # fc2
    o_ref[...] = o.astype(o_ref.dtype)                       # bf16 writeback


# --------------------------------------------------------------------------
# Torch-layout parameter construction (stand-in for the nn.Module's params).
# --------------------------------------------------------------------------
def init_params(key, output):
    ks = jax.random.split(key, 10)
    s = 0.05
    return {
        "conv1_w": jax.random.normal(ks[0], (32, 1, 3, 3), jnp.float32) * s,
        "conv1_b": jax.random.normal(ks[1], (32,), jnp.float32) * s,
        "conv2_w": jax.random.normal(ks[2], (64, 32, 3, 3), jnp.float32) * s,
        "conv2_b": jax.random.normal(ks[3], (64,), jnp.float32) * s,
        "conv3_w": jax.random.normal(ks[4], (32, 64, 3, 3), jnp.float32) * s,
        "conv3_b": jax.random.normal(ks[5], (32,), jnp.float32) * s,
        # torch nn.Linear weight layout: (out_features, in_features)
        "fc1_w": jax.random.normal(ks[6], (512, 32 * HW), jnp.float32) * s,
        "fc1_b": jax.random.normal(ks[7], (512,), jnp.float32) * s,
        "fc2_w": jax.random.normal(ks[8], (output, 512), jnp.float32) * s,
        "fc2_b": jax.random.normal(ks[9], (output,), jnp.float32) * s,
    }


def _conv_as_matmul(weight):
    """Torch Conv2d(Cout,Cin,3,3), stride 1, pad 1 on a 4x4 grid ->
    (Cin*16, Cout*16) matrix acting on (cin,h,w)-flattened vectors and
    producing (cout,h,w)-flattened vectors (torch NCHW flatten order).
    NOTE: hard-coded to H=W=4, pad=1 (the geometry this module implies)."""
    w = np.asarray(weight, np.float32)
    c_out, c_in, kh_, kw_ = w.shape
    big = np.zeros((c_in, H, W, c_out, H, W), np.float32)
    for ho in range(H):
        for wo in range(W):
            for kh in range(kh_):
                for kw in range(kw_):
                    hi = ho + kh - kh_ // 2
                    wi = wo + kw - kw_ // 2
                    if 0 <= hi < H and 0 <= wi < W:
                        big[:, hi, wi, :, ho, wo] = w[:, :, kh, kw].T
    return big.reshape(c_in * HW, c_out * HW)


def prepare_params(params, output_dim, compute_dtype=jnp.bfloat16):
    """One-time packing (hoisted out of the forward path): conv weights ->
    matmul matrices, fc weights transposed, fc2 lane-padded to 128, all five
    biases concatenated into a single lane-aligned f32 row vector."""
    n_pad = _round_up(max(output_dim, 1), 128)

    w5 = np.zeros((512, n_pad), np.float32)
    w5[:, :output_dim] = np.asarray(params["fc2_w"], np.float32).T
    b5 = np.zeros((n_pad,), np.float32)
    b5[:output_dim] = np.asarray(params["fc2_b"], np.float32)

    def wmat(a):
        return jnp.asarray(np.asarray(a, np.float32), compute_dtype)

    biases = np.concatenate([
        np.repeat(np.asarray(params["conv1_b"], np.float32), HW),   # 512
        np.repeat(np.asarray(params["conv2_b"], np.float32), HW),   # 1024
        np.repeat(np.asarray(params["conv3_b"], np.float32), HW),   # 512
        np.asarray(params["fc1_b"], np.float32),                    # 512
        b5,                                                         # n_pad
    ]).reshape(1, -1)                                               # (1, 2560+n_pad)

    return {
        "w1": wmat(_conv_as_matmul(params["conv1_w"])),              # (16, 512)
        "w2": wmat(_conv_as_matmul(params["conv2_w"])),              # (512, 1024)
        "w3": wmat(_conv_as_matmul(params["conv3_w"])),              # (1024, 512)
        "w4": wmat(np.asarray(params["fc1_w"], np.float32).T),       # (512, 512)
        "w5": wmat(w5),                                              # (512, n_pad)
        "biases": jnp.asarray(biases, jnp.float32),                  # (1, total)
    }


# --------------------------------------------------------------------------
# Forward wrapper.
# --------------------------------------------------------------------------
def dqn_forward(packed, x, output_dim):
    compute_dtype = packed["w1"].dtype
    n_pad = packed["w5"].shape[1]

    # == x.reshape(-1, 1, 4, 4) flattened in NCHW order.
    x = x.reshape(-1, HW).astype(compute_dtype)
    batch = x.shape[0]

    # Row tiling: one program up to 512 rows (16-row multiples for bf16
    # sublane packing); 512-row tiles beyond that (v5e-VMEM-safe, and a
    # 1024-row batch becomes exactly 2 parallel programs on v7x megacore).
    if batch <= 512:
        tm = _round_up(batch, 16)
    else:
        tm = 512
    b_pad = _round_up(batch, tm)
    if b_pad != batch:
        x = jnp.pad(x, ((0, b_pad - batch), (0, 0)))

    weights = [packed[k] for k in ("w1", "w2", "w3", "w4", "w5")]
    biases = packed["biases"]

    # Static bias slice boundaries (all multiples of 128 -> tile-aligned).
    widths = [int(w.shape[1]) for w in weights]
    offs = np.cumsum([0] + widths)
    bias_slices = tuple((int(offs[i]), int(offs[i + 1])) for i in range(5))

    kernel = functools.partial(_dqn_kernel, bias_slices=bias_slices,
                               compute_dtype=compute_dtype)

    # Weights/biases: full-array VMEM residents (single-buffered, no pipeline).
    resident = pl.BlockSpec(memory_space=pltpu.MemorySpace.VMEM)

    out = pl.pallas_call(
        kernel,
        out_shape=jax.ShapeDtypeStruct((b_pad, n_pad), compute_dtype),
        grid=(b_pad // tm,),
        in_specs=[pl.BlockSpec((tm, HW), lambda i: (i, 0))] + [resident] * 6,
        out_specs=pl.BlockSpec((tm, n_pad), lambda i: (i, 0)),
        compiler_params=pltpu.CompilerParams(
            dimension_semantics=("parallel",),
            vmem_limit_bytes=32 * 1024 * 1024),
    )(x, *weights, biases)

    # Slice off lane padding / padded rows, upcast to f32 for the caller.
    return out[:batch, :output_dim].astype(jnp.float32)


if __name__ == "__main__":
    key = jax.random.PRNGKey(0)
    k_params, k_x = jax.random.split(key)
    output_dim = 6

    params = init_params(k_params, output_dim)    # torch-layout params
    packed = prepare_params(params, output_dim)   # one-time packing

    # Batch of 2 flattened 4x4 single-channel observations.
    x = jax.random.normal(k_x, (2, 16), jnp.float32)

    fwd = jax.jit(dqn_forward, static_argnums=2)
    y = fwd(packed, x, output_dim)
    jax.block_until_ready(y)
    assert y.shape == (2, output_dim)
    assert bool(jnp.all(jnp.isfinite(y)))
    print("KERNEL_OK")
</pallas_src>

<mosaic_0001>
module attributes {stable_mosaic.version = 11 : i64} {
  func.func @_dqn_kernel(%arg0: i32, %arg1: memref<16x16xbf16, #tpu.memory_space<vmem>>, %arg2: memref<16x512xbf16, #tpu.memory_space<vmem>>, %arg3: memref<512x1024xbf16, #tpu.memory_space<vmem>>, %arg4: memref<1024x512xbf16, #tpu.memory_space<vmem>>, %arg5: memref<512x512xbf16, #tpu.memory_space<vmem>>, %arg6: memref<512x128xbf16, #tpu.memory_space<vmem>>, %arg7: memref<1x2688xf32, #tpu.memory_space<vmem>>, %arg8: memref<16x128xbf16, #tpu.memory_space<vmem>>) attributes {dimension_semantics = [#tpu.dimension_semantics<parallel>], iteration_bounds = array<i64: 1>, scalar_prefetch = 0 : i64, scratch_operands = 0 : i64, tpu.core_type = #tpu.core_type<tc>, window_params = [{transform_indices = @transform_0, window_bounds = array<i64: 16, 16>}, {pipeline_mode = #tpu.pipeline_mode<synchronous>, transform_indices = @transform_1, window_bounds = array<i64: 16, 512>}, {pipeline_mode = #tpu.pipeline_mode<synchronous>, transform_indices = @transform_2, window_bounds = array<i64: 512, 1024>}, {pipeline_mode = #tpu.pipeline_mode<synchronous>, transform_indices = @transform_3, window_bounds = array<i64: 1024, 512>}, {pipeline_mode = #tpu.pipeline_mode<synchronous>, transform_indices = @transform_4, window_bounds = array<i64: 512, 512>}, {pipeline_mode = #tpu.pipeline_mode<synchronous>, transform_indices = @transform_5, window_bounds = array<i64: 512, 128>}, {pipeline_mode = #tpu.pipeline_mode<synchronous>, transform_indices = @transform_6, window_bounds = array<i64: 1, 2688>}, {transform_indices = @transform_7, window_bounds = array<i64: 16, 128>}]} {
    %c0 = arith.constant 0 : index
    %c0_0 = arith.constant 0 : index
    %0 = vector.load %arg1[%c0, %c0_0] : memref<16x16xbf16, #tpu.memory_space<vmem>>, vector<16x16xbf16>
    %c0_1 = arith.constant 0 : index
    %c0_2 = arith.constant 0 : index
    %1 = vector.load %arg2[%c0_1, %c0_2] : memref<16x512xbf16, #tpu.memory_space<vmem>>, vector<16x512xbf16>
    %cst = arith.constant dense<0.000000e+00> : vector<16x512xf32>
    %2 = tpu.matmul %0, %1, %cst {dimension_numbers = #tpu.dot_dimension_numbers<[1], [0], [0], [1], [0, 0, 1, 1], [], []>} : vector<16x16xbf16>, vector<16x512xbf16>, vector<16x512xf32> -> vector<16x512xf32>
    %c0_3 = arith.constant 0 : index
    %c0_4 = arith.constant 0 : index
    %3 = vector.load %arg7[%c0_3, %c0_4] : memref<1x2688xf32, #tpu.memory_space<vmem>>, vector<1x512xf32>
    %4 = vector.broadcast %3 : vector<1x512xf32> to vector<16x512xf32>
    %5 = arith.addf %2, %4 : vector<16x512xf32>
    %6 = arith.truncf %5 : vector<16x512xf32> to vector<16x512xbf16>
    %cst_5 = arith.constant 0.000000e+00 : bf16
    %7 = vector.broadcast %cst_5 : bf16 to vector<16x512xbf16>
    %8 = arith.maximumf %6, %7 : vector<16x512xbf16>
    %c0_6 = arith.constant 0 : index
    %c0_7 = arith.constant 0 : index
    %9 = vector.load %arg3[%c0_6, %c0_7] : memref<512x1024xbf16, #tpu.memory_space<vmem>>, vector<512x1024xbf16>
    %cst_8 = arith.constant dense<0.000000e+00> : vector<16x1024xf32>
    %10 = tpu.matmul %8, %9, %cst_8 {dimension_numbers = #tpu.dot_dimension_numbers<[1], [0], [0], [1], [0, 0, 1, 1], [], []>} : vector<16x512xbf16>, vector<512x1024xbf16>, vector<16x1024xf32> -> vector<16x1024xf32>
    %c0_9 = arith.constant 0 : index
    %c512 = arith.constant 512 : index
    %11 = vector.load %arg7[%c0_9, %c512] : memref<1x2688xf32, #tpu.memory_space<vmem>>, vector<1x1024xf32>
    %12 = vector.broadcast %11 : vector<1x1024xf32> to vector<16x1024xf32>
    %13 = arith.addf %10, %12 : vector<16x1024xf32>
    %14 = arith.truncf %13 : vector<16x1024xf32> to vector<16x1024xbf16>
    %cst_10 = arith.constant 0.000000e+00 : bf16
    %15 = vector.broadcast %cst_10 : bf16 to vector<16x1024xbf16>
    %16 = arith.maximumf %14, %15 : vector<16x1024xbf16>
    %c0_11 = arith.constant 0 : index
    %c0_12 = arith.constant 0 : index
    %17 = vector.load %arg4[%c0_11, %c0_12] : memref<1024x512xbf16, #tpu.memory_space<vmem>>, vector<1024x512xbf16>
    %cst_13 = arith.constant dense<0.000000e+00> : vector<16x512xf32>
    %18 = tpu.matmul %16, %17, %cst_13 {dimension_numbers = #tpu.dot_dimension_numbers<[1], [0], [0], [1], [0, 0, 1, 1], [], []>} : vector<16x1024xbf16>, vector<1024x512xbf16>, vector<16x512xf32> -> vector<16x512xf32>
    %c0_14 = arith.constant 0 : index
    %c1536 = arith.constant 1536 : index
    %19 = vector.load %arg7[%c0_14, %c1536] : memref<1x2688xf32, #tpu.memory_space<vmem>>, vector<1x512xf32>
    %20 = vector.broadcast %19 : vector<1x512xf32> to vector<16x512xf32>
    %21 = arith.addf %18, %20 : vector<16x512xf32>
    %22 = arith.truncf %21 : vector<16x512xf32> to vector<16x512xbf16>
    %cst_15 = arith.constant 0.000000e+00 : bf16
    %23 = vector.broadcast %cst_15 : bf16 to vector<16x512xbf16>
    %24 = arith.maximumf %22, %23 : vector<16x512xbf16>
    %c0_16 = arith.constant 0 : index
    %c0_17 = arith.constant 0 : index
    %25 = vector.load %arg5[%c0_16, %c0_17] : memref<512x512xbf16, #tpu.memory_space<vmem>>, vector<512x512xbf16>
    %cst_18 = arith.constant dense<0.000000e+00> : vector<16x512xf32>
    %26 = tpu.matmul %24, %25, %cst_18 {dimension_numbers = #tpu.dot_dimension_numbers<[1], [0], [0], [1], [0, 0, 1, 1], [], []>} : vector<16x512xbf16>, vector<512x512xbf16>, vector<16x512xf32> -> vector<16x512xf32>
    %c0_19 = arith.constant 0 : index
    %c2048 = arith.constant 2048 : index
    %27 = vector.load %arg7[%c0_19, %c2048] : memref<1x2688xf32, #tpu.memory_space<vmem>>, vector<1x512xf32>
    %28 = vector.broadcast %27 : vector<1x512xf32> to vector<16x512xf32>
    %29 = arith.addf %26, %28 : vector<16x512xf32>
    %30 = arith.truncf %29 : vector<16x512xf32> to vector<16x512xbf16>
    %cst_20 = arith.constant 0.000000e+00 : bf16
    %31 = vector.broadcast %cst_20 : bf16 to vector<16x512xbf16>
    %32 = arith.maximumf %30, %31 : vector<16x512xbf16>
    %c0_21 = arith.constant 0 : index
    %c0_22 = arith.constant 0 : index
    %33 = vector.load %arg6[%c0_21, %c0_22] : memref<512x128xbf16, #tpu.memory_space<vmem>>, vector<512x128xbf16>
    %cst_23 = arith.constant dense<0.000000e+00> : vector<16x128xf32>
    %34 = tpu.matmul %32, %33, %cst_23 {dimension_numbers = #tpu.dot_dimension_numbers<[1], [0], [0], [1], [0, 0, 1, 1], [], []>} : vector<16x512xbf16>, vector<512x128xbf16>, vector<16x128xf32> -> vector<16x128xf32>
    %c0_24 = arith.constant 0 : index
    %c2560 = arith.constant 2560 : index
    %35 = vector.load %arg7[%c0_24, %c2560] : memref<1x2688xf32, #tpu.memory_space<vmem>>, vector<1x128xf32>
    %36 = vector.broadcast %35 : vector<1x128xf32> to vector<16x128xf32>
    %37 = arith.addf %34, %36 : vector<16x128xf32>
    %38 = arith.truncf %37 : vector<16x128xf32> to vector<16x128xbf16>
    %c0_25 = arith.constant 0 : index
    %c0_26 = arith.constant 0 : index
    %39 = vector.load %arg8[%c0_25, %c0_26] : memref<16x128xbf16, #tpu.memory_space<vmem>>, vector<16x128xbf16>
    tpu.vector_store %arg8[%c0_25, %c0_26], %38 {strides = array<i32>} : memref<16x128xbf16, #tpu.memory_space<vmem>>, vector<16x128xbf16>,
    return
  }
  func.func @transform_0(%arg0: i32) -> (i32, i32) {
    %c0_i32 = arith.constant 0 : i32
    %c0_i32_0 = arith.constant 0 : i32
    return %arg0, %c0_i32 : i32, i32
  }
  func.func @transform_1(%arg0: i32) -> (i32, i32) {
    %c0_i32 = arith.constant 0 : i32
    %c0_i32_0 = arith.constant 0 : i32
    %c0_i32_1 = arith.constant 0 : i32
    return %c0_i32, %c0_i32_0 : i32, i32
  }
  func.func @transform_2(%arg0: i32) -> (i32, i32) {
    %c0_i32 = arith.constant 0 : i32
    %c0_i32_0 = arith.constant 0 : i32
    %c0_i32_1 = arith.constant 0 : i32
    return %c0_i32, %c0_i32_0 : i32, i32
  }
  func.func @transform_3(%arg0: i32) -> (i32, i32) {
    %c0_i32 = arith.constant 0 : i32
    %c0_i32_0 = arith.constant 0 : i32
    %c0_i32_1 = arith.constant 0 : i32
    return %c0_i32, %c0_i32_0 : i32, i32
  }
  func.func @transform_4(%arg0: i32) -> (i32, i32) {
    %c0_i32 = arith.constant 0 : i32
    %c0_i32_0 = arith.constant 0 : i32
    %c0_i32_1 = arith.constant 0 : i32
    return %c0_i32, %c0_i32_0 : i32, i32
  }
  func.func @transform_5(%arg0: i32) -> (i32, i32) {
    %c0_i32 = arith.constant 0 : i32
    %c0_i32_0 = arith.constant 0 : i32
    %c0_i32_1 = arith.constant 0 : i32
    return %c0_i32, %c0_i32_0 : i32, i32
  }
  func.func @transform_6(%arg0: i32) -> (i32, i32) {
    %c0_i32 = arith.constant 0 : i32
    %c0_i32_0 = arith.constant 0 : i32
    %c0_i32_1 = arith.constant 0 : i32
    return %c0_i32, %c0_i32_0 : i32, i32
  }
  func.func @transform_7(%arg0: i32) -> (i32, i32) {
    %c0_i32 = arith.constant 0 : i32
    %c0_i32_0 = arith.constant 0 : i32
    return %arg0, %c0_i32 : i32, i32
  }
}

</mosaic_0001>

<bundles_post_ra>
// kernel: dqn_forward.1
= control target key start
LH: loop header
LB: loop body
LE: loop exit
PB: predicated region body
PF: predicated region fallthrough
CT: control target
= control target key end

     0   :  { %12 = vsyncpa [#allocation3], 0  ;;  %s7288_s0 = inlined_call_operand.vmem [shape: bf16[16,16], index: 0, kind: input, shape index: {}]   ;;  %s7289_s1 = inlined_call_operand.hbm [shape: bf16[16,512], index: 1, kind: input, shape index: {}]   ;;  %s7290_s2 = inlined_call_operand.hbm [shape: bf16[512,1024], index: 2, kind: input, shape index: {}]   ;;  %s7291_s3 = inlined_call_operand.hbm [shape: bf16[1024,512], index: 3, kind: input, shape index: {}]   ;;  %s7292_s4 = inlined_call_operand.hbm [shape: bf16[512,512], index: 4, kind: input, shape index: {}]   ;;  %s7293_s5 = inlined_call_operand.hbm [shape: bf16[512,128], index: 5, kind: input, shape index: {}]   ;;  %s7294_s6 = inlined_call_operand.hbm [shape: f32[1,2688], index: 6, kind: input, shape index: {}]   ;;  %s7295_s7 = inlined_call_operand.vmem [shape: bf16[16,128], index: 7, kind: output, shape index: {}]  }
   0x1   :  { %13 = vsyncpa [#allocation5], 0 }
   0x2   :  { %14 = vsyncpa [#allocation8], 0 }
   0x3   :  { %15 = vsyncpa [#allocation11], 0  ;;  %s7020_s24 = smov [#allocation4]   ;;  %s6880_s28 = scalar_lea.hbm %s7290_s2, 32768 }
   0x4   :  { %s35_s25 = sshll.u32 %s7020_s24, 4  ;;  %p6881_p0 = scmp.ne.s32.totalorder %s7290_s2, %s6880_s28  ;;  %s36_s25 = int_to_ptr.vmem [resolvable:$true] %s35_s25 }
   0x5   :  { %p6884_p1 = scmp.lt.u32.totalorder %s6880_s28, %s7290_s2 }
   0x7   :  { %p6886_p2 = pnand %p6884_p1, %p6881_p0 }
   0x9   :  { %6889 = shalt.err (!%p6886_p2)
}
   0xa   :  { %s6890_s10 = scalar_lea.vmem %s36_s25, 32768  ;;  %p6895_p4 = scmp.lt.s32.totalorder %s36_s25, %s36_s25 }
   0xb   :  { %p6891_p3 = scmp.ne.s32.totalorder %s36_s25, %s6890_s10  ;;  %p6896_p5 = scmp.lt.s32.totalorder %s6890_s10, %s6890_s10 }
   0xd   :  { %p6897_p6 = por %p6896_p5, %p6895_p4 }
   0xf   :  { %p6898_p7 = pnand %p6897_p6, %p6891_p3 }
  0x11   :  { %6901 = shalt.err (!%p6898_p7)
}
  0x12   :  { %s7021_s11 = smov 512   ;;  %s7022_s12 = smov 32  }
  0x13   :  { %41 = dma.hbm_to_vmem [thread:$0]  %s7290_s2, 32768, %s36_s25, [#allocation5], %s7021_s11, %s7021_s11, %s7022_s12  }
  0x14   :  { %s7023_s15 = smov [#allocation7]   ;;  %s7024_s17 = smov [#allocation2]  }
  0x15   :  { %s59_s16 = sshll.u32 %s7023_s15, 4  ;;  %s23_s18 = sshll.u32 %s7024_s17, 4  ;;  %s60_s16 = int_to_ptr.vmem [resolvable:$true] %s59_s16  ;;  %s24_s18 = int_to_ptr.vmem [resolvable:$true] %s23_s18 }
  0x16   :  { %s6902_s21 = scalar_lea.hbm %s7292_s4, 16384 }
  0x17   :  { %p6903_p8 = scmp.ne.s32.totalorder %s7292_s4, %s6902_s21  ;;  %p6906_p9 = scmp.lt.u32.totalorder %s6902_s21, %s7292_s4 }
  0x19   :  { %p6908_p10 = pnand %p6906_p9, %p6903_p8 }
  0x1b   :  { %6911 = shalt.err (!%p6908_p10)
}
  0x1c   :  { %s6912_s2 = scalar_lea.vmem %s60_s16, 16384  ;;  %p6917_p12 = scmp.lt.s32.totalorder %s60_s16, %s60_s16 }
  0x1d   :  { %p6913_p11 = scmp.ne.s32.totalorder %s60_s16, %s6912_s2  ;;  %p6918_p13 = scmp.lt.s32.totalorder %s6912_s2, %s6912_s2 }
  0x1f   :  { %p6919_p0 = por %p6918_p13, %p6917_p12 }
  0x21   :  { %p6920_p1 = pnand %p6919_p0, %p6913_p11 }
  0x23   :  { %6923 = shalt.err (!%p6920_p1)
}
  0x24   :  { %s7025_s25 = smov 256   ;;  %s7026_s27 = smov 16  }
  0x25   :  { %65 = dma.hbm_to_vmem [thread:$0]  %s7292_s4, 16384, %s60_s16, [#allocation8], %s7025_s25, %s7025_s25, %s7026_s27  }
  0x26   :  { %s6924_s9 = scalar_lea.hbm %s7289_s1, 512 }
  0x27   :  { %p6925_p2 = scmp.ne.s32.totalorder %s7289_s1, %s6924_s9  ;;  %p6928_p3 = scmp.lt.u32.totalorder %s6924_s9, %s7289_s1 }
  0x29   :  { %p6930_p4 = pnand %p6928_p3, %p6925_p2 }
  0x2b   :  { %6933 = shalt.err (!%p6930_p4)
}
  0x2c   :  { %s6934_s14 = scalar_lea.vmem %s24_s18, 512  ;;  %p6939_p6 = scmp.lt.s32.totalorder %s24_s18, %s24_s18 }
  0x2d   :  { %p6935_p5 = scmp.ne.s32.totalorder %s24_s18, %s6934_s14  ;;  %p6940_p7 = scmp.lt.s32.totalorder %s6934_s14, %s6934_s14 }
  0x2f   :  { %p6941_p8 = por %p6940_p7, %p6939_p6 }
  0x31   :  { %p6942_p9 = pnand %p6941_p8, %p6935_p5 }
  0x33   :  { %6945 = shalt.err (!%p6942_p9)
}
  0x34   :  { %29 = dma.hbm_to_vmem [thread:$0]  %s7289_s1, 512, %s24_s18, [#allocation3], %s7025_s25, %s7025_s25, %s7026_s27  }
  0x35   :  { %s7027_s16 = smov [#allocation6]   ;;  %s7028_s19 = smov [#allocation9]  }
  0x36   :  { %s47_s17 = sshll.u32 %s7027_s16, 4  ;;  %s71_s20 = sshll.u32 %s7028_s19, 4  ;;  %s48_s17 = int_to_ptr.vmem [resolvable:$true] %s47_s17  ;;  %s72_s20 = int_to_ptr.vmem [resolvable:$true] %s71_s20 }
  0x37   :  { %s6946_s23 = scalar_lea.hbm %s7291_s3, 32768 }
  0x38   :  { %p6947_p10 = scmp.ne.s32.totalorder %s7291_s3, %s6946_s23  ;;  %p6950_p11 = scmp.lt.u32.totalorder %s6946_s23, %s7291_s3 }
  0x3a   :  { %p6952_p12 = pnand %p6950_p11, %p6947_p10 }
  0x3c   :  { %6955 = shalt.err (!%p6952_p12)
}
  0x3d   :  { %s6956_s1 = scalar_lea.vmem %s48_s17, 32768  ;;  %p6961_p0 = scmp.lt.s32.totalorder %s48_s17, %s48_s17 }
  0x3e   :  { %p6957_p13 = scmp.ne.s32.totalorder %s48_s17, %s6956_s1  ;;  %p6962_p1 = scmp.lt.s32.totalorder %s6956_s1, %s6956_s1 }
  0x40   :  { %p6963_p2 = por %p6962_p1, %p6961_p0 }
  0x42   :  { %p6964_p3 = pnand %p6963_p2, %p6957_p13 }
  0x44   :  { %6967 = shalt.err (!%p6964_p3)
}
  0x45   :  { %53 = dma.hbm_to_vmem [thread:$0]  %s7291_s3, 32768, %s48_s17, [#allocation5], %s7025_s25, %s7025_s25, %s7026_s27  }
  0x46   :  { %s6968_s9 = scalar_lea.hbm %s7293_s5, 4096 }
  0x47   :  { %p6969_p4 = scmp.ne.s32.totalorder %s7293_s5, %s6968_s9  ;;  %p6972_p5 = scmp.lt.u32.totalorder %s6968_s9, %s7293_s5 }
  0x49   :  { %p6974_p6 = pnand %p6972_p5, %p6969_p4 }
  0x4b   :  { %6977 = shalt.err (!%p6974_p6)
}
  0x4c   :  { %s6978_s14 = scalar_lea.vmem %s72_s20, 4096  ;;  %p6983_p8 = scmp.lt.s32.totalorder %s72_s20, %s72_s20 }
  0x4d   :  { %p6979_p7 = scmp.ne.s32.totalorder %s72_s20, %s6978_s14  ;;  %p6984_p9 = scmp.lt.s32.totalorder %s6978_s14, %s6978_s14 }
  0x4f   :  { %p6985_p10 = por %p6984_p9, %p6983_p8 }
  0x51   :  { %p6986_p11 = pnand %p6985_p10, %p6979_p7 }
  0x53   :  { %6989 = shalt.err (!%p6986_p11)
}
  0x54   :  { %s7029_s3 = smov 64   ;;  %s7030_s25 = smov 4  }
  0x55   :  { %77 = dma.hbm_to_vmem [thread:$0]  %s7293_s5, 4096, %s72_s20, [#allocation8], %s7029_s3, %s7029_s3, %s7030_s25  }
  0x56   :  { %s7031_s15 = smov [#allocation10]   ;;  %s6990_s21 = scalar_lea.hbm %s7294_s6, 336 }
  0x57   :  { %s84_s16 = sshll.u32 %s7031_s15, 4  ;;  %p6991_p12 = scmp.ne.s32.totalorder %s7294_s6, %s6990_s21  ;;  %s85_s16 = int_to_ptr.vmem [resolvable:$true] %s84_s16 }
  0x58   :  { %p6994_p13 = scmp.lt.u32.totalorder %s6990_s21, %s7294_s6 }
  0x5a   :  { %p6996_p0 = pnand %p6994_p13, %p6991_p12 }
  0x5c   :  { %6999 = shalt.err (!%p6996_p0)
}
  0x5d   :  { %s7000_s2 = scalar_lea.vmem %s85_s16, 336  ;;  %s7004_s5 = scalar_lea.vmem %s85_s16, 352 }
  0x5e   :  { %p7001_p1 = scmp.ne.s32.totalorder %s85_s16, %s7000_s2  ;;  %p7005_p2 = scmp.lt.s32.totalorder %s85_s16, %s85_s16 }
  0x5f   :  { %p7006_p3 = scmp.lt.s32.totalorder %s7004_s5, %s7000_s2 }
  0x61   :  { %p7007_p4 = por %p7006_p3, %p7005_p2 }
  0x63   :  { %p7008_p5 = pnand %p7007_p4, %p7001_p1 }
  0x65   :  { %7011 = shalt.err (!%p7008_p5)
}
  0x66   :  { %87 = dma.hbm_to_vmem [thread:$0]  %s7294_s6, 336, %s85_s16, [#allocation11]  }
  0x67   :  { %7012 = dma.done.wait [#allocation3], 512  }
  0x68   :  { %7013 = vsyncadd [#allocation3], 4294966784 }
  0x69   :  { %7014 = dma.done.wait [#allocation5], 65536  }
  0x6a   :  { %7015 = vsyncadd [#allocation5], 4294901760 }
  0x6b   :  { %7016 = dma.done.wait [#allocation8], 20480  }
  0x6c   :  { %7017 = vsyncadd [#allocation8], 4294946816 }
  0x6d   :  { %7018 = dma.done.wait [#allocation11], 336  }
  0x6e   :  { %7019 = vsyncadd [#allocation11], 4294966960  ;;  %v7032_v0 = vmov 0   ;;  %v6265_v1 = vld [vmem:[#allocation2 + $0x4] ss:$16 sps:$4 sm:$0xff]   ;;  %vm160_vm0 = vcmask 130048  }
  0x6f   :  { %196 = vmatprep.mubr.bf16.mxu0 %v7032_v0  ;;  %239 = vmatprep.mubr.bf16.mxu1 %v7032_v0  ;;  %v6267_v2 = vld [vmem:[#allocation2] ss:$16 sps:$4 sm:$0xff]   ;;  %v6269_v4 = vld [vmem:[#allocation2 + $0xc] ss:$16 sps:$4 sm:$0xff]   ;;  %v6271_v5 = vld [vmem:[#allocation2 + $0x8] ss:$16 sps:$4 sm:$0xff]  }
  0x70   :  { %164 = vmatprep.subr.bf16.mxu0 %v6265_v1  ;;  %v6268_v3 = vld [vmem:[%s7288_s0] sm:$0xff]   ;;  %v259_v8 = vld [vmem:[#allocation4 + $0x8] sm:$0xff]  ;;  %207 = vmatprep.subr.bf16.mxu1 %v6269_v4 }
  0x71   :  { %165 = vmatpush1.bf16.msra.mxu0 %v6267_v2  ;;  %v258_v6 = vld [vmem:[#allocation4] sm:$0xff]  ;;  %v263_v9 = vld [vmem:[#allocation4 + $0x28] sm:$0xff]  ;;  %208 = vmatpush1.bf16.msra.mxu1 %v6271_v5 }
  0x72   :  { %v262_v7 = vld [vmem:[#allocation4 + $0x20] sm:$0xff]  ;;  %v5449_v12 = vcombine.high %v259_v8, %v263_v9  ;;  %v267_v15 = vld [vmem:[#allocation4 + $0x48] sm:$0xff]  ;;  %v5448_v16 = vcombine.low %v259_v8, %v263_v9 }
  0x73   :  { %v5446_v10 = vcombine.low %v258_v6, %v262_v7  ;;  %v5447_v11 = vcombine.high %v258_v6, %v262_v7  ;;  %v266_v13 = vld [vmem:[#allocation4 + $0x40] sm:$0xff]  ;;  %v271_v18 = vld [vmem:[#allocation4 + $0x68] sm:$0xff] }
  0x74   :  { %v270_v14 = vld [vmem:[#allocation4 + $0x60] sm:$0xff]  ;;  %5444 = vmatmul.mubr.msk.bf16.vlgmr.msra.gmra.mrb[0].mxu0 %vm160_vm0, %v6268_v3  ;;  %1922 = vmatprep.subr.bf16.mxu1 %v5449_v12  ;;  %v5457_v21 = vcombine.high %v267_v15, %v271_v18  ;;  %v275_v23 = vld [vmem:[#allocation4 + $0x88] sm:$0xff]  ;;  %v5456_v26 = vcombine.low %v267_v15, %v271_v18 }
  0x75   :  { %v5455_v17 = vcombine.high %v266_v13, %v270_v14  ;;  %v274_v19 = vld [vmem:[#allocation4 + $0x80] sm:$0xff]  ;;  %1836 = vmatprep.subr.bf16.mxu0 %v5447_v11  ;;  %v5454_v22 = vcombine.low %v266_v13, %v270_v14  ;;  %v279_v24 = vld [vmem:[#allocation4 + $0xa8] sm:$0xff]  ;;  %5445 = vmatmul.mubr.msk.bf16.vlgmr.msra.gmra.mrb[0].mxu1 %vm160_vm0, %v6268_v3 }
  0x76   :  { %v278_v20 = vld [vmem:[#allocation4 + $0xa0] sm:$0xff]  ;;  %1837 = vmatpush1.bf16.msra.mxu0 %v5446_v10  ;;  %1923 = vmatpush1.bf16.msra.mxu1 %v5448_v16  ;;  %v5465_v29 = vcombine.high %v275_v23, %v279_v24  ;;  %v283_v31 = vld [vmem:[#allocation4 + $0xc8] sm:$0xff]  ;;  %v5464_v34 = vcombine.low %v275_v23, %v279_v24 }
  0x77   :  { %1838 = vmatprep.subr.bf16.mxu0 %v5455_v17  ;;  %v5463_v25 = vcombine.high %v274_v19, %v278_v20  ;;  %v282_v27 = vld [vmem:[#allocation4 + $0xc0] sm:$0xff]  ;;  %1924 = vmatprep.subr.bf16.mxu1 %v5457_v21  ;;  %v5462_v30 = vcombine.low %v274_v19, %v278_v20  ;;  %v287_v32 = vld [vmem:[#allocation4 + $0xe8] sm:$0xff] }
  0x78   :  { %v286_v28 = vld [vmem:[#allocation4 + $0xe0] sm:$0xff]  ;;  %v5473_v37 = vcombine.high %v283_v31, %v287_v32  ;;  %v291_v39 = vld [vmem:[#allocation4 + $0x108] sm:$0xff]  ;;  %v5472_v42 = vcombine.low %v283_v31, %v287_v32 }
  0x79   :  { %v5471_v33 = vcombine.high %v282_v27, %v286_v28  ;;  %v290_v35 = vld [vmem:[#allocation4 + $0x100] sm:$0xff]  ;;  %v5470_v38 = vcombine.low %v282_v27, %v286_v28  ;;  %v295_v40 = vld [vmem:[#allocation4 + $0x128] sm:$0xff] }
  0x7a   :  { %1839 = vmatpush1.bf16.msra.mxu0 %v5454_v22  ;;  %1925 = vmatpush1.bf16.msra.mxu1 %v5456_v26  ;;  %v294_v36 = vld [vmem:[#allocation4 + $0x120] sm:$0xff]  ;;  %v5481_v45 = vcombine.high %v291_v39, %v295_v40  ;;  %v299_v47 = vld [vmem:[#allocation4 + $0x148] sm:$0xff]  ;;  %v5480_v52 = vcombine.low %v291_v39, %v295_v40 }
  0x7b   :  { %1840 = vmatprep.subr.bf16.mxu0 %v5463_v25  ;;  %1926 = vmatprep.subr.bf16.mxu1 %v5465_v29  ;;  %v5479_v41 = vcombine.high %v290_v35, %v294_v36  ;;  %v298_v43 = vld [vmem:[#allocation4 + $0x140] sm:$0xff]  ;;  %v5478_v46 = vcombine.low %v290_v35, %v294_v36  ;;  %v303_v48 = vld [vmem:[#allocation4 + $0x168] sm:$0xff] }
  0x7c   :  { %v302_v44 = vld [vmem:[#allocation4 + $0x160] sm:$0xff]  ;;  %v307_v53 = vld [vmem:[#allocation4 + $0x188] sm:$0xff]  ;;  %v5489_v55 = vcombine.high %v299_v47, %v303_v48  ;;  %v5488_v60 = vcombine.low %v299_v47, %v303_v48 }
  0x7d   :  { %v5487_v49 = vcombine.high %v298_v43, %v302_v44  ;;  %v306_v50 = vld [vmem:[#allocation4 + $0x180] sm:$0xff]  ;;  %v311_v54 = vld [vmem:[#allocation4 + $0x1a8] sm:$0xff]  ;;  %v5486_v56 = vcombine.low %v298_v43, %v302_v44 }
  0x7e   :  { %1841 = vmatpush1.bf16.msra.mxu0 %v5462_v30  ;;  %1927 = vmatpush1.bf16.msra.mxu1 %v5464_v34  ;;  %v310_v51 = vld [vmem:[#allocation4 + $0x1a0] sm:$0xff]  ;;  %v315_v61 = vld [vmem:[#allocation4 + $0x1c8] sm:$0xff]  ;;  %v5497_v63 = vcombine.high %v307_v53, %v311_v54  ;;  %v5496_v5 = vcombine.low %v307_v53, %v311_v54 }
  0x7f   :  { %1842 = vmatprep.subr.bf16.mxu0 %v5471_v33  ;;  %1928 = vmatprep.subr.bf16.mxu1 %v5473_v37  ;;  %v314_v57 = vld [vmem:[#allocation4 + $0x1c0] sm:$0xff]  ;;  %v5495_v59 = vcombine.high %v306_v50, %v310_v51  ;;  %v319_v62 = vld [vmem:[#allocation4 + $0x1e8] sm:$0xff]  ;;  %v5494_v1 = vcombine.low %v306_v50, %v310_v51 }
  0x80   :  { %v318_v58 = vld [vmem:[#allocation4 + $0x1e0] sm:$0xff]  ;;  %v323_v6 = vld [vmem:[#allocation4 + $0x208] sm:$0xff]  ;;  %v5505_v8 = vcombine.high %v315_v61, %v319_v62  ;;  %v5504_v13 = vcombine.low %v315_v61, %v319_v62 }
  0x81   :  { %v322_v2 = vld [vmem:[#allocation4 + $0x200] sm:$0xff]  ;;  %v5503_v4 = vcombine.high %v314_v57, %v318_v58  ;;  %v327_v7 = vld [vmem:[#allocation4 + $0x228] sm:$0xff]  ;;  %v5502_v9 = vcombine.low %v314_v57, %v318_v58 }
  0x82   :  { %1843 = vmatpush1.bf16.msra.mxu0 %v5470_v38  ;;  %1929 = vmatpush1.bf16.msra.mxu1 %v5472_v42  ;;  %v326_v3 = vld [vmem:[#allocation4 + $0x220] sm:$0xff]  ;;  %v331_v14 = vld [vmem:[#allocation4 + $0x248] sm:$0xff]  ;;  %v5513_v16 = vcombine.high %v323_v6, %v327_v7  ;;  %v5512_v21 = vcombine.low %v323_v6, %v327_v7 }
  0x83   :  { %1844 = vmatprep.subr.bf16.mxu0 %v5479_v41  ;;  %1930 = vmatprep.subr.bf16.mxu1 %v5481_v45  ;;  %v330_v10 = vld [vmem:[#allocation4 + $0x240] sm:$0xff]  ;;  %v5511_v12 = vcombine.high %v322_v2, %v326_v3  ;;  %v335_v15 = vld [vmem:[#allocation4 + $0x268] sm:$0xff]  ;;  %v5510_v17 = vcombine.low %v322_v2, %v326_v3 }
  0x84   :  { %v334_v11 = vld [vmem:[#allocation4 + $0x260] sm:$0xff]  ;;  %v339_v22 = vld [vmem:[#allocation4 + $0x288] sm:$0xff]  ;;  %v5521_v24 = vcombine.high %v331_v14, %v335_v15  ;;  %v5520_v29 = vcombine.low %v331_v14, %v335_v15 }
  0x85   :  { %v338_v18 = vld [vmem:[#allocation4 + $0x280] sm:$0xff]  ;;  %v5519_v20 = vcombine.high %v330_v10, %v334_v11  ;;  %v343_v23 = vld [vmem:[#allocation4 + $0x2a8] sm:$0xff]  ;;  %v5518_v25 = vcombine.low %v330_v10, %v334_v11 }
  0x86   :  { %1845 = vmatpush1.bf16.msra.mxu0 %v5478_v46  ;;  %1931 = vmatpush1.bf16.msra.mxu1 %v5480_v52  ;;  %v342_v19 = vld [vmem:[#allocation4 + $0x2a0] sm:$0xff]  ;;  %v347_v30 = vld [vmem:[#allocation4 + $0x2c8] sm:$0xff]  ;;  %v5529_v32 = vcombine.high %v339_v22, %v343_v23  ;;  %v5528_v37 = vcombine.low %v339_v22, %v343_v23 }
  0x87   :  { %1846 = vmatprep.subr.bf16.mxu0 %v5487_v49  ;;  %1932 = vmatprep.subr.bf16.mxu1 %v5489_v55  ;;  %v346_v26 = vld [vmem:[#allocation4 + $0x2c0] sm:$0xff]  ;;  %v5527_v28 = vcombine.high %v338_v18, %v342_v19  ;;  %v351_v31 = vld [vmem:[#allocation4 + $0x2e8] sm:$0xff]  ;;  %v5526_v33 = vcombine.low %v338_v18, %v342_v19 }
  0x88   :  { %v350_v27 = vld [vmem:[#allocation4 + $0x2e0] sm:$0xff]  ;;  %v355_v38 = vld [vmem:[#allocation4 + $0x308] sm:$0xff]  ;;  %v5537_v40 = vcombine.high %v347_v30, %v351_v31  ;;  %v5536_v45 = vcombine.low %v347_v30, %v351_v31 }
  0x89   :  { %v354_v34 = vld [vmem:[#allocation4 + $0x300] sm:$0xff]  ;;  %v5535_v36 = vcombine.high %v346_v26, %v350_v27  ;;  %v359_v39 = vld [vmem:[#allocation4 + $0x328] sm:$0xff]  ;;  %v5534_v41 = vcombine.low %v346_v26, %v350_v27 }
  0x8a   :  { %1847 = vmatpush1.bf16.msra.mxu0 %v5486_v56  ;;  %1933 = vmatpush1.bf16.msra.mxu1 %v5488_v60  ;;  %v358_v35 = vld [vmem:[#allocation4 + $0x320] sm:$0xff]  ;;  %v363_v46 = vld [vmem:[#allocation4 + $0x348] sm:$0xff]  ;;  %v5545_v48 = vcombine.high %v355_v38, %v359_v39  ;;  %v5544_v51 = vcombine.low %v355_v38, %v359_v39 }
  0x8b   :  { %1848 = vmatprep.subr.bf16.mxu0 %v5495_v59  ;;  %1934 = vmatprep.subr.bf16.mxu1 %v5497_v63  ;;  %v362_v42 = vld [vmem:[#allocation4 + $0x340] sm:$0xff]  ;;  %v5543_v44 = vcombine.high %v354_v34, %v358_v35  ;;  %v367_v47 = vld [vmem:[#allocation4 + $0x368] sm:$0xff]  ;;  %v5542_v49 = vcombine.low %v354_v34, %v358_v35 }
  0x8c   :  { %v366_v43 = vld [vmem:[#allocation4 + $0x360] sm:$0xff]  ;;  %v5553_v52 = vcombine.high %v363_v46, %v367_v47  ;;  %v5552_v54 = vcombine.low %v363_v46, %v367_v47  ;;  %v371_v57 = vld [vmem:[#allocation4 + $0x388] sm:$0xff] }
  0x8d   :  { %v5551_v50 = vcombine.high %v362_v42, %v366_v43  ;;  %v5550_v53 = vcombine.low %v362_v42, %v366_v43  ;;  %v370_v55 = vld [vmem:[#allocation4 + $0x380] sm:$0xff]  ;;  %v375_v59 = vld [vmem:[#allocation4 + $0x3a8] sm:$0xff] }
  0x8e   :  { %1849 = vmatpush1.bf16.msra.mxu0 %v5494_v1  ;;  %1935 = vmatpush1.bf16.msra.mxu1 %v5496_v5  ;;  %v374_v56 = vld [vmem:[#allocation4 + $0x3a0] sm:$0xff]  ;;  %v5560_v61 = vcombine.low %v371_v57, %v375_v59  ;;  %v5561_v62 = vcombine.high %v371_v57, %v375_v59  ;;  %v379_v2 = vld [vmem:[#allocation4 + $0x3c8] sm:$0xff] }
  0x8f   :  { %1850 = vmatprep.subr.bf16.mxu0 %v5503_v4  ;;  %1936 = vmatprep.subr.bf16.mxu1 %v5505_v8  ;;  %v5559_v58 = vcombine.high %v370_v55, %v374_v56  ;;  %v5558_v60 = vcombine.low %v370_v55, %v374_v56  ;;  %v378_v63 = vld [vmem:[#allocation4 + $0x3c0] sm:$0xff]  ;;  %v383_v4 = vld [vmem:[#allocation4 + $0x3e8] sm:$0xff] }
  0x90   :  { %v382_v1 = vld [vmem:[#allocation4 + $0x3e0] sm:$0xff]  ;;  %v5568_v6 = vcombine.low %v379_v2, %v383_v4  ;;  %v5569_v7 = vcombine.high %v379_v2, %v383_v4  ;;  %v387_v10 = vld [vmem:[#allocation4 + $0x408] sm:$0xff] }
  0x91   :  { %v5567_v3 = vcombine.high %v378_v63, %v382_v1  ;;  %v5566_v5 = vcombine.low %v378_v63, %v382_v1  ;;  %v386_v8 = vld [vmem:[#allocation4 + $0x400] sm:$0xff]  ;;  %v403_v57 = vld [vmem:[#allocation4 + $0x488] sm:$0xff] }
  0x92   :  { %1851 = vmatpush1.bf16.msra.mxu0 %v5502_v9  ;;  %1937 = vmatpush1.bf16.msra.mxu1 %v5504_v13  ;;  %v390_v9 = vld [vmem:[#allocation4 + $0x420] sm:$0xff]  ;;  %v415_v4 = vld [vmem:[#allocation4 + $0x4e8] sm:$0xff] }
  0x93   :  { %1852 = vmatprep.subr.bf16.mxu0 %v5511_v12  ;;  %1938 = vmatprep.subr.bf16.mxu1 %v5513_v16  ;;  %v5575_v11 = vcombine.high %v386_v8, %v390_v9  ;;  %v391_v12 = vld [vmem:[#allocation4 + $0x428] sm:$0xff]  ;;  %v5574_v13 = vcombine.low %v386_v8, %v390_v9  ;;  %v115_v16 = vlaneseq  ;;  %v113_v19 = vld [vmem:[#allocation10] sm:$0xf] }
  0x94   :  { %v5576_v14 = vcombine.low %v387_v10, %v391_v12  ;;  %v5577_v15 = vcombine.high %v387_v10, %v391_v12  ;;  %v394_v39 = vld [vmem:[#allocation4 + $0x440] sm:$0xff]  ;;  %v423_v12 = vld [vmem:[#allocation4 + $0x528] sm:$0xff] }
  0x95   :  { %v398_v43 = vld [vmem:[#allocation4 + $0x460] sm:$0xff] }
  0x96   :  { %1853 = vmatpush1.bf16.msra.mxu0 %v5510_v17  ;;  %1939 = vmatpush1.bf16.msra.mxu1 %v5512_v21  ;;  %v7161_v17 = vshrl.u32 %v115_v16, 7  ;;  %v406_v56 = vld [vmem:[#allocation4 + $0x4a0] sm:$0xff] }
  0x97   :  { %1854 = vmatprep.subr.bf16.mxu0 %v5519_v20  ;;  %1940 = vmatprep.subr.bf16.mxu1 %v5521_v24  ;;  %v410_v1 = vld [vmem:[#allocation4 + $0x4c0] sm:$0xff] }
  0x98   :  { %v7164_v18 = vsub.s32 0, %v7161_v17  ;;  %v7167_v20 = vsub.s32 1, %v7161_v17  ;;  %v7170_v21 = vsub.s32 2, %v7161_v17  ;;  %v7173_v22 = vsub.s32 3, %v7161_v17  ;;  %v414_v2 = vld [vmem:[#allocation4 + $0x4e0] sm:$0xff] }
  0x99   :  { %v418_v9 = vld [vmem:[#allocation4 + $0x500] sm:$0xff] }
  0x9a   :  { %1855 = vmatpush1.bf16.msra.mxu0 %v5518_v25  ;;  %1941 = vmatpush1.bf16.msra.mxu1 %v5520_v29  ;;  %v118_v23 = vrot.slane %v113_v19, %v7164_v18  ;;  %v122_v25 = vrot.slane %v113_v19, %v7167_v20  ;;  %v126_v26 = vrot.slane %v113_v19, %v7170_v21  ;;  %v422_v10 = vld [vmem:[#allocation4 + $0x520] sm:$0xff] }
  0x9b   :  { %1856 = vmatprep.subr.bf16.mxu0 %v5527_v28  ;;  %1942 = vmatprep.subr.bf16.mxu1 %v5529_v32  ;;  %v130_v28 = vrot.slane %v113_v19, %v7173_v22  ;;  %v426_v19 = vld [vmem:[#allocation4 + $0x540] sm:$0xff] }
  0x9e   :  { %1857 = vmatpush1.bf16.msra.mxu0 %v5526_v33  ;;  %1943 = vmatpush1.bf16.msra.mxu1 %v5528_v37 }
  0x9f   :  { %1858 = vmatprep.subr.bf16.mxu0 %v5535_v36  ;;  %1944 = vmatprep.subr.bf16.mxu1 %v5537_v40 }
  0xa2   :  { %1859 = vmatpush1.bf16.msra.mxu0 %v5534_v41  ;;  %1945 = vmatpush1.bf16.msra.mxu1 %v5536_v45  ;;  %v399_v45 = vld [vmem:[#allocation4 + $0x468] sm:$0xff] }
  0xa3   :  { %1860 = vmatprep.subr.bf16.mxu0 %v5543_v44  ;;  %1946 = vmatprep.subr.bf16.mxu1 %v5545_v48  ;;  %v395_v44 = vld [vmem:[#allocation4 + $0x448] sm:$0xff] }
  0xa6   :  { %1861 = vmatpush1.bf16.msra.mxu0 %v5542_v49  ;;  %1947 = vmatpush1.bf16.msra.mxu1 %v5544_v51 }
  0xa7   :  { %1862 = vmatprep.subr.bf16.mxu0 %v5551_v50  ;;  %1948 = vmatprep.subr.bf16.mxu1 %v5553_v52  ;;  %v5583_v52 = vcombine.high %v394_v39, %v398_v43 }
  0xaa   :  { %1863 = vmatpush1.bf16.msra.mxu0 %v5550_v53  ;;  %1949 = vmatpush1.bf16.msra.mxu1 %v5552_v54  ;;  %v5585_v53 = vcombine.high %v395_v44, %v399_v45  ;;  %v402_v54 = vld [vmem:[#allocation4 + $0x480] sm:$0xff] }
  0xab   :  { %1864 = vmatprep.subr.bf16.mxu0 %v5559_v58  ;;  %1950 = vmatprep.subr.bf16.mxu1 %v5561_v62  ;;  %v407_v58 = vld [vmem:[#allocation4 + $0x4a8] sm:$0xff]  ;;  %v5591_v62 = vcombine.high %v402_v54, %v406_v56 }
  0xac   :  { %v5593_v63 = vcombine.high %v403_v57, %v407_v58 }
  0xae   :  { %1865 = vmatpush1.bf16.msra.mxu0 %v5558_v60  ;;  %1951 = vmatpush1.bf16.msra.mxu1 %v5560_v61  ;;  %v5582_v60 = vcombine.low %v394_v39, %v398_v43  ;;  %v5584_v61 = vcombine.low %v395_v44, %v399_v45  ;;  %v442_v39 = vld [vmem:[#allocation4 + $0x5c0] sm:$0xff] }
  0xaf   :  { %1866 = vmatprep.subr.bf16.mxu0 %v5567_v3  ;;  %1952 = vmatprep.subr.bf16.mxu1 %v5569_v7  ;;  %v411_v3 = vld [vmem:[#allocation4 + $0x4c8] sm:$0xff]  ;;  %v5599_v7 = vcombine.high %v410_v1, %v414_v2 }
  0xb0   :  { %v5601_v8 = vcombine.high %v411_v3, %v415_v4 }
  0xb2   :  { %1867 = vmatpush1.bf16.msra.mxu0 %v5566_v5  ;;  %1953 = vmatpush1.bf16.msra.mxu1 %v5568_v6  ;;  %v5590_v5 = vcombine.low %v402_v54, %v406_v56  ;;  %v5592_v6 = vcombine.low %v403_v57, %v407_v58  ;;  %v455_v54 = vld [vmem:[#allocation4 + $0x628] sm:$0xff] }
  0xb3   :  { %1879 = vmatprep.subr.bf16.mxu0 %v5575_v11  ;;  %1965 = vmatprep.subr.bf16.mxu1 %v5577_v15  ;;  %v419_v11 = vld [vmem:[#allocation4 + $0x508] sm:$0xff]  ;;  %v5607_v15 = vcombine.high %v418_v9, %v422_v10 }
  0xb4   :  { %v5609_v16 = vcombine.high %v419_v11, %v423_v12 }
 0x147   :  { %v198_v24 = vpop.f32.mrb[0].mxu0 }
 0x148   :  { %v200_v27 = vpop.f32.mrb[1].mxu0  ;;  %v199_v30 = vadd.f32 %v198_v24, %v118_v23  ;;  %v241_v33 = vpop.f32.mrb[0].mxu1  ;;  %v427_v24 = vld [vmem:[#allocation4 + $0x548] sm:$0xff] }
 0x149   :  { %v202_v29 = vpop.f32.mrb[2].mxu0  ;;  %v201_v34 = vadd.f32 %v200_v27, %v122_v25  ;;  %v7179_v36 = vadd.f32 %v241_v33, %v126_v26  ;;  %v243_v37 = vpop.f32.mrb[1].mxu1  ;;  %v5608_v27 = vcombine.low %v419_v11, %v423_v12  ;;  %v439_v33 = vld [vmem:[#allocation4 + $0x5a8] sm:$0xff] }
 0x14a   :  { %v203_v31 = vadd.f32 %v202_v29, %v118_v23  ;;  %v204_v32 = vpop.f32.mrb[3].mxu0  ;;  %v244_v40 = vadd.f32 %v243_v37, %v130_v28  ;;  %v245_v41 = vpop.f32.mrb[2].mxu1  ;;  %v430_v23 = vld [vmem:[#allocation4 + $0x560] sm:$0xff] }
 0x14b   :  { %v205_v35 = vadd.f32 %v204_v32, %v122_v25  ;;  %v7181_v46 = vadd.f32 %v245_v41, %v126_v26  ;;  %v247_v47 = vpop.f32.mrb[3].mxu1  ;;  %v431_v25 = vld [vmem:[#allocation4 + $0x568] sm:$0xff]  ;;  %v5606_v26 = vcombine.low %v418_v9, %v422_v10 }
 0x14c   :  { %v250_v38 = vpack.c.bf16 %v203_v31, %v199_v30  ;;  %v248_v48 = vadd.f32 %v247_v47, %v130_v28  ;;  %v5615_v28 = vcombine.high %v426_v19, %v430_v23  ;;  %v5617_v29 = vcombine.high %v427_v24, %v431_v25  ;;  %v434_v30 = vld [vmem:[#allocation4 + $0x580] sm:$0xff]  ;;  %v435_v32 = vld [vmem:[#allocation4 + $0x588] sm:$0xff] }
 0x14d   :  { %v251_v42 = vpack.c.bf16 %v205_v35, %v201_v34  ;;  %v252_v50 = vpack.c.bf16 %v7181_v46, %v7179_v36  ;;  %v438_v31 = vld [vmem:[#allocation4 + $0x5a0] sm:$0xff]  ;;  %v5614_v34 = vcombine.low %v426_v19, %v430_v23  ;;  %v5616_v35 = vcombine.low %v427_v24, %v431_v25  ;;  %v443_v41 = vld [vmem:[#allocation4 + $0x5c8] sm:$0xff] }
 0x14e   :  { %v7189_v51 = vmax.bf16 %v7032_v0, %v250_v38  ;;  %v253_v55 = vpack.c.bf16 %v248_v48, %v244_v40  ;;  %v5623_v37 = vcombine.high %v434_v30, %v438_v31  ;;  %v5625_v38 = vcombine.high %v435_v32, %v439_v33  ;;  %v446_v40 = vld [vmem:[#allocation4 + $0x5e0] sm:$0xff] }
 0x14f   :  { %v7184_v49 = vmax.bf16 %v7032_v0, %v251_v42  ;;  %v447_v42 = vld [vmem:[#allocation4 + $0x5e8] sm:$0xff]  ;;  %v5622_v43 = vcombine.low %v434_v30, %v438_v31  ;;  %v5624_v44 = vcombine.low %v435_v32, %v439_v33  ;;  %v5631_v45 = vcombine.high %v442_v39, %v446_v40  ;;  %v450_v48 = vld [vmem:[#allocation4 + $0x600] sm:$0xff] }
 0x150   :  { %v7196_v59 = vmax.bf16 %v7032_v0, %v253_v55  ;;  %v5633_v47 = vcombine.high %v443_v41, %v447_v42  ;;  %v5630_v55 = vcombine.low %v442_v39, %v446_v40  ;;  %v5632_v56 = vcombine.low %v443_v41, %v447_v42 }
 0x151   :  { %1868 = vmatprep.mubr.bf16.mxu0 %v7184_v49  ;;  %1954 = vmatprep.mubr.bf16.mxu1 %v7184_v49 }
 0x152   :  { %1869 = vmatmul.mubr.bf16.vlgmr.msra.gmra.mrb[4].mxu0 %v7189_v51  ;;  %1955 = vmatmul.mubr.bf16.vlgmr.msra.gmra.mrb[4].mxu1 %v7189_v51 }
 0x153   :  { %1880 = vmatpush1.bf16.msra.mxu0 %v5574_v13  ;;  %1966 = vmatpush1.bf16.msra.mxu1 %v5576_v14  ;;  %v5598_v13 = vcombine.low %v410_v1, %v414_v2  ;;  %v5600_v14 = vcombine.low %v411_v3, %v415_v4 }
 0x154   :  { %1881 = vmatprep.subr.bf16.mxu0 %v5583_v52  ;;  %1967 = vmatprep.subr.bf16.mxu1 %v5585_v53  ;;  %v454_v52 = vld [vmem:[#allocation4 + $0x620] sm:$0xff]  ;;  %v451_v53 = vld [vmem:[#allocation4 + $0x608] sm:$0xff] }
 0x155   :  { %1911 = vmatprep.mubr.bf16.mxu0 %v7196_v59  ;;  %1997 = vmatprep.mubr.bf16.mxu1 %v7196_v59  ;;  %v5639_v57 = vcombine.high %v450_v48, %v454_v52  ;;  %v5641_v58 = vcombine.high %v451_v53, %v455_v54  ;;  %v5638_v1 = vcombine.low %v450_v48, %v454_v52 }
 0x156   :  { %v5640_v2 = vcombine.low %v451_v53, %v455_v54 }
 0x157   :  { %1882 = vmatpush1.bf16.msra.mxu0 %v5582_v60  ;;  %1968 = vmatpush1.bf16.msra.mxu1 %v5584_v61  ;;  %v458_v60 = vld [vmem:[#allocation4 + $0x640] sm:$0xff] }
 0x158   :  { %1883 = vmatprep.subr.bf16.mxu0 %v5591_v62  ;;  %1969 = vmatprep.subr.bf16.mxu1 %v5593_v63  ;;  %v462_v61 = vld [vmem:[#allocation4 + $0x660] sm:$0xff]  ;;  %v459_v62 = vld [vmem:[#allocation4 + $0x648] sm:$0xff] }
 0x159   :  { %v463_v63 = vld [vmem:[#allocation4 + $0x668] sm:$0xff]  ;;  %v5647_v3 = vcombine.high %v458_v60, %v462_v61  ;;  %v5646_v9 = vcombine.low %v458_v60, %v462_v61 }
 0x15a   :  { %v5649_v4 = vcombine.high %v459_v62, %v463_v63  ;;  %v5648_v10 = vcombine.low %v459_v62, %v463_v63 }
 0x15b   :  { %1884 = vmatpush1.bf16.msra.mxu0 %v5590_v5  ;;  %1970 = vmatpush1.bf16.msra.mxu1 %v5592_v6  ;;  %v466_v5 = vld [vmem:[#allocation4 + $0x680] sm:$0xff] }
 0x15c   :  { %1885 = vmatprep.subr.bf16.mxu0 %v5599_v7  ;;  %1971 = vmatprep.subr.bf16.mxu1 %v5601_v8  ;;  %v470_v6 = vld [vmem:[#allocation4 + $0x6a0] sm:$0xff]  ;;  %v467_v7 = vld [vmem:[#allocation4 + $0x688] sm:$0xff] }
 0x15d   :  { %v471_v8 = vld [vmem:[#allocation4 + $0x6a8] sm:$0xff]  ;;  %v5655_v11 = vcombine.high %v466_v5, %v470_v6  ;;  %v5654_v19 = vcombine.low %v466_v5, %v470_v6 }
 0x15e   :  { %v5657_v12 = vcombine.high %v467_v7, %v471_v8  ;;  %v5656_v23 = vcombine.low %v467_v7, %v471_v8 }
 0x15f   :  { %1886 = vmatpush1.bf16.msra.mxu0 %v5598_v13  ;;  %1972 = vmatpush1.bf16.msra.mxu1 %v5600_v14  ;;  %v474_v13 = vld [vmem:[#allocation4 + $0x6c0] sm:$0xff] }
 0x160   :  { %1887 = vmatprep.subr.bf16.mxu0 %v5607_v15  ;;  %1973 = vmatprep.subr.bf16.mxu1 %v5609_v16  ;;  %v478_v14 = vld [vmem:[#allocation4 + $0x6e0] sm:$0xff]  ;;  %v475_v15 = vld [vmem:[#allocation4 + $0x6c8] sm:$0xff] }
 0x161   :  { %v479_v16 = vld [vmem:[#allocation4 + $0x6e8] sm:$0xff]  ;;  %v5663_v24 = vcombine.high %v474_v13, %v478_v14  ;;  %v5662_v30 = vcombine.low %v474_v13, %v478_v14  ;;  %v7204_v14 = vmax.bf16 %v7032_v0, %v252_v50 }
 0x162   :  { %v5665_v25 = vcombine.high %v475_v15, %v479_v16  ;;  %v5664_v31 = vcombine.low %v475_v15, %v479_v16 }
 0x163   :  { %1888 = vmatpush1.bf16.msra.mxu0 %v5606_v26  ;;  %1974 = vmatpush1.bf16.msra.mxu1 %v5608_v27  ;;  %v482_v26 = vld [vmem:[#allocation4 + $0x700] sm:$0xff] }
 0x164   :  { %1889 = vmatprep.subr.bf16.mxu0 %v5615_v28  ;;  %1975 = vmatprep.subr.bf16.mxu1 %v5617_v29  ;;  %v486_v27 = vld [vmem:[#allocation4 + $0x720] sm:$0xff]  ;;  %v483_v28 = vld [vmem:[#allocation4 + $0x708] sm:$0xff] }
 0x165   :  { %v487_v29 = vld [vmem:[#allocation4 + $0x728] sm:$0xff]  ;;  %v5671_v32 = vcombine.high %v482_v26, %v486_v27  ;;  %v5670_v39 = vcombine.low %v482_v26, %v486_v27  ;;  %v281_v26 = vld [vmem:[#allocation4 + $0xb8] sm:$0xff] }
 0x166   :  { %v5673_v33 = vcombine.high %v483_v28, %v487_v29  ;;  %v5672_v40 = vcombine.low %v483_v28, %v487_v29  ;;  %v284_v28 = vld [vmem:[#allocation4 + $0xd0] sm:$0xff] }
 0x167   :  { %1890 = vmatpush1.bf16.msra.mxu0 %v5614_v34  ;;  %1976 = vmatpush1.bf16.msra.mxu1 %v5616_v35  ;;  %v490_v34 = vld [vmem:[#allocation4 + $0x740] sm:$0xff]  ;;  %v288_v29 = vld [vmem:[#allocation4 + $0xf0] sm:$0xff] }
 0x168   :  { %1891 = vmatprep.subr.bf16.mxu0 %v5623_v37  ;;  %1977 = vmatprep.subr.bf16.mxu1 %v5625_v38  ;;  %v494_v35 = vld [vmem:[#allocation4 + $0x760] sm:$0xff]  ;;  %v491_v37 = vld [vmem:[#allocation4 + $0x748] sm:$0xff] }
 0x169   :  { %v495_v38 = vld [vmem:[#allocation4 + $0x768] sm:$0xff]  ;;  %v5679_v41 = vcombine.high %v490_v34, %v494_v35  ;;  %v5678_v48 = vcombine.low %v490_v34, %v494_v35  ;;  %v5475_v34 = vcombine.high %v284_v28, %v288_v29 }
 0x16a   :  { %v5681_v42 = vcombine.high %v491_v37, %v495_v38  ;;  %v5680_v52 = vcombine.low %v491_v37, %v495_v38  ;;  %v292_v37 = vld [vmem:[#allocation4 + $0x110] sm:$0xff] }
 0x16b   :  { %1892 = vmatpush1.bf16.msra.mxu0 %v5622_v43  ;;  %1978 = vmatpush1.bf16.msra.mxu1 %v5624_v44  ;;  %v498_v43 = vld [vmem:[#allocation4 + $0x780] sm:$0xff]  ;;  %v296_v38 = vld [vmem:[#allocation4 + $0x130] sm:$0xff] }
 0x16c   :  { %1893 = vmatprep.subr.bf16.mxu0 %v5631_v45  ;;  %1979 = vmatprep.subr.bf16.mxu1 %v5633_v47  ;;  %v502_v44 = vld [vmem:[#allocation4 + $0x7a0] sm:$0xff]  ;;  %v499_v45 = vld [vmem:[#allocation4 + $0x788] sm:$0xff] }
 0x16d   :  { %v503_v47 = vld [vmem:[#allocation4 + $0x7a8] sm:$0xff]  ;;  %v5687_v53 = vcombine.high %v498_v43, %v502_v44  ;;  %v5686_v60 = vcombine.low %v498_v43, %v502_v44  ;;  %v300_v44 = vld [vmem:[#allocation4 + $0x150] sm:$0xff] }
 0x16e   :  { %v5689_v54 = vcombine.high %v499_v45, %v503_v47  ;;  %v5688_v61 = vcombine.low %v499_v45, %v503_v47  ;;  %v304_v45 = vld [vmem:[#allocation4 + $0x170] sm:$0xff]  ;;  %v301_v47 = vld [vmem:[#allocation4 + $0x158] sm:$0xff] }
 0x16f   :  { %1894 = vmatpush1.bf16.msra.mxu0 %v5630_v55  ;;  %1980 = vmatpush1.bf16.msra.mxu1 %v5632_v56  ;;  %v506_v55 = vld [vmem:[#allocation4 + $0x7c0] sm:$0xff] }
 0x170   :  { %1895 = vmatprep.subr.bf16.mxu0 %v5639_v57  ;;  %1981 = vmatprep.subr.bf16.mxu1 %v5641_v58  ;;  %v510_v56 = vld [vmem:[#allocation4 + $0x7e0] sm:$0xff]  ;;  %v507_v57 = vld [vmem:[#allocation4 + $0x7c8] sm:$0xff] }
 0x171   :  { %v511_v58 = vld [vmem:[#allocation4 + $0x7e8] sm:$0xff]  ;;  %v5695_v62 = vcombine.high %v506_v55, %v510_v56  ;;  %v5694_v5 = vcombine.low %v506_v55, %v510_v56  ;;  %v308_v56 = vld [vmem:[#allocation4 + $0x190] sm:$0xff] }
 0x172   :  { %v5697_v63 = vcombine.high %v507_v57, %v511_v58  ;;  %v5696_v6 = vcombine.low %v507_v57, %v511_v58  ;;  %v312_v57 = vld [vmem:[#allocation4 + $0x1b0] sm:$0xff]  ;;  %v309_v58 = vld [vmem:[#allocation4 + $0x198] sm:$0xff] }
 0x173   :  { %1896 = vmatpush1.bf16.msra.mxu0 %v5638_v1  ;;  %1982 = vmatpush1.bf16.msra.mxu1 %v5640_v2  ;;  %v260_v1 = vld [vmem:[#allocation4 + $0x10] sm:$0xff] }
 0x174   :  { %1897 = vmatprep.subr.bf16.mxu0 %v5647_v3  ;;  %1983 = vmatprep.subr.bf16.mxu1 %v5649_v4  ;;  %v264_v2 = vld [vmem:[#allocation4 + $0x30] sm:$0xff]  ;;  %v261_v3 = vld [vmem:[#allocation4 + $0x18] sm:$0xff] }
 0x175   :  { %v265_v4 = vld [vmem:[#allocation4 + $0x38] sm:$0xff]  ;;  %v5451_v7 = vcombine.high %v260_v1, %v264_v2  ;;  %v5450_v13 = vcombine.low %v260_v1, %v264_v2  ;;  %v316_v2 = vld [vmem:[#allocation4 + $0x1d0] sm:$0xff] }
 0x176   :  { %v5453_v8 = vcombine.high %v261_v3, %v265_v4  ;;  %v5452_v15 = vcombine.low %v261_v3, %v265_v4  ;;  %v320_v3 = vld [vmem:[#allocation4 + $0x1f0] sm:$0xff]  ;;  %v317_v4 = vld [vmem:[#allocation4 + $0x1d8] sm:$0xff] }
 0x177   :  { %1898 = vmatpush1.bf16.msra.mxu0 %v5646_v9  ;;  %1984 = vmatpush1.bf16.msra.mxu1 %v5648_v10  ;;  %v268_v9 = vld [vmem:[#allocation4 + $0x50] sm:$0xff] }
 0x178   :  { %1899 = vmatprep.subr.bf16.mxu0 %v5655_v11  ;;  %1985 = vmatprep.subr.bf16.mxu1 %v5657_v12  ;;  %v272_v10 = vld [vmem:[#allocation4 + $0x70] sm:$0xff]  ;;  %v269_v11 = vld [vmem:[#allocation4 + $0x58] sm:$0xff] }
 0x179   :  { %v273_v12 = vld [vmem:[#allocation4 + $0x78] sm:$0xff]  ;;  %v5459_v16 = vcombine.high %v268_v9, %v272_v10  ;;  %v5458_v36 = vcombine.low %v268_v9, %v272_v10  ;;  %v324_v10 = vld [vmem:[#allocation4 + $0x210] sm:$0xff] }
 0x17a   :  { %v5460_v46 = vcombine.low %v269_v11, %v273_v12 }
 0x17b   :  { %1900 = vmatpush1.bf16.msra.mxu0 %v5654_v19  ;;  %1986 = vmatpush1.bf16.msra.mxu1 %v5656_v23  ;;  %v5461_v19 = vcombine.high %v269_v11, %v273_v12  ;;  %v276_v23 = vld [vmem:[#allocation4 + $0x90] sm:$0xff]  ;;  %v325_v12 = vld [vmem:[#allocation4 + $0x218] sm:$0xff] }
 0x17c   :  { %1901 = vmatprep.subr.bf16.mxu0 %v5663_v24  ;;  %1987 = vmatprep.subr.bf16.mxu1 %v5665_v25  ;;  %v280_v24 = vld [vmem:[#allocation4 + $0xb0] sm:$0xff]  ;;  %v277_v25 = vld [vmem:[#allocation4 + $0x98] sm:$0xff] }
 0x17d   :  { %v5467_v50 = vcombine.high %v276_v23, %v280_v24  ;;  %v5469_v27 = vcombine.high %v277_v25, %v281_v26  ;;  %v328_v11 = vld [vmem:[#allocation4 + $0x230] sm:$0xff] }
 0x17f   :  { %1902 = vmatpush1.bf16.msra.mxu0 %v5662_v30  ;;  %1988 = vmatpush1.bf16.msra.mxu1 %v5664_v31  ;;  %v285_v30 = vld [vmem:[#allocation4 + $0xd8] sm:$0xff] }
 0x180   :  { %1903 = vmatprep.subr.bf16.mxu0 %v5671_v32  ;;  %1989 = vmatprep.subr.bf16.mxu1 %v5673_v33  ;;  %v289_v31 = vld [vmem:[#allocation4 + $0xf8] sm:$0xff]  ;;  %v5466_v32 = vcombine.low %v276_v23, %v280_v24  ;;  %v5468_v33 = vcombine.low %v277_v25, %v281_v26  ;;  %v332_v24 = vld [vmem:[#allocation4 + $0x250] sm:$0xff] }
 0x181   :  { %v5477_v35 = vcombine.high %v285_v30, %v289_v31  ;;  %v336_v25 = vld [vmem:[#allocation4 + $0x270] sm:$0xff]  ;;  %v333_v26 = vld [vmem:[#allocation4 + $0x258] sm:$0xff] }
 0x183   :  { %1904 = vmatpush1.bf16.msra.mxu0 %v5670_v39  ;;  %1990 = vmatpush1.bf16.msra.mxu1 %v5672_v40  ;;  %v297_v39 = vld [vmem:[#allocation4 + $0x138] sm:$0xff]  ;;  %v5474_v40 = vcombine.low %v284_v28, %v288_v29  ;;  %v340_v29 = vld [vmem:[#allocation4 + $0x290] sm:$0xff] }
 0x184   :  { %1905 = vmatprep.subr.bf16.mxu0 %v5679_v41  ;;  %1991 = vmatprep.subr.bf16.mxu1 %v5681_v42  ;;  %v5476_v41 = vcombine.low %v285_v30, %v289_v31  ;;  %v5483_v42 = vcombine.high %v292_v37, %v296_v38  ;;  %v344_v30 = vld [vmem:[#allocation4 + $0x2b0] sm:$0xff]  ;;  %v341_v31 = vld [vmem:[#allocation4 + $0x298] sm:$0xff] }
 0x187   :  { %1906 = vmatpush1.bf16.msra.mxu0 %v5678_v48  ;;  %1992 = vmatpush1.bf16.msra.mxu1 %v5680_v52  ;;  %v305_v48 = vld [vmem:[#allocation4 + $0x178] sm:$0xff]  ;;  %v5482_v52 = vcombine.low %v292_v37, %v296_v38  ;;  %v348_v38 = vld [vmem:[#allocation4 + $0x2d0] sm:$0xff] }
 0x188   :  { %1907 = vmatprep.subr.bf16.mxu0 %v5687_v53  ;;  %1993 = vmatprep.subr.bf16.mxu1 %v5689_v54  ;;  %v5491_v54 = vcombine.high %v300_v44, %v304_v45  ;;  %v5493_v55 = vcombine.high %v301_v47, %v305_v48 }
 0x18b   :  { %1908 = vmatpush1.bf16.msra.mxu0 %v5686_v60  ;;  %1994 = vmatpush1.bf16.msra.mxu1 %v5688_v61  ;;  %v313_v60 = vld [vmem:[#allocation4 + $0x1b8] sm:$0xff]  ;;  %v5490_v61 = vcombine.low %v300_v44, %v304_v45  ;;  %v356_v45 = vld [vmem:[#allocation4 + $0x310] sm:$0xff] }
 0x18c   :  { %1909 = vmatprep.subr.bf16.mxu0 %v5695_v62  ;;  %1995 = vmatprep.subr.bf16.mxu1 %v5697_v63  ;;  %v5492_v62 = vcombine.low %v301_v47, %v305_v48  ;;  %v5499_v63 = vcombine.high %v308_v56, %v312_v57  ;;  %v5501_v1 = vcombine.high %v309_v58, %v313_v60  ;;  %v360_v47 = vld [vmem:[#allocation4 + $0x330] sm:$0xff]  ;;  %v357_v48 = vld [vmem:[#allocation4 + $0x318] sm:$0xff] }
 0x18f   :  { %1910 = vmatpush1.bf16.msra.mxu0 %v5694_v5  ;;  %1996 = vmatpush1.bf16.msra.mxu1 %v5696_v6  ;;  %v321_v5 = vld [vmem:[#allocation4 + $0x1f8] sm:$0xff]  ;;  %v5498_v6 = vcombine.low %v308_v56, %v312_v57  ;;  %v364_v57 = vld [vmem:[#allocation4 + $0x350] sm:$0xff] }
 0x190   :  { %2008 = vmatprep.subr.bf16.mxu0 %v5451_v7  ;;  %2094 = vmatprep.subr.bf16.mxu1 %v5453_v8  ;;  %v5500_v7 = vcombine.low %v309_v58, %v313_v60  ;;  %v5507_v8 = vcombine.high %v316_v2, %v320_v3  ;;  %v5509_v9 = vcombine.high %v317_v4, %v321_v5  ;;  %v368_v58 = vld [vmem:[#allocation4 + $0x370] sm:$0xff]  ;;  %v365_v60 = vld [vmem:[#allocation4 + $0x358] sm:$0xff] }
 0x192   :  { %1912 = vmatmul.mubr.bf16.vlgmr.msra.gmra.mrb[4].mxu0 %v7204_v14  ;;  %1998 = vmatmul.mubr.bf16.vlgmr.msra.gmra.mrb[4].mxu1 %v7204_v14 }
 0x193   :  { %2009 = vmatpush1.bf16.msra.mxu0 %v5450_v13  ;;  %2040 = vmatprep.mubr.bf16.mxu0 %v7184_v49  ;;  %v329_v13 = vld [vmem:[#allocation4 + $0x238] sm:$0xff] }
 0x194   :  { %2095 = vmatpush1.bf16.msra.mxu1 %v5452_v15  ;;  %2126 = vmatprep.mubr.bf16.mxu1 %v7184_v49  ;;  %v293_v49 = vld [vmem:[#allocation4 + $0x118] sm:$0xff]  ;;  %v5506_v15 = vcombine.low %v316_v2, %v320_v3  ;;  %v5517_v23 = vcombine.high %v325_v12, %v329_v13  ;;  %v372_v3 = vld [vmem:[#allocation4 + $0x390] sm:$0xff] }
 0x195   :  { %2010 = vmatprep.subr.bf16.mxu0 %v5459_v16  ;;  %2096 = vmatprep.subr.bf16.mxu1 %v5461_v19  ;;  %v5485_v43 = vcombine.high %v293_v49, %v297_v39  ;;  %v5484_v53 = vcombine.low %v293_v49, %v297_v39  ;;  %v5508_v16 = vcombine.low %v317_v4, %v321_v5  ;;  %v352_v49 = vld [vmem:[#allocation4 + $0x2f0] sm:$0xff]  ;;  %v349_v39 = vld [vmem:[#allocation4 + $0x2d8] sm:$0xff] }
 0x196   :  { %v5515_v19 = vcombine.high %v324_v10, %v328_v11  ;;  %v376_v4 = vld [vmem:[#allocation4 + $0x3b0] sm:$0xff]  ;;  %v373_v5 = vld [vmem:[#allocation4 + $0x398] sm:$0xff] }
 0x197   :  { %2011 = vmatpush1.bf16.msra.mxu0 %v5458_v36  ;;  %v337_v36 = vld [vmem:[#allocation4 + $0x278] sm:$0xff] }
 0x198   :  { %2097 = vmatpush1.bf16.msra.mxu1 %v5460_v46  ;;  %2012 = vmatprep.subr.bf16.mxu0 %v5467_v50  ;;  %v5514_v46 = vcombine.low %v324_v10, %v328_v11  ;;  %v5516_v50 = vcombine.low %v325_v12, %v329_v13  ;;  %v5525_v28 = vcombine.high %v333_v26, %v337_v36  ;;  %v380_v11 = vld [vmem:[#allocation4 + $0x3d0] sm:$0xff]  ;;  %v381_v13 = vld [vmem:[#allocation4 + $0x3d8] sm:$0xff] }
 0x199   :  { %2098 = vmatprep.subr.bf16.mxu1 %v5469_v27  ;;  %v5523_v27 = vcombine.high %v332_v24, %v336_v25  ;;  %v384_v12 = vld [vmem:[#allocation4 + $0x3f0] sm:$0xff] }
 0x19b   :  { %2013 = vmatpush1.bf16.msra.mxu0 %v5466_v32  ;;  %v345_v32 = vld [vmem:[#allocation4 + $0x2b8] sm:$0xff] }
 0x19c   :  { %2099 = vmatpush1.bf16.msra.mxu1 %v5468_v33  ;;  %2014 = vmatprep.subr.bf16.mxu0 %v5475_v34  ;;  %v5522_v33 = vcombine.low %v332_v24, %v336_v25  ;;  %v5524_v34 = vcombine.low %v333_v26, %v337_v36  ;;  %v5533_v37 = vcombine.high %v341_v31, %v345_v32  ;;  %v388_v25 = vld [vmem:[#allocation4 + $0x410] sm:$0xff]  ;;  %v389_v36 = vld [vmem:[#allocation4 + $0x418] sm:$0xff] }
 0x19d   :  { %2100 = vmatprep.subr.bf16.mxu1 %v5477_v35  ;;  %v5531_v35 = vcombine.high %v340_v29, %v344_v30  ;;  %v392_v26 = vld [vmem:[#allocation4 + $0x430] sm:$0xff] }
 0x19f   :  { %2015 = vmatpush1.bf16.msra.mxu0 %v5474_v40  ;;  %v353_v40 = vld [vmem:[#allocation4 + $0x2f8] sm:$0xff] }
 0x1a0   :  { %2101 = vmatpush1.bf16.msra.mxu1 %v5476_v41  ;;  %2016 = vmatprep.subr.bf16.mxu0 %v5483_v42  ;;  %v5530_v41 = vcombine.low %v340_v29, %v344_v30  ;;  %v5532_v42 = vcombine.low %v341_v31, %v345_v32  ;;  %v5541_v44 = vcombine.high %v349_v39, %v353_v40  ;;  %v396_v30 = vld [vmem:[#allocation4 + $0x450] sm:$0xff] }
 0x1a1   :  { %2102 = vmatprep.subr.bf16.mxu1 %v5485_v43  ;;  %v5539_v43 = vcombine.high %v348_v38, %v352_v49  ;;  %v400_v31 = vld [vmem:[#allocation4 + $0x470] sm:$0xff]  ;;  %v5578_v32 = vcombine.low %v388_v25, %v392_v26 }
 0x1a3   :  { %2017 = vmatpush1.bf16.msra.mxu0 %v5482_v52  ;;  %v361_v52 = vld [vmem:[#allocation4 + $0x338] sm:$0xff] }
 0x1a4   :  { %2103 = vmatpush1.bf16.msra.mxu1 %v5484_v53  ;;  %2018 = vmatprep.subr.bf16.mxu0 %v5491_v54  ;;  %v5538_v53 = vcombine.low %v348_v38, %v352_v49  ;;  %v5540_v54 = vcombine.low %v349_v39, %v353_v40  ;;  %v5549_v56 = vcombine.high %v357_v48, %v361_v52  ;;  %v404_v38 = vld [vmem:[#allocation4 + $0x490] sm:$0xff]  ;;  %v405_v40 = vld [vmem:[#allocation4 + $0x498] sm:$0xff] }
 0x1a5   :  { %2104 = vmatprep.subr.bf16.mxu1 %v5493_v55  ;;  %v5547_v55 = vcombine.high %v356_v45, %v360_v47  ;;  %v408_v49 = vld [vmem:[#allocation4 + $0x4b0] sm:$0xff] }
 0x1a7   :  { %2019 = vmatpush1.bf16.msra.mxu0 %v5490_v61  ;;  %v369_v61 = vld [vmem:[#allocation4 + $0x378] sm:$0xff] }
 0x1a8   :  { %2105 = vmatpush1.bf16.msra.mxu1 %v5492_v62  ;;  %2020 = vmatprep.subr.bf16.mxu0 %v5499_v63  ;;  %v5546_v62 = vcombine.low %v356_v45, %v360_v47  ;;  %v5548_v63 = vcombine.low %v357_v48, %v361_v52  ;;  %v5557_v2 = vcombine.high %v365_v60, %v369_v61  ;;  %v412_v47 = vld [vmem:[#allocation4 + $0x4d0] sm:$0xff]  ;;  %v413_v52 = vld [vmem:[#allocation4 + $0x4d8] sm:$0xff] }
 0x1a9   :  { %2106 = vmatprep.subr.bf16.mxu1 %v5501_v1  ;;  %v5555_v1 = vcombine.high %v364_v57, %v368_v58  ;;  %v416_v48 = vld [vmem:[#allocation4 + $0x4f0] sm:$0xff] }
 0x1ab   :  { %2021 = vmatpush1.bf16.msra.mxu0 %v5498_v6  ;;  %v377_v6 = vld [vmem:[#allocation4 + $0x3b8] sm:$0xff] }
 0x1ac   :  { %2107 = vmatpush1.bf16.msra.mxu1 %v5500_v7  ;;  %2022 = vmatprep.subr.bf16.mxu0 %v5507_v8  ;;  %v5554_v7 = vcombine.low %v364_v57, %v368_v58  ;;  %v5556_v8 = vcombine.low %v365_v60, %v369_v61  ;;  %v5565_v10 = vcombine.high %v373_v5, %v377_v6  ;;  %v420_v57 = vld [vmem:[#allocation4 + $0x510] sm:$0xff]  ;;  %v421_v60 = vld [vmem:[#allocation4 + $0x518] sm:$0xff] }
 0x1ad   :  { %2108 = vmatprep.subr.bf16.mxu1 %v5509_v9  ;;  %v5563_v9 = vcombine.high %v372_v3, %v376_v4  ;;  %v424_v58 = vld [vmem:[#allocation4 + $0x530] sm:$0xff]  ;;  %v425_v61 = vld [vmem:[#allocation4 + $0x538] sm:$0xff] }
 0x1af   :  { %2023 = vmatpush1.bf16.msra.mxu0 %v5506_v15  ;;  %v385_v15 = vld [vmem:[#allocation4 + $0x3f8] sm:$0xff] }
 0x1b0   :  { %2109 = vmatpush1.bf16.msra.mxu1 %v5508_v16  ;;  %2024 = vmatprep.subr.bf16.mxu0 %v5515_v19  ;;  %v5562_v16 = vcombine.low %v372_v3, %v376_v4  ;;  %v5564_v19 = vcombine.low %v373_v5, %v377_v6  ;;  %v5573_v24 = vcombine.high %v381_v13, %v385_v15  ;;  %v432_v3 = vld [vmem:[#allocation4 + $0x570] sm:$0xff]  ;;  %v429_v4 = vld [vmem:[#allocation4 + $0x558] sm:$0xff] }
 0x1b1   :  { %2110 = vmatprep.subr.bf16.mxu1 %v5517_v23  ;;  %v5571_v23 = vcombine.high %v380_v11, %v384_v12  ;;  %v433_v5 = vld [vmem:[#allocation4 + $0x578] sm:$0xff]  ;;  %v5610_v6 = vcombine.low %v420_v57, %v424_v58 }
 0x1b3   :  { %2025 = vmatpush1.bf16.msra.mxu0 %v5514_v46  ;;  %v393_v46 = vld [vmem:[#allocation4 + $0x438] sm:$0xff] }
 0x1b4   :  { %2111 = vmatpush1.bf16.msra.mxu1 %v5516_v50  ;;  %2026 = vmatprep.subr.bf16.mxu0 %v5523_v27  ;;  %v5570_v50 = vcombine.low %v380_v11, %v384_v12  ;;  %v5572_v27 = vcombine.low %v381_v13, %v385_v15  ;;  %v5581_v29 = vcombine.high %v389_v36, %v393_v46  ;;  %v440_v11 = vld [vmem:[#allocation4 + $0x5b0] sm:$0xff]  ;;  %v437_v12 = vld [vmem:[#allocation4 + $0x598] sm:$0xff] }
 0x1b5   :  { %2112 = vmatprep.subr.bf16.mxu1 %v5525_v28  ;;  %v5579_v28 = vcombine.high %v388_v25, %v392_v26  ;;  %v441_v13 = vld [vmem:[#allocation4 + $0x5b8] sm:$0xff]  ;;  %v448_v25 = vld [vmem:[#allocation4 + $0x5f0] sm:$0xff] }
 0x1b6   :  { %v445_v26 = vld [vmem:[#allocation4 + $0x5d8] sm:$0xff] }
 0x1b7   :  { %2027 = vmatpush1.bf16.msra.mxu0 %v5522_v33  ;;  %v397_v33 = vld [vmem:[#allocation4 + $0x458] sm:$0xff] }
 0x1b8   :  { %2113 = vmatpush1.bf16.msra.mxu1 %v5524_v34  ;;  %2028 = vmatprep.subr.bf16.mxu0 %v5531_v35  ;;  %v401_v34 = vld [vmem:[#allocation4 + $0x478] sm:$0xff]  ;;  %v5580_v35 = vcombine.low %v389_v36, %v393_v46 }
 0x1b9   :  { %2114 = vmatprep.subr.bf16.mxu1 %v5533_v37  ;;  %v5587_v37 = vcombine.high %v396_v30, %v400_v31  ;;  %v5589_v39 = vcombine.high %v397_v33, %v401_v34  ;;  %v449_v36 = vld [vmem:[#allocation4 + $0x5f8] sm:$0xff] }
 0x1bb   :  { %2029 = vmatpush1.bf16.msra.mxu0 %v5530_v41  ;;  %v409_v41 = vld [vmem:[#allocation4 + $0x4b8] sm:$0xff] }
 0x1bc   :  { %2115 = vmatpush1.bf16.msra.mxu1 %v5532_v42  ;;  %2030 = vmatprep.subr.bf16.mxu0 %v5539_v43  ;;  %v5586_v42 = vcombine.low %v396_v30, %v400_v31  ;;  %v5588_v43 = vcombine.low %v397_v33, %v401_v34  ;;  %v5597_v45 = vcombine.high %v405_v40, %v409_v41  ;;  %v456_v30 = vld [vmem:[#allocation4 + $0x630] sm:$0xff]  ;;  %v453_v31 = vld [vmem:[#allocation4 + $0x618] sm:$0xff] }
 0x1bd   :  { %2116 = vmatprep.subr.bf16.mxu1 %v5541_v44  ;;  %v5595_v44 = vcombine.high %v404_v38, %v408_v49  ;;  %v5636_v34 = vcombine.low %v445_v26, %v449_v36 }
 0x1bf   :  { %2031 = vmatpush1.bf16.msra.mxu0 %v5538_v53  ;;  %v417_v53 = vld [vmem:[#allocation4 + $0x4f8] sm:$0xff] }
 0x1c0   :  { %2117 = vmatpush1.bf16.msra.mxu1 %v5540_v54  ;;  %2032 = vmatprep.subr.bf16.mxu0 %v5547_v55  ;;  %v5594_v54 = vcombine.low %v404_v38, %v408_v49  ;;  %v5603_v55 = vcombine.high %v412_v47, %v416_v48  ;;  %v460_v38 = vld [vmem:[#allocation4 + $0x650] sm:$0xff] }
 0x1c1   :  { %2118 = vmatprep.subr.bf16.mxu1 %v5549_v56  ;;  %v5605_v56 = vcombine.high %v413_v52, %v417_v53  ;;  %v464_v49 = vld [vmem:[#allocation4 + $0x670] sm:$0xff] }
 0x1c3   :  { %2033 = vmatpush1.bf16.msra.mxu0 %v5546_v62  ;;  %v5604_v62 = vcombine.low %v413_v52, %v417_v53  ;;  %v473_v52 = vld [vmem:[#allocation4 + $0x6b8] sm:$0xff]  ;;  %v5650_v53 = vcombine.low %v460_v38, %v464_v49 }
 0x1c4   :  { %2119 = vmatpush1.bf16.msra.mxu1 %v5548_v63  ;;  %2034 = vmatprep.subr.bf16.mxu0 %v5555_v1  ;;  %v5611_v63 = vcombine.high %v420_v57, %v424_v58  ;;  %v5613_v1 = vcombine.high %v421_v60, %v425_v61  ;;  %v480_v57 = vld [vmem:[#allocation4 + $0x6f0] sm:$0xff]  ;;  %v477_v58 = vld [vmem:[#allocation4 + $0x6d8] sm:$0xff] }
 0x1c5   :  { %2120 = vmatprep.subr.bf16.mxu1 %v5557_v2  ;;  %v428_v2 = vld [vmem:[#allocation4 + $0x550] sm:$0xff] }
 0x1c6   :  { %v5618_v15 = vcombine.low %v428_v2, %v432_v3 }
 0x1c7   :  { %2035 = vmatpush1.bf16.msra.mxu0 %v5554_v7  ;;  %v5612_v7 = vcombine.low %v421_v60, %v425_v61  ;;  %v481_v60 = vld [vmem:[#allocation4 + $0x6f8] sm:$0xff] }
 0x1c8   :  { %2121 = vmatpush1.bf16.msra.mxu1 %v5556_v8  ;;  %2036 = vmatprep.subr.bf16.mxu0 %v5563_v9  ;;  %v5619_v8 = vcombine.high %v428_v2, %v432_v3  ;;  %v5621_v9 = vcombine.high %v429_v4, %v433_v5  ;;  %v488_v2 = vld [vmem:[#allocation4 + $0x730] sm:$0xff]  ;;  %v485_v3 = vld [vmem:[#allocation4 + $0x718] sm:$0xff] }
 0x1c9   :  { %2122 = vmatprep.subr.bf16.mxu1 %v5565_v10  ;;  %v436_v10 = vld [vmem:[#allocation4 + $0x590] sm:$0xff] }
 0x1ca   :  { %v5626_v46 = vcombine.low %v436_v10, %v440_v11 }
 0x1cb   :  { %2037 = vmatpush1.bf16.msra.mxu0 %v5562_v16  ;;  %v5620_v16 = vcombine.low %v429_v4, %v433_v5  ;;  %v489_v4 = vld [vmem:[#allocation4 + $0x738] sm:$0xff] }
 0x1cc   :  { %2123 = vmatpush1.bf16.msra.mxu1 %v5564_v19  ;;  %2038 = vmatprep.subr.bf16.mxu0 %v5571_v23  ;;  %v5627_v19 = vcombine.high %v436_v10, %v440_v11  ;;  %v5629_v23 = vcombine.high %v437_v12, %v441_v13  ;;  %v496_v10 = vld [vmem:[#allocation4 + $0x770] sm:$0xff]  ;;  %v493_v11 = vld [vmem:[#allocation4 + $0x758] sm:$0xff] }
 0x1cd   :  { %2124 = vmatprep.subr.bf16.mxu1 %v5573_v24  ;;  %v444_v24 = vld [vmem:[#allocation4 + $0x5d0] sm:$0xff] }
 0x1ce   :  { %v5634_v33 = vcombine.low %v444_v24, %v448_v25 }
 0x1cf   :  { %2039 = vmatpush1.bf16.msra.mxu0 %v5570_v50  ;;  %v5628_v50 = vcombine.low %v437_v12, %v441_v13  ;;  %v497_v12 = vld [vmem:[#allocation4 + $0x778] sm:$0xff] }
 0x1d0   :  { %2125 = vmatpush1.bf16.msra.mxu1 %v5572_v27  ;;  %2051 = vmatprep.subr.bf16.mxu0 %v5579_v28  ;;  %v5635_v27 = vcombine.high %v444_v24, %v448_v25  ;;  %v5637_v28 = vcombine.high %v445_v26, %v449_v36  ;;  %v504_v24 = vld [vmem:[#allocation4 + $0x7b0] sm:$0xff]  ;;  %v501_v25 = vld [vmem:[#allocation4 + $0x798] sm:$0xff] }
 0x1d1   :  { %2137 = vmatprep.subr.bf16.mxu1 %v5581_v29  ;;  %v452_v29 = vld [vmem:[#allocation4 + $0x610] sm:$0xff]  ;;  %v505_v26 = vld [vmem:[#allocation4 + $0x7b8] sm:$0xff] }
 0x1d2   :  { %2041 = vmatmul.mubr.bf16.vlgmr.msra.gmra.mrb[8].mxu0 %v7189_v51 }
 0x1d3   :  { %2127 = vmatmul.mubr.bf16.vlgmr.msra.gmra.mrb[8].mxu1 %v7189_v51  ;;  %2052 = vmatpush1.bf16.msra.mxu0 %v5578_v32  ;;  %v5596_v51 = vcombine.low %v405_v40, %v409_v41  ;;  %v457_v32 = vld [vmem:[#allocation4 + $0x638] sm:$0xff]  ;;  %v5642_v41 = vcombine.low %v452_v29, %v456_v30 }
 0x1d4   :  { %2083 = vmatprep.mubr.bf16.mxu0 %v7196_v59  ;;  %2138 = vmatpush1.bf16.msra.mxu1 %v5580_v35  ;;  %v5643_v35 = vcombine.high %v452_v29, %v456_v30  ;;  %v465_v40 = vld [vmem:[#allocation4 + $0x678] sm:$0xff]  ;;  %v512_v29 = vld [vmem:[#allocation4 + $0x7f0] sm:$0xff] }
 0x1d5   :  { %2169 = vmatprep.mubr.bf16.mxu1 %v7196_v59  ;;  %2053 = vmatprep.subr.bf16.mxu0 %v5587_v37  ;;  %v5602_v59 = vcombine.low %v412_v47, %v416_v48  ;;  %v5645_v37 = vcombine.high %v453_v31, %v457_v32  ;;  %v472_v47 = vld [vmem:[#allocation4 + $0x6b0] sm:$0xff]  ;;  %v469_v48 = vld [vmem:[#allocation4 + $0x698] sm:$0xff] }
 0x1d6   :  { %2139 = vmatprep.subr.bf16.mxu1 %v5589_v39  ;;  %v461_v39 = vld [vmem:[#allocation4 + $0x658] sm:$0xff] }
 0x1d7   :  { %2054 = vmatpush1.bf16.msra.mxu0 %v5586_v42  ;;  %v5644_v42 = vcombine.low %v453_v31, %v457_v32  ;;  %v509_v30 = vld [vmem:[#allocation4 + $0x7d8] sm:$0xff] }
 0x1d8   :  { %2140 = vmatpush1.bf16.msra.mxu1 %v5588_v43  ;;  %2055 = vmatprep.subr.bf16.mxu0 %v5595_v44  ;;  %v5651_v43 = vcombine.high %v460_v38, %v464_v49  ;;  %v5653_v44 = vcombine.high %v461_v39, %v465_v40  ;;  %v513_v31 = vld [vmem:[#allocation4 + $0x7f8] sm:$0xff]  ;;  %v6274_v49 = vld [vmem:[#allocation6 + $0x4] ss:$16 sps:$4 sm:$0xff]  }
 0x1d9   :  { %2141 = vmatprep.subr.bf16.mxu1 %v5597_v45  ;;  %v468_v45 = vld [vmem:[#allocation4 + $0x690] sm:$0xff]  ;;  %v5700_v38 = vcombine.low %v509_v30, %v513_v31 }
 0x1da   :  { %v5658_v61 = vcombine.low %v468_v45, %v472_v47 }
 0x1db   :  { %2056 = vmatpush1.bf16.msra.mxu0 %v5594_v54  ;;  %v5652_v54 = vcombine.low %v461_v39, %v465_v40  ;;  %v6277_v39 = vld [vmem:[#allocation6 + $0xc] ss:$16 sps:$4 sm:$0xff]   ;;  %v6272_v40 = vld [vmem:[#allocation6] ss:$16 sps:$4 sm:$0xff]  }
 0x1dc   :  { %2142 = vmatpush1.bf16.msra.mxu1 %v5596_v51  ;;  %2057 = vmatprep.subr.bf16.mxu0 %v5603_v55  ;;  %v5659_v51 = vcombine.high %v468_v45, %v472_v47  ;;  %v5661_v55 = vcombine.high %v469_v48, %v473_v52  ;;  %v6281_v45 = vld [vmem:[#allocation6 + $0x28] ss:$16 sps:$4 sm:$0xff]   ;;  %v6286_v47 = vld [vmem:[#allocation6 + $0x44] ss:$16 sps:$4 sm:$0xff]  }
 0x1dd   :  { %2143 = vmatprep.subr.bf16.mxu1 %v5605_v56  ;;  %v476_v56 = vld [vmem:[#allocation4 + $0x6d0] sm:$0xff] }
 0x1de   :  { %v5666_v5 = vcombine.low %v476_v56, %v480_v57 }
 0x1df   :  { %2058 = vmatpush1.bf16.msra.mxu0 %v5602_v59  ;;  %v5660_v59 = vcombine.low %v469_v48, %v473_v52  ;;  %v6289_v48 = vld [vmem:[#allocation6 + $0x4c] ss:$16 sps:$4 sm:$0xff]   ;;  %v6284_v52 = vld [vmem:[#allocation6 + $0x40] ss:$16 sps:$4 sm:$0xff]  }
 0x1e0   :  { %2144 = vmatpush1.bf16.msra.mxu1 %v5604_v62  ;;  %2059 = vmatprep.subr.bf16.mxu0 %v5611_v63  ;;  %v5667_v62 = vcombine.high %v476_v56, %v480_v57  ;;  %v5669_v63 = vcombine.high %v477_v58, %v481_v60  ;;  %v6298_v56 = vld [vmem:[#allocation6 + $0x84] ss:$16 sps:$4 sm:$0xff]   ;;  %v6301_v57 = vld [vmem:[#allocation6 + $0x8c] ss:$16 sps:$4 sm:$0xff]  }
 0x1e1   :  { %2145 = vmatprep.subr.bf16.mxu1 %v5613_v1  ;;  %v484_v1 = vld [vmem:[#allocation4 + $0x710] sm:$0xff] }
 0x1e2   :  { %v5674_v13 = vcombine.low %v484_v1, %v488_v2 }
 0x1e3   :  { %2060 = vmatpush1.bf16.msra.mxu0 %v5610_v6  ;;  %v5668_v6 = vcombine.low %v477_v58, %v481_v60  ;;  %v6296_v58 = vld [vmem:[#allocation6 + $0x80] ss:$16 sps:$4 sm:$0xff]   ;;  %v6299_v60 = vld [vmem:[#allocation6 + $0x88] ss:$16 sps:$4 sm:$0xff]  }
 0x1e4   :  { %2146 = vmatpush1.bf16.msra.mxu1 %v5612_v7  ;;  %2061 = vmatprep.subr.bf16.mxu0 %v5619_v8  ;;  %v5675_v7 = vcombine.high %v484_v1, %v488_v2  ;;  %v5677_v8 = vcombine.high %v485_v3, %v489_v4  ;;  %v6310_v1 = vld [vmem:[#allocation6 + $0xc4] ss:$16 sps:$4 sm:$0xff]   ;;  %v6313_v2 = vld [vmem:[#allocation6 + $0xcc] ss:$16 sps:$4 sm:$0xff]  }
 0x1e5   :  { %2147 = vmatprep.subr.bf16.mxu1 %v5621_v9  ;;  %v492_v9 = vld [vmem:[#allocation4 + $0x750] sm:$0xff] }
 0x1e6   :  { %v5682_v36 = vcombine.low %v492_v9, %v496_v10 }
 0x1e7   :  { %2062 = vmatpush1.bf16.msra.mxu0 %v5618_v15  ;;  %v5676_v15 = vcombine.low %v485_v3, %v489_v4  ;;  %v6308_v3 = vld [vmem:[#allocation6 + $0xc0] ss:$16 sps:$4 sm:$0xff]   ;;  %v6311_v4 = vld [vmem:[#allocation6 + $0xc8] ss:$16 sps:$4 sm:$0xff]  }
 0x1e8   :  { %2148 = vmatpush1.bf16.msra.mxu1 %v5620_v16  ;;  %2063 = vmatprep.subr.bf16.mxu0 %v5627_v19  ;;  %v5683_v16 = vcombine.high %v492_v9, %v496_v10  ;;  %v5685_v19 = vcombine.high %v493_v11, %v497_v12  ;;  %v6322_v9 = vld [vmem:[#allocation6 + $0x104] ss:$16 sps:$4 sm:$0xff]   ;;  %v6325_v10 = vld [vmem:[#allocation6 + $0x10c] ss:$16 sps:$4 sm:$0xff]  }
 0x1e9   :  { %2149 = vmatprep.subr.bf16.mxu1 %v5629_v23  ;;  %v500_v23 = vld [vmem:[#allocation4 + $0x790] sm:$0xff] }
 0x1ea   :  { %v5690_v32 = vcombine.low %v500_v23, %v504_v24 }
 0x1eb   :  { %2064 = vmatpush1.bf16.msra.mxu0 %v5626_v46  ;;  %v5684_v46 = vcombine.low %v493_v11, %v497_v12  ;;  %v6320_v11 = vld [vmem:[#allocation6 + $0x100] ss:$16 sps:$4 sm:$0xff]   ;;  %v6323_v12 = vld [vmem:[#allocation6 + $0x108] ss:$16 sps:$4 sm:$0xff]  }
 0x1ec   :  { %2150 = vmatpush1.bf16.msra.mxu1 %v5628_v50  ;;  %2065 = vmatprep.subr.bf16.mxu0 %v5635_v27  ;;  %v5691_v50 = vcombine.high %v500_v23, %v504_v24  ;;  %v5693_v27 = vcombine.high %v501_v25, %v505_v26  ;;  %v6334_v23 = vld [vmem:[#allocation6 + $0x144] ss:$16 sps:$4 sm:$0xff]   ;;  %v6337_v24 = vld [vmem:[#allocation6 + $0x14c] ss:$16 sps:$4 sm:$0xff]  }
 0x1ed   :  { %2151 = vmatprep.subr.bf16.mxu1 %v5637_v28  ;;  %v508_v28 = vld [vmem:[#allocation4 + $0x7d0] sm:$0xff] }
 0x1ef   :  { %2066 = vmatpush1.bf16.msra.mxu0 %v5634_v33  ;;  %v5692_v33 = vcombine.low %v501_v25, %v505_v26  ;;  %v6332_v25 = vld [vmem:[#allocation6 + $0x140] ss:$16 sps:$4 sm:$0xff]   ;;  %v6335_v26 = vld [vmem:[#allocation6 + $0x148] ss:$16 sps:$4 sm:$0xff]  }
 0x1f0   :  { %2152 = vmatpush1.bf16.msra.mxu1 %v5636_v34  ;;  %2067 = vmatprep.subr.bf16.mxu0 %v5643_v35  ;;  %v5699_v34 = vcombine.high %v508_v28, %v512_v29  ;;  %v5701_v35 = vcombine.high %v509_v30, %v513_v31  ;;  %v6344_v30 = vld [vmem:[#allocation6 + $0x180] ss:$16 sps:$4 sm:$0xff]   ;;  %v6347_v31 = vld [vmem:[#allocation6 + $0x188] ss:$16 sps:$4 sm:$0xff]  }
 0x1f1   :  { %2153 = vmatprep.subr.bf16.mxu1 %v5645_v37  ;;  %v5698_v37 = vcombine.low %v508_v28, %v512_v29  ;;  %v6346_v28 = vld [vmem:[#allocation6 + $0x184] ss:$16 sps:$4 sm:$0xff]   ;;  %v6349_v29 = vld [vmem:[#allocation6 + $0x18c] ss:$16 sps:$4 sm:$0xff]  }
 0x1f3   :  { %2068 = vmatpush1.bf16.msra.mxu0 %v5642_v41  ;;  %v6275_v41 = vld [vmem:[#allocation6 + $0x8] ss:$16 sps:$4 sm:$0xff]  }
 0x1f4   :  { %2154 = vmatpush1.bf16.msra.mxu1 %v5644_v42  ;;  %2069 = vmatprep.subr.bf16.mxu0 %v5651_v43  ;;  %v6280_v42 = vld [vmem:[#allocation6 + $0x24] ss:$16 sps:$4 sm:$0xff]   ;;  %v6283_v43 = vld [vmem:[#allocation6 + $0x2c] ss:$16 sps:$4 sm:$0xff]  }
 0x1f5   :  { %2155 = vmatprep.subr.bf16.mxu1 %v5653_v44  ;;  %v6278_v44 = vld [vmem:[#allocation6 + $0x20] ss:$16 sps:$4 sm:$0xff]  }
 0x1f7   :  { %2070 = vmatpush1.bf16.msra.mxu0 %v5650_v53  ;;  %v6287_v53 = vld [vmem:[#allocation6 + $0x48] ss:$16 sps:$4 sm:$0xff]  }
 0x1f8   :  { %2156 = vmatpush1.bf16.msra.mxu1 %v5652_v54  ;;  %2071 = vmatprep.subr.bf16.mxu0 %v5659_v51  ;;  %v6292_v54 = vld [vmem:[#allocation6 + $0x64] ss:$16 sps:$4 sm:$0xff]   ;;  %v6295_v51 = vld [vmem:[#allocation6 + $0x6c] ss:$16 sps:$4 sm:$0xff]  }
 0x1f9   :  { %2157 = vmatprep.subr.bf16.mxu1 %v5661_v55  ;;  %v6290_v55 = vld [vmem:[#allocation6 + $0x60] ss:$16 sps:$4 sm:$0xff]  }
 0x1fb   :  { %2072 = vmatpush1.bf16.msra.mxu0 %v5658_v61  ;;  %v6304_v61 = vld [vmem:[#allocation6 + $0xa4] ss:$16 sps:$4 sm:$0xff]  }
 0x1fc   :  { %2158 = vmatpush1.bf16.msra.mxu1 %v5660_v59  ;;  %2073 = vmatprep.subr.bf16.mxu0 %v5667_v62  ;;  %v6307_v59 = vld [vmem:[#allocation6 + $0xac] ss:$16 sps:$4 sm:$0xff]   ;;  %v6302_v62 = vld [vmem:[#allocation6 + $0xa0] ss:$16 sps:$4 sm:$0xff]  }
 0x1fd   :  { %2159 = vmatprep.subr.bf16.mxu1 %v5669_v63  ;;  %v6305_v63 = vld [vmem:[#allocation6 + $0xa8] ss:$16 sps:$4 sm:$0xff]  }
 0x1ff   :  { %2074 = vmatpush1.bf16.msra.mxu0 %v5666_v5  ;;  %v6316_v5 = vld [vmem:[#allocation6 + $0xe4] ss:$16 sps:$4 sm:$0xff]  }
 0x200   :  { %2160 = vmatpush1.bf16.msra.mxu1 %v5668_v6  ;;  %2075 = vmatprep.subr.bf16.mxu0 %v5675_v7  ;;  %v6319_v6 = vld [vmem:[#allocation6 + $0xec] ss:$16 sps:$4 sm:$0xff]   ;;  %v6314_v7 = vld [vmem:[#allocation6 + $0xe0] ss:$16 sps:$4 sm:$0xff]  }
 0x201   :  { %2161 = vmatprep.subr.bf16.mxu1 %v5677_v8  ;;  %v6317_v8 = vld [vmem:[#allocation6 + $0xe8] ss:$16 sps:$4 sm:$0xff]  }
 0x203   :  { %2076 = vmatpush1.bf16.msra.mxu0 %v5674_v13  ;;  %v6328_v13 = vld [vmem:[#allocation6 + $0x124] ss:$16 sps:$4 sm:$0xff]  }
 0x204   :  { %2162 = vmatpush1.bf16.msra.mxu1 %v5676_v15  ;;  %2077 = vmatprep.subr.bf16.mxu0 %v5683_v16  ;;  %v6331_v15 = vld [vmem:[#allocation6 + $0x12c] ss:$16 sps:$4 sm:$0xff]   ;;  %v6326_v16 = vld [vmem:[#allocation6 + $0x120] ss:$16 sps:$4 sm:$0xff]  }
 0x205   :  { %2163 = vmatprep.subr.bf16.mxu1 %v5685_v19  ;;  %v6329_v19 = vld [vmem:[#allocation6 + $0x128] ss:$16 sps:$4 sm:$0xff]  }
 0x207   :  { %2078 = vmatpush1.bf16.msra.mxu0 %v5682_v36  ;;  %v6340_v36 = vld [vmem:[#allocation6 + $0x164] ss:$16 sps:$4 sm:$0xff]  }
 0x208   :  { %2164 = vmatpush1.bf16.msra.mxu1 %v5684_v46  ;;  %2079 = vmatprep.subr.bf16.mxu0 %v5691_v50  ;;  %v6343_v46 = vld [vmem:[#allocation6 + $0x16c] ss:$16 sps:$4 sm:$0xff]   ;;  %v6338_v50 = vld [vmem:[#allocation6 + $0x160] ss:$16 sps:$4 sm:$0xff]  }
 0x209   :  { %2165 = vmatprep.subr.bf16.mxu1 %v5693_v27  ;;  %v6341_v27 = vld [vmem:[#allocation6 + $0x168] ss:$16 sps:$4 sm:$0xff]  }
 0x20b   :  { %2080 = vmatpush1.bf16.msra.mxu0 %v5690_v32  ;;  %v6352_v32 = vld [vmem:[#allocation6 + $0x1a4] ss:$16 sps:$4 sm:$0xff]  }
 0x20c   :  { %2166 = vmatpush1.bf16.msra.mxu1 %v5692_v33  ;;  %2081 = vmatprep.subr.bf16.mxu0 %v5699_v34  ;;  %v6355_v33 = vld [vmem:[#allocation6 + $0x1ac] ss:$16 sps:$4 sm:$0xff]   ;;  %v6350_v34 = vld [vmem:[#allocation6 + $0x1a0] ss:$16 sps:$4 sm:$0xff]  }
 0x20d   :  { %2167 = vmatprep.subr.bf16.mxu1 %v5701_v35  ;;  %v6353_v35 = vld [vmem:[#allocation6 + $0x1a8] ss:$16 sps:$4 sm:$0xff]  }
 0x20f   :  { %2082 = vmatpush1.bf16.msra.mxu0 %v5698_v37  ;;  %v6358_v37 = vld [vmem:[#allocation6 + $0x1c4] ss:$16 sps:$4 sm:$0xff]  }
 0x210   :  { %2168 = vmatpush1.bf16.msra.mxu1 %v5700_v38  ;;  %3754 = vmatprep.subr.bf16.mxu0 %v6274_v49  ;;  %v6361_v38 = vld [vmem:[#allocation6 + $0x1cc] ss:$16 sps:$4 sm:$0xff]   ;;  %v6356_v49 = vld [vmem:[#allocation6 + $0x1c0] ss:$16 sps:$4 sm:$0xff]  }
 0x211   :  { %3926 = vmatprep.subr.bf16.mxu1 %v6277_v39  ;;  %v6359_v39 = vld [vmem:[#allocation6 + $0x1c8] ss:$16 sps:$4 sm:$0xff]  }
 0x212   :  { %2084 = vmatmul.mubr.bf16.vlgmr.msra.gmra.mrb[8].mxu0 %v7204_v14 }
 0x213   :  { %2170 = vmatmul.mubr.bf16.vlgmr.msra.gmra.mrb[8].mxu1 %v7204_v14  ;;  %3755 = vmatpush1.bf16.msra.mxu0 %v6272_v40  ;;  %v6293_v14 = vld [vmem:[#allocation6 + $0x68] ss:$16 sps:$4 sm:$0xff]   ;;  %v6364_v40 = vld [vmem:[#allocation6 + $0x1e4] ss:$16 sps:$4 sm:$0xff]  }
 0x214   :  { %3927 = vmatpush1.bf16.msra.mxu1 %v6275_v41  ;;  %3756 = vmatprep.subr.bf16.mxu0 %v6280_v42  ;;  %v6367_v41 = vld [vmem:[#allocation6 + $0x1ec] ss:$16 sps:$4 sm:$0xff]   ;;  %v6362_v42 = vld [vmem:[#allocation6 + $0x1e0] ss:$16 sps:$4 sm:$0xff]  }
 0x215   :  { %3928 = vmatprep.subr.bf16.mxu1 %v6283_v43  ;;  %v6365_v43 = vld [vmem:[#allocation6 + $0x1e8] ss:$16 sps:$4 sm:$0xff]  }
 0x217   :  { %3757 = vmatpush1.bf16.msra.mxu0 %v6278_v44  ;;  %v6370_v44 = vld [vmem:[#allocation6 + $0x204] ss:$16 sps:$4 sm:$0xff]  }
 0x218   :  { %3929 = vmatpush1.bf16.msra.mxu1 %v6281_v45  ;;  %3758 = vmatprep.subr.bf16.mxu0 %v6286_v47  ;;  %v6373_v45 = vld [vmem:[#allocation6 + $0x20c] ss:$16 sps:$4 sm:$0xff]   ;;  %v7216_v47 = vld [vmem:[#allocation10 + $0x4] sm:$0xff] }
 0x219   :  { %3930 = vmatprep.subr.bf16.mxu1 %v6289_v48  ;;  %v519_v48 = vrot.slane %v7216_v47, %v7164_v18 }
 0x21b   :  { %3759 = vmatpush1.bf16.msra.mxu0 %v6284_v52  ;;  %v527_v52 = vrot.slane %v7216_v47, %v7170_v21 }
 0x21c   :  { %3931 = vmatpush1.bf16.msra.mxu1 %v6287_v53  ;;  %3760 = vmatprep.subr.bf16.mxu0 %v6292_v54 }
 0x21d   :  { %3932 = vmatprep.subr.bf16.mxu1 %v6295_v51  ;;  %v523_v51 = vrot.slane %v7216_v47, %v7167_v20 }
 0x21f   :  { %3761 = vmatpush1.bf16.msra.mxu0 %v6290_v55  ;;  %v531_v55 = vrot.slane %v7216_v47, %v7173_v22 }
 0x220   :  { %3933 = vmatpush1.bf16.msra.mxu1 %v6293_v14  ;;  %3762 = vmatprep.subr.bf16.mxu0 %v6298_v56 }
 0x221   :  { %3934 = vmatprep.subr.bf16.mxu1 %v6301_v57 }
 0x223   :  { %3763 = vmatpush1.bf16.msra.mxu0 %v6296_v58 }
 0x224   :  { %3935 = vmatpush1.bf16.msra.mxu1 %v6299_v60  ;;  %3764 = vmatprep.subr.bf16.mxu0 %v6304_v61 }
 0x225   :  { %3936 = vmatprep.subr.bf16.mxu1 %v6307_v59 }
 0x227   :  { %3765 = vmatpush1.bf16.msra.mxu0 %v6302_v62 }
 0x228   :  { %3937 = vmatpush1.bf16.msra.mxu1 %v6305_v63  ;;  %3766 = vmatprep.subr.bf16.mxu0 %v6310_v1 }
 0x229   :  { %3938 = vmatprep.subr.bf16.mxu1 %v6313_v2 }
 0x22b   :  { %3767 = vmatpush1.bf16.msra.mxu0 %v6308_v3 }
 0x22c   :  { %3939 = vmatpush1.bf16.msra.mxu1 %v6311_v4  ;;  %3768 = vmatprep.subr.bf16.mxu0 %v6316_v5 }
 0x22d   :  { %3940 = vmatprep.subr.bf16.mxu1 %v6319_v6 }
 0x22f   :  { %3769 = vmatpush1.bf16.msra.mxu0 %v6314_v7 }
 0x230   :  { %3941 = vmatpush1.bf16.msra.mxu1 %v6317_v8  ;;  %3770 = vmatprep.subr.bf16.mxu0 %v6322_v9 }
 0x231   :  { %3942 = vmatprep.subr.bf16.mxu1 %v6325_v10 }
 0x233   :  { %3771 = vmatpush1.bf16.msra.mxu0 %v6320_v11  ;;  %v6368_v11 = vld [vmem:[#allocation6 + $0x200] ss:$16 sps:$4 sm:$0xff]  }
 0x234   :  { %3943 = vmatpush1.bf16.msra.mxu1 %v6323_v12  ;;  %3772 = vmatprep.subr.bf16.mxu0 %v6328_v13  ;;  %v6371_v12 = vld [vmem:[#allocation6 + $0x208] ss:$16 sps:$4 sm:$0xff]  }
 0x235   :  { %3944 = vmatprep.subr.bf16.mxu1 %v6331_v15  ;;  %v6376_v15 = vld [vmem:[#allocation6 + $0x224] ss:$16 sps:$4 sm:$0xff]  }
 0x237   :  { %3773 = vmatpush1.bf16.msra.mxu0 %v6326_v16  ;;  %v6379_v16 = vld [vmem:[#allocation6 + $0x22c] ss:$16 sps:$4 sm:$0xff]  }
 0x238   :  { %3945 = vmatpush1.bf16.msra.mxu1 %v6329_v19  ;;  %3774 = vmatprep.subr.bf16.mxu0 %v6334_v23  ;;  %v6374_v23 = vld [vmem:[#allocation6 + $0x220] ss:$16 sps:$4 sm:$0xff]  }
 0x239   :  { %3946 = vmatprep.subr.bf16.mxu1 %v6337_v24  ;;  %v6377_v24 = vld [vmem:[#allocation6 + $0x228] ss:$16 sps:$4 sm:$0xff]  }
 0x23b   :  { %3775 = vmatpush1.bf16.msra.mxu0 %v6332_v25  ;;  %v6382_v25 = vld [vmem:[#allocation6 + $0x244] ss:$16 sps:$4 sm:$0xff]  }
 0x23c   :  { %3947 = vmatpush1.bf16.msra.mxu1 %v6335_v26  ;;  %3776 = vmatprep.subr.bf16.mxu0 %v6340_v36  ;;  %v6385_v26 = vld [vmem:[#allocation6 + $0x24c] ss:$16 sps:$4 sm:$0xff]   ;;  %v6380_v36 = vld [vmem:[#allocation6 + $0x240] ss:$16 sps:$4 sm:$0xff]  }
 0x23d   :  { %3948 = vmatprep.subr.bf16.mxu1 %v6343_v46  ;;  %v6383_v46 = vld [vmem:[#allocation6 + $0x248] ss:$16 sps:$4 sm:$0xff]  }
 0x23f   :  { %3777 = vmatpush1.bf16.msra.mxu0 %v6338_v50  ;;  %v6388_v50 = vld [vmem:[#allocation6 + $0x264] ss:$16 sps:$4 sm:$0xff]  }
 0x240   :  { %3949 = vmatpush1.bf16.msra.mxu1 %v6341_v27  ;;  %3778 = vmatprep.subr.bf16.mxu0 %v6346_v28  ;;  %v6391_v27 = vld [vmem:[#allocation6 + $0x26c] ss:$16 sps:$4 sm:$0xff]   ;;  %v6386_v28 = vld [vmem:[#allocation6 + $0x260] ss:$16 sps:$4 sm:$0xff]  }
 0x241   :  { %3950 = vmatprep.subr.bf16.mxu1 %v6349_v29  ;;  %v6389_v29 = vld [vmem:[#allocation6 + $0x268] ss:$16 sps:$4 sm:$0xff]  }
 0x243   :  { %3779 = vmatpush1.bf16.msra.mxu0 %v6344_v30  ;;  %v6394_v30 = vld [vmem:[#allocation6 + $0x284] ss:$16 sps:$4 sm:$0xff]  }
 0x244   :  { %3951 = vmatpush1.bf16.msra.mxu1 %v6347_v31  ;;  %3780 = vmatprep.subr.bf16.mxu0 %v6352_v32  ;;  %v6397_v31 = vld [vmem:[#allocation6 + $0x28c] ss:$16 sps:$4 sm:$0xff]   ;;  %v6392_v32 = vld [vmem:[#allocation6 + $0x280] ss:$16 sps:$4 sm:$0xff]  }
 0x245   :  { %3952 = vmatprep.subr.bf16.mxu1 %v6355_v33  ;;  %v6395_v33 = vld [vmem:[#allocation6 + $0x288] ss:$16 sps:$4 sm:$0xff]  }
 0x247   :  { %3781 = vmatpush1.bf16.msra.mxu0 %v6350_v34  ;;  %v6400_v34 = vld [vmem:[#allocation6 + $0x2a4] ss:$16 sps:$4 sm:$0xff]  }
 0x248   :  { %3953 = vmatpush1.bf16.msra.mxu1 %v6353_v35  ;;  %3782 = vmatprep.subr.bf16.mxu0 %v6358_v37  ;;  %v6403_v35 = vld [vmem:[#allocation6 + $0x2ac] ss:$16 sps:$4 sm:$0xff]   ;;  %v6398_v37 = vld [vmem:[#allocation6 + $0x2a0] ss:$16 sps:$4 sm:$0xff]  }
 0x249   :  { %3954 = vmatprep.subr.bf16.mxu1 %v6361_v38  ;;  %v6401_v38 = vld [vmem:[#allocation6 + $0x2a8] ss:$16 sps:$4 sm:$0xff]  }
 0x24b   :  { %3783 = vmatpush1.bf16.msra.mxu0 %v6356_v49  ;;  %v6406_v49 = vld [vmem:[#allocation6 + $0x2c4] ss:$16 sps:$4 sm:$0xff]  }
 0x24c   :  { %3955 = vmatpush1.bf16.msra.mxu1 %v6359_v39  ;;  %3784 = vmatprep.subr.bf16.mxu0 %v6364_v40  ;;  %v6409_v39 = vld [vmem:[#allocation6 + $0x2cc] ss:$16 sps:$4 sm:$0xff]   ;;  %v6404_v40 = vld [vmem:[#allocation6 + $0x2c0] ss:$16 sps:$4 sm:$0xff]  }
 0x24d   :  { %3956 = vmatprep.subr.bf16.mxu1 %v6367_v41  ;;  %v6407_v41 = vld [vmem:[#allocation6 + $0x2c8] ss:$16 sps:$4 sm:$0xff]  }
 0x24f   :  { %3785 = vmatpush1.bf16.msra.mxu0 %v6362_v42  ;;  %v6412_v42 = vld [vmem:[#allocation6 + $0x2e4] ss:$16 sps:$4 sm:$0xff]  }
 0x250   :  { %3957 = vmatpush1.bf16.msra.mxu1 %v6365_v43  ;;  %3797 = vmatprep.subr.bf16.mxu0 %v6370_v44  ;;  %v6415_v43 = vld [vmem:[#allocation6 + $0x2ec] ss:$16 sps:$4 sm:$0xff]   ;;  %v6410_v44 = vld [vmem:[#allocation6 + $0x2e0] ss:$16 sps:$4 sm:$0xff]  }
 0x251   :  { %3969 = vmatprep.subr.bf16.mxu1 %v6373_v45  ;;  %v6413_v45 = vld [vmem:[#allocation6 + $0x2e8] ss:$16 sps:$4 sm:$0xff]  }
 0x265   :  { %v1913_v53 = vpop.f32.mrb[4].mxu0  ;;  %v1999_v54 = vpop.f32.mrb[4].mxu1 }
 0x266   :  { %v1915_v14 = vpop.f32.mrb[5].mxu0  ;;  %v2001_v56 = vpop.f32.mrb[5].mxu1  ;;  %v6172_v60 = vadd.f32 %v1913_v53, %v519_v48  ;;  %v7226_v61 = vadd.f32 %v1999_v54, %v527_v52  ;;  %v6416_v53 = vld [vmem:[#allocation6 + $0x300] ss:$16 sps:$4 sm:$0xff]   ;;  %v6419_v54 = vld [vmem:[#allocation6 + $0x308] ss:$16 sps:$4 sm:$0xff]  }
 0x267   :  { %v1917_v57 = vpop.f32.mrb[6].mxu0  ;;  %v2003_v58 = vpop.f32.mrb[6].mxu1  ;;  %v6173_v2 = vadd.f32 %v1915_v14, %v523_v51  ;;  %v6177_v3 = vadd.f32 %v2001_v56, %v531_v55  ;;  %v6422_v14 = vld [vmem:[#allocation6 + $0x320] ss:$16 sps:$4 sm:$0xff]   ;;  %v6425_v56 = vld [vmem:[#allocation6 + $0x328] ss:$16 sps:$4 sm:$0xff]  }
 0x268   :  { %v6174_v59 = vadd.f32 %v1917_v57, %v519_v48  ;;  %v7228_v62 = vadd.f32 %v2003_v58, %v527_v52  ;;  %v1919_v63 = vpop.f32.mrb[7].mxu0  ;;  %v2005_v1 = vpop.f32.mrb[7].mxu1  ;;  %v6418_v48 = vld [vmem:[#allocation6 + $0x304] ss:$16 sps:$4 sm:$0xff]   ;;  %v6421_v52 = vld [vmem:[#allocation6 + $0x30c] ss:$16 sps:$4 sm:$0xff]  }
 0x269   :  { %v6175_v4 = vadd.f32 %v1919_v63, %v523_v51  ;;  %v6179_v5 = vadd.f32 %v2005_v1, %v531_v55  ;;  %v6424_v51 = vld [vmem:[#allocation6 + $0x324] ss:$16 sps:$4 sm:$0xff]   ;;  %v6427_v55 = vld [vmem:[#allocation6 + $0x32c] ss:$16 sps:$4 sm:$0xff]  }
 0x26a   :  { %v2180_v6 = vpack.c.bf16 %v6174_v59, %v6172_v60  ;;  %v2182_v7 = vpack.c.bf16 %v7228_v62, %v7226_v61  ;;  %v6430_v57 = vld [vmem:[#allocation6 + $0x344] ss:$16 sps:$4 sm:$0xff]   ;;  %v6433_v58 = vld [vmem:[#allocation6 + $0x34c] ss:$16 sps:$4 sm:$0xff]   ;;  %v6428_v60 = vld [vmem:[#allocation6 + $0x340] ss:$16 sps:$4 sm:$0xff]  }
 0x26b   :  { %v2181_v8 = vpack.c.bf16 %v6175_v4, %v6173_v2  ;;  %v2183_v9 = vpack.c.bf16 %v6179_v5, %v6177_v3  ;;  %v6431_v59 = vld [vmem:[#allocation6 + $0x348] ss:$16 sps:$4 sm:$0xff]   ;;  %v6436_v63 = vld [vmem:[#allocation6 + $0x364] ss:$16 sps:$4 sm:$0xff]   ;;  %v6439_v1 = vld [vmem:[#allocation6 + $0x36c] ss:$16 sps:$4 sm:$0xff]  }
 0x26c   :  { %v2188_v13 = vmax.bf16 %v7032_v0, %v2180_v6  ;;  %v6434_v2 = vld [vmem:[#allocation6 + $0x360] ss:$16 sps:$4 sm:$0xff]   ;;  %v6437_v3 = vld [vmem:[#allocation6 + $0x368] ss:$16 sps:$4 sm:$0xff]   ;;  %v6442_v4 = vld [vmem:[#allocation6 + $0x384] ss:$16 sps:$4 sm:$0xff]  }
 0x26d   :  { %v2189_v10 = vmax.bf16 %v7032_v0, %v2181_v8  ;;  %v2191_v19 = vmax.bf16 %v7032_v0, %v2183_v9  ;;  %v6445_v5 = vld [vmem:[#allocation6 + $0x38c] ss:$16 sps:$4 sm:$0xff]   ;;  %v6440_v6 = vld [vmem:[#allocation6 + $0x380] ss:$16 sps:$4 sm:$0xff]   ;;  %v6443_v8 = vld [vmem:[#allocation6 + $0x388] ss:$16 sps:$4 sm:$0xff]  }
 0x26e   :  { %v6448_v9 = vld [vmem:[#allocation6 + $0x3a4] ss:$16 sps:$4 sm:$0xff]   ;;  %v6479_v61 = vld [vmem:[#allocation6 + $0x448] ss:$16 sps:$4 sm:$0xff]  }
 0x26f   :  { %3786 = vmatprep.mubr.bf16.mxu0 %v2189_v10  ;;  %3958 = vmatprep.mubr.bf16.mxu1 %v2189_v10  ;;  %v6451_v10 = vld [vmem:[#allocation6 + $0x3ac] ss:$16 sps:$4 sm:$0xff]   ;;  %v6484_v62 = vld [vmem:[#allocation6 + $0x464] ss:$16 sps:$4 sm:$0xff]  }
 0x270   :  { %3787 = vmatmul.mubr.bf16.vlgmr.msra.gmra.mrb[12].mxu0 %v2188_v13  ;;  %3959 = vmatmul.mubr.bf16.vlgmr.msra.gmra.mrb[12].mxu1 %v2188_v13  ;;  %v6454_v13 = vld [vmem:[#allocation6 + $0x3c4] ss:$16 sps:$4 sm:$0xff]  }
 0x271   :  { %3798 = vmatpush1.bf16.msra.mxu0 %v6368_v11  ;;  %3970 = vmatpush1.bf16.msra.mxu1 %v6371_v12  ;;  %v6446_v11 = vld [vmem:[#allocation6 + $0x3a0] ss:$16 sps:$4 sm:$0xff]   ;;  %v6449_v12 = vld [vmem:[#allocation6 + $0x3a8] ss:$16 sps:$4 sm:$0xff]  }
 0x272   :  { %3829 = vmatprep.mubr.bf16.mxu0 %v2191_v19  ;;  %4001 = vmatprep.mubr.bf16.mxu1 %v2191_v19  ;;  %v6455_v19 = vld [vmem:[#allocation6 + $0x3c8] ss:$16 sps:$4 sm:$0xff]  }
 0x273   :  { %3799 = vmatprep.subr.bf16.mxu0 %v6376_v15  ;;  %3971 = vmatprep.subr.bf16.mxu1 %v6379_v16  ;;  %v6457_v15 = vld [vmem:[#allocation6 + $0x3cc] ss:$16 sps:$4 sm:$0xff]   ;;  %v6452_v16 = vld [vmem:[#allocation6 + $0x3c0] ss:$16 sps:$4 sm:$0xff]  }
 0x275   :  { %3800 = vmatpush1.bf16.msra.mxu0 %v6374_v23  ;;  %3972 = vmatpush1.bf16.msra.mxu1 %v6377_v24  ;;  %v6460_v23 = vld [vmem:[#allocation6 + $0x3e4] ss:$16 sps:$4 sm:$0xff]   ;;  %v6463_v24 = vld [vmem:[#allocation6 + $0x3ec] ss:$16 sps:$4 sm:$0xff]  }
 0x276   :  { %3801 = vmatprep.subr.bf16.mxu0 %v6382_v25  ;;  %3973 = vmatprep.subr.bf16.mxu1 %v6385_v26  ;;  %v6458_v25 = vld [vmem:[#allocation6 + $0x3e0] ss:$16 sps:$4 sm:$0xff]   ;;  %v6461_v26 = vld [vmem:[#allocation6 + $0x3e8] ss:$16 sps:$4 sm:$0xff]  }
 0x279   :  { %3802 = vmatpush1.bf16.msra.mxu0 %v6380_v36  ;;  %3974 = vmatpush1.bf16.msra.mxu1 %v6383_v46  ;;  %v6466_v36 = vld [vmem:[#allocation6 + $0x404] ss:$16 sps:$4 sm:$0xff]   ;;  %v6469_v46 = vld [vmem:[#allocation6 + $0x40c] ss:$16 sps:$4 sm:$0xff]  }
 0x27a   :  { %3803 = vmatprep.subr.bf16.mxu0 %v6388_v50  ;;  %3975 = vmatprep.subr.bf16.mxu1 %v6391_v27  ;;  %v6464_v50 = vld [vmem:[#allocation6 + $0x400] ss:$16 sps:$4 sm:$0xff]   ;;  %v6467_v27 = vld [vmem:[#allocation6 + $0x408] ss:$16 sps:$4 sm:$0xff]  }
 0x27d   :  { %3804 = vmatpush1.bf16.msra.mxu0 %v6386_v28  ;;  %3976 = vmatpush1.bf16.msra.mxu1 %v6389_v29  ;;  %v2190_v28 = vmax.bf16 %v7032_v0, %v2182_v7  ;;  %v6472_v29 = vld [vmem:[#allocation6 + $0x424] ss:$16 sps:$4 sm:$0xff]   ;;  %v6487_v7 = vld [vmem:[#allocation6 + $0x46c] ss:$16 sps:$4 sm:$0xff]  }
 0x27e   :  { %3805 = vmatprep.subr.bf16.mxu0 %v6394_v30  ;;  %3977 = vmatprep.subr.bf16.mxu1 %v6397_v31  ;;  %v6475_v30 = vld [vmem:[#allocation6 + $0x42c] ss:$16 sps:$4 sm:$0xff]   ;;  %v6470_v31 = vld [vmem:[#allocation6 + $0x420] ss:$16 sps:$4 sm:$0xff]  }
 0x281   :  { %3806 = vmatpush1.bf16.msra.mxu0 %v6392_v32  ;;  %3978 = vmatpush1.bf16.msra.mxu1 %v6395_v33  ;;  %v6473_v32 = vld [vmem:[#allocation6 + $0x428] ss:$16 sps:$4 sm:$0xff]   ;;  %v6478_v33 = vld [vmem:[#allocation6 + $0x444] ss:$16 sps:$4 sm:$0xff]  }
 0x282   :  { %3807 = vmatprep.subr.bf16.mxu0 %v6400_v34  ;;  %3979 = vmatprep.subr.bf16.mxu1 %v6403_v35  ;;  %v6481_v34 = vld [vmem:[#allocation6 + $0x44c] ss:$16 sps:$4 sm:$0xff]   ;;  %v6476_v35 = vld [vmem:[#allocation6 + $0x440] ss:$16 sps:$4 sm:$0xff]  }
 0x285   :  { %3808 = vmatpush1.bf16.msra.mxu0 %v6398_v37  ;;  %3980 = vmatpush1.bf16.msra.mxu1 %v6401_v38  ;;  %v6482_v37 = vld [vmem:[#allocation6 + $0x460] ss:$16 sps:$4 sm:$0xff]   ;;  %v6485_v38 = vld [vmem:[#allocation6 + $0x468] ss:$16 sps:$4 sm:$0xff]  }
 0x286   :  { %3809 = vmatprep.subr.bf16.mxu0 %v6406_v49  ;;  %3981 = vmatprep.subr.bf16.mxu1 %v6409_v39  ;;  %v6490_v49 = vld [vmem:[#allocation6 + $0x484] ss:$16 sps:$4 sm:$0xff]   ;;  %v6493_v39 = vld [vmem:[#allocation6 + $0x48c] ss:$16 sps:$4 sm:$0xff]  }
 0x289   :  { %3810 = vmatpush1.bf16.msra.mxu0 %v6404_v40  ;;  %3982 = vmatpush1.bf16.msra.mxu1 %v6407_v41  ;;  %v6488_v40 = vld [vmem:[#allocation6 + $0x480] ss:$16 sps:$4 sm:$0xff]   ;;  %v6491_v41 = vld [vmem:[#allocation6 + $0x488] ss:$16 sps:$4 sm:$0xff]  }
 0x28a   :  { %3811 = vmatprep.subr.bf16.mxu0 %v6412_v42  ;;  %3983 = vmatprep.subr.bf16.mxu1 %v6415_v43  ;;  %v6496_v42 = vld [vmem:[#allocation6 + $0x4a4] ss:$16 sps:$4 sm:$0xff]   ;;  %v6499_v43 = vld [vmem:[#allocation6 + $0x4ac] ss:$16 sps:$4 sm:$0xff]  }
 0x28d   :  { %3812 = vmatpush1.bf16.msra.mxu0 %v6410_v44  ;;  %3984 = vmatpush1.bf16.msra.mxu1 %v6413_v45  ;;  %v6494_v44 = vld [vmem:[#allocation6 + $0x4a0] ss:$16 sps:$4 sm:$0xff]   ;;  %v6497_v45 = vld [vmem:[#allocation6 + $0x4a8] ss:$16 sps:$4 sm:$0xff]  }
 0x28e   :  { %3813 = vmatprep.subr.bf16.mxu0 %v6418_v48  ;;  %3985 = vmatprep.subr.bf16.mxu1 %v6421_v52  ;;  %v6502_v48 = vld [vmem:[#allocation6 + $0x4c4] ss:$16 sps:$4 sm:$0xff]   ;;  %v6505_v52 = vld [vmem:[#allocation6 + $0x4cc] ss:$16 sps:$4 sm:$0xff]  }
 0x291   :  { %3814 = vmatpush1.bf16.msra.mxu0 %v6416_v53  ;;  %3986 = vmatpush1.bf16.msra.mxu1 %v6419_v54  ;;  %v6500_v53 = vld [vmem:[#allocation6 + $0x4c0] ss:$16 sps:$4 sm:$0xff]   ;;  %v6503_v54 = vld [vmem:[#allocation6 + $0x4c8] ss:$16 sps:$4 sm:$0xff]  }
 0x292   :  { %3815 = vmatprep.subr.bf16.mxu0 %v6424_v51  ;;  %3987 = vmatprep.subr.bf16.mxu1 %v6427_v55  ;;  %v6508_v51 = vld [vmem:[#allocation6 + $0x4e4] ss:$16 sps:$4 sm:$0xff]   ;;  %v6511_v55 = vld [vmem:[#allocation6 + $0x4ec] ss:$16 sps:$4 sm:$0xff]  }
 0x295   :  { %3816 = vmatpush1.bf16.msra.mxu0 %v6422_v14  ;;  %3988 = vmatpush1.bf16.msra.mxu1 %v6425_v56  ;;  %v6506_v14 = vld [vmem:[#allocation6 + $0x4e0] ss:$16 sps:$4 sm:$0xff]   ;;  %v6509_v56 = vld [vmem:[#allocation6 + $0x4e8] ss:$16 sps:$4 sm:$0xff]  }
 0x296   :  { %3817 = vmatprep.subr.bf16.mxu0 %v6430_v57  ;;  %3989 = vmatprep.subr.bf16.mxu1 %v6433_v58  ;;  %v6514_v57 = vld [vmem:[#allocation6 + $0x504] ss:$16 sps:$4 sm:$0xff]   ;;  %v6517_v58 = vld [vmem:[#allocation6 + $0x50c] ss:$16 sps:$4 sm:$0xff]  }
 0x299   :  { %3818 = vmatpush1.bf16.msra.mxu0 %v6428_v60  ;;  %3990 = vmatpush1.bf16.msra.mxu1 %v6431_v59  ;;  %v6512_v60 = vld [vmem:[#allocation6 + $0x500] ss:$16 sps:$4 sm:$0xff]   ;;  %v6515_v59 = vld [vmem:[#allocation6 + $0x508] ss:$16 sps:$4 sm:$0xff]  }
 0x29a   :  { %3819 = vmatprep.subr.bf16.mxu0 %v6436_v63  ;;  %3991 = vmatprep.subr.bf16.mxu1 %v6439_v1  ;;  %v6520_v63 = vld [vmem:[#allocation6 + $0x524] ss:$16 sps:$4 sm:$0xff]   ;;  %v6523_v1 = vld [vmem:[#allocation6 + $0x52c] ss:$16 sps:$4 sm:$0xff]  }
 0x29d   :  { %3820 = vmatpush1.bf16.msra.mxu0 %v6434_v2  ;;  %3992 = vmatpush1.bf16.msra.mxu1 %v6437_v3  ;;  %v6518_v2 = vld [vmem:[#allocation6 + $0x520] ss:$16 sps:$4 sm:$0xff]   ;;  %v6521_v3 = vld [vmem:[#allocation6 + $0x528] ss:$16 sps:$4 sm:$0xff]  }
 0x29e   :  { %3821 = vmatprep.subr.bf16.mxu0 %v6442_v4  ;;  %3993 = vmatprep.subr.bf16.mxu1 %v6445_v5  ;;  %v6526_v4 = vld [vmem:[#allocation6 + $0x544] ss:$16 sps:$4 sm:$0xff]   ;;  %v6529_v5 = vld [vmem:[#allocation6 + $0x54c] ss:$16 sps:$4 sm:$0xff]  }
 0x2a1   :  { %3822 = vmatpush1.bf16.msra.mxu0 %v6440_v6  ;;  %3994 = vmatpush1.bf16.msra.mxu1 %v6443_v8  ;;  %v6524_v6 = vld [vmem:[#allocation6 + $0x540] ss:$16 sps:$4 sm:$0xff]   ;;  %v6527_v8 = vld [vmem:[#allocation6 + $0x548] ss:$16 sps:$4 sm:$0xff]  }
 0x2a2   :  { %3823 = vmatprep.subr.bf16.mxu0 %v6448_v9  ;;  %3995 = vmatprep.subr.bf16.mxu1 %v6451_v10  ;;  %v6532_v9 = vld [vmem:[#allocation6 + $0x564] ss:$16 sps:$4 sm:$0xff]   ;;  %v6535_v10 = vld [vmem:[#allocation6 + $0x56c] ss:$16 sps:$4 sm:$0xff]  }
 0x2a5   :  { %3824 = vmatpush1.bf16.msra.mxu0 %v6446_v11  ;;  %3996 = vmatpush1.bf16.msra.mxu1 %v6449_v12  ;;  %v6530_v11 = vld [vmem:[#allocation6 + $0x560] ss:$16 sps:$4 sm:$0xff]   ;;  %v6533_v12 = vld [vmem:[#allocation6 + $0x568] ss:$16 sps:$4 sm:$0xff]  }
 0x2a6   :  { %3825 = vmatprep.subr.bf16.mxu0 %v6454_v13  ;;  %3997 = vmatprep.subr.bf16.mxu1 %v6457_v15  ;;  %v6538_v13 = vld [vmem:[#allocation6 + $0x584] ss:$16 sps:$4 sm:$0xff]   ;;  %v6541_v15 = vld [vmem:[#allocation6 + $0x58c] ss:$16 sps:$4 sm:$0xff]  }
 0x2a9   :  { %3826 = vmatpush1.bf16.msra.mxu0 %v6452_v16  ;;  %3998 = vmatpush1.bf16.msra.mxu1 %v6455_v19  ;;  %v6536_v16 = vld [vmem:[#allocation6 + $0x580] ss:$16 sps:$4 sm:$0xff]   ;;  %v6539_v19 = vld [vmem:[#allocation6 + $0x588] ss:$16 sps:$4 sm:$0xff]  }
 0x2aa   :  { %3827 = vmatprep.subr.bf16.mxu0 %v6460_v23  ;;  %3999 = vmatprep.subr.bf16.mxu1 %v6463_v24  ;;  %v6544_v23 = vld [vmem:[#allocation6 + $0x5a4] ss:$16 sps:$4 sm:$0xff]   ;;  %v6547_v24 = vld [vmem:[#allocation6 + $0x5ac] ss:$16 sps:$4 sm:$0xff]  }
 0x2ad   :  { %3828 = vmatpush1.bf16.msra.mxu0 %v6458_v25  ;;  %4000 = vmatpush1.bf16.msra.mxu1 %v6461_v26  ;;  %v534_v25 = vsub.s32 4, %v7161_v17  ;;  %v542_v26 = vsub.s32 6, %v7161_v17 }
 0x2ae   :  { %3840 = vmatprep.subr.bf16.mxu0 %v6466_v36  ;;  %4012 = vmatprep.subr.bf16.mxu1 %v6469_v46  ;;  %v6542_v36 = vld [vmem:[#allocation6 + $0x5a0] ss:$16 sps:$4 sm:$0xff]   ;;  %v6545_v46 = vld [vmem:[#allocation6 + $0x5a8] ss:$16 sps:$4 sm:$0xff]  }
 0x2b0   :  { %3830 = vmatmul.mubr.bf16.vlgmr.msra.gmra.mrb[12].mxu0 %v2190_v28  ;;  %4002 = vmatmul.mubr.bf16.vlgmr.msra.gmra.mrb[12].mxu1 %v2190_v28  ;;  %v6550_v28 = vld [vmem:[#allocation6 + $0x5c4] ss:$16 sps:$4 sm:$0xff]  }
 0x2b1   :  { %3841 = vmatpush1.bf16.msra.mxu0 %v6464_v50  ;;  %4013 = vmatpush1.bf16.msra.mxu1 %v6467_v27  ;;  %v538_v50 = vsub.s32 5, %v7161_v17  ;;  %v546_v27 = vsub.s32 7, %v7161_v17  ;;  %v6556_v17 = vld [vmem:[#allocation6 + $0x5e4] ss:$16 sps:$4 sm:$0xff]  }
 0x2b2   :  { %3842 = vmatprep.subr.bf16.mxu0 %v6472_v29  ;;  %4014 = vmatprep.subr.bf16.mxu1 %v6475_v30  ;;  %v6553_v29 = vld [vmem:[#allocation6 + $0x5cc] ss:$16 sps:$4 sm:$0xff]   ;;  %v535_v30 = vrot.slane %v7216_v47, %v534_v25  ;;  %v6584_v25 = vld [vmem:[#allocation6 + $0x680] ss:$16 sps:$4 sm:$0xff]  }
 0x2b5   :  { %3843 = vmatpush1.bf16.msra.mxu0 %v6470_v31  ;;  %4015 = vmatpush1.bf16.msra.mxu1 %v6473_v32  ;;  %v543_v31 = vrot.slane %v7216_v47, %v542_v26  ;;  %v6587_v26 = vld [vmem:[#allocation6 + $0x688] ss:$16 sps:$4 sm:$0xff]  }
 0x2b6   :  { %3844 = vmatprep.subr.bf16.mxu0 %v6478_v33  ;;  %4016 = vmatprep.subr.bf16.mxu1 %v6481_v34  ;;  %v539_v33 = vrot.slane %v7216_v47, %v538_v50  ;;  %v6548_v34 = vld [vmem:[#allocation6 + $0x5c0] ss:$16 sps:$4 sm:$0xff]  }
 0x2b7   :  { %v6590_v50 = vld [vmem:[#allocation6 + $0x6a0] ss:$16 sps:$4 sm:$0xff]  }
 0x2b9   :  { %3845 = vmatpush1.bf16.msra.mxu0 %v6476_v35  ;;  %4017 = vmatpush1.bf16.msra.mxu1 %v6479_v61  ;;  %v6551_v35 = vld [vmem:[#allocation6 + $0x5c8] ss:$16 sps:$4 sm:$0xff]  }
 0x2ba   :  { %3846 = vmatprep.subr.bf16.mxu0 %v6484_v62  ;;  %4018 = vmatprep.subr.bf16.mxu1 %v6487_v7  ;;  %v547_v7 = vrot.slane %v7216_v47, %v546_v27  ;;  %v6554_v47 = vld [vmem:[#allocation6 + $0x5e0] ss:$16 sps:$4 sm:$0xff]   ;;  %v6593_v27 = vld [vmem:[#allocation6 + $0x6a8] ss:$16 sps:$4 sm:$0xff]  }
 0x2bd   :  { %3847 = vmatpush1.bf16.msra.mxu0 %v6482_v37  ;;  %4019 = vmatpush1.bf16.msra.mxu1 %v6485_v38  ;;  %v6559_v37 = vld [vmem:[#allocation6 + $0x5ec] ss:$16 sps:$4 sm:$0xff]  }
 0x2be   :  { %3848 = vmatprep.subr.bf16.mxu0 %v6490_v49  ;;  %4020 = vmatprep.subr.bf16.mxu1 %v6493_v39 }
 0x2c1   :  { %3849 = vmatpush1.bf16.msra.mxu0 %v6488_v40  ;;  %4021 = vmatpush1.bf16.msra.mxu1 %v6491_v41 }
 0x2c2   :  { %3850 = vmatprep.subr.bf16.mxu0 %v6496_v42  ;;  %4022 = vmatprep.subr.bf16.mxu1 %v6499_v43 }
 0x2c5   :  { %3851 = vmatpush1.bf16.msra.mxu0 %v6494_v44  ;;  %4023 = vmatpush1.bf16.msra.mxu1 %v6497_v45 }
 0x2c6   :  { %3852 = vmatprep.subr.bf16.mxu0 %v6502_v48  ;;  %4024 = vmatprep.subr.bf16.mxu1 %v6505_v52 }
 0x2c9   :  { %3853 = vmatpush1.bf16.msra.mxu0 %v6500_v53  ;;  %4025 = vmatpush1.bf16.msra.mxu1 %v6503_v54  ;;  %v6557_v53 = vld [vmem:[#allocation6 + $0x5e8] ss:$16 sps:$4 sm:$0xff]  }
 0x2ca   :  { %3854 = vmatprep.subr.bf16.mxu0 %v6508_v51  ;;  %4026 = vmatprep.subr.bf16.mxu1 %v6511_v55 }
 0x2cd   :  { %3855 = vmatpush1.bf16.msra.mxu0 %v6506_v14  ;;  %4027 = vmatpush1.bf16.msra.mxu1 %v6509_v56  ;;  %v6562_v14 = vld [vmem:[#allocation6 + $0x604] ss:$16 sps:$4 sm:$0xff]   ;;  %v6565_v56 = vld [vmem:[#allocation6 + $0x60c] ss:$16 sps:$4 sm:$0xff]  }
 0x2ce   :  { %3856 = vmatprep.subr.bf16.mxu0 %v6514_v57  ;;  %4028 = vmatprep.subr.bf16.mxu1 %v6517_v58 }
 0x2d1   :  { %3857 = vmatpush1.bf16.msra.mxu0 %v6512_v60  ;;  %4029 = vmatpush1.bf16.msra.mxu1 %v6515_v59 }
 0x2d2   :  { %3858 = vmatprep.subr.bf16.mxu0 %v6520_v63  ;;  %4030 = vmatprep.subr.bf16.mxu1 %v6523_v1  ;;  %v6560_v63 = vld [vmem:[#allocation6 + $0x600] ss:$16 sps:$4 sm:$0xff]   ;;  %v6563_v1 = vld [vmem:[#allocation6 + $0x608] ss:$16 sps:$4 sm:$0xff]  }
 0x2d5   :  { %3859 = vmatpush1.bf16.msra.mxu0 %v6518_v2  ;;  %4031 = vmatpush1.bf16.msra.mxu1 %v6521_v3  ;;  %v6568_v3 = vld [vmem:[#allocation6 + $0x624] ss:$16 sps:$4 sm:$0xff]  }
 0x2d6   :  { %3860 = vmatprep.subr.bf16.mxu0 %v6526_v4  ;;  %4032 = vmatprep.subr.bf16.mxu1 %v6529_v5  ;;  %v6571_v4 = vld [vmem:[#allocation6 + $0x62c] ss:$16 sps:$4 sm:$0xff]  }
 0x2d9   :  { %3861 = vmatpush1.bf16.msra.mxu0 %v6524_v6  ;;  %4033 = vmatpush1.bf16.msra.mxu1 %v6527_v8  ;;  %v6566_v6 = vld [vmem:[#allocation6 + $0x620] ss:$16 sps:$4 sm:$0xff]   ;;  %v6569_v8 = vld [vmem:[#allocation6 + $0x628] ss:$16 sps:$4 sm:$0xff]  }
 0x2da   :  { %3862 = vmatprep.subr.bf16.mxu0 %v6532_v9  ;;  %4034 = vmatprep.subr.bf16.mxu1 %v6535_v10  ;;  %v6574_v9 = vld [vmem:[#allocation6 + $0x644] ss:$16 sps:$4 sm:$0xff]   ;;  %v6577_v10 = vld [vmem:[#allocation6 + $0x64c] ss:$16 sps:$4 sm:$0xff]  }
 0x2dd   :  { %3863 = vmatpush1.bf16.msra.mxu0 %v6530_v11  ;;  %4035 = vmatpush1.bf16.msra.mxu1 %v6533_v12  ;;  %v6572_v11 = vld [vmem:[#allocation6 + $0x640] ss:$16 sps:$4 sm:$0xff]   ;;  %v6575_v12 = vld [vmem:[#allocation6 + $0x648] ss:$16 sps:$4 sm:$0xff]  }
 0x2de   :  { %3864 = vmatprep.subr.bf16.mxu0 %v6538_v13  ;;  %4036 = vmatprep.subr.bf16.mxu1 %v6541_v15  ;;  %v6580_v13 = vld [vmem:[#allocation6 + $0x664] ss:$16 sps:$4 sm:$0xff]   ;;  %v6583_v15 = vld [vmem:[#allocation6 + $0x66c] ss:$16 sps:$4 sm:$0xff]  }
 0x2e1   :  { %3865 = vmatpush1.bf16.msra.mxu0 %v6536_v16  ;;  %4037 = vmatpush1.bf16.msra.mxu1 %v6539_v19  ;;  %v6578_v16 = vld [vmem:[#allocation6 + $0x660] ss:$16 sps:$4 sm:$0xff]   ;;  %v6581_v19 = vld [vmem:[#allocation6 + $0x668] ss:$16 sps:$4 sm:$0xff]  }
 0x2e2   :  { %3866 = vmatprep.subr.bf16.mxu0 %v6544_v23  ;;  %4038 = vmatprep.subr.bf16.mxu1 %v6547_v24  ;;  %v6586_v23 = vld [vmem:[#allocation6 + $0x684] ss:$16 sps:$4 sm:$0xff]   ;;  %v6589_v24 = vld [vmem:[#allocation6 + $0x68c] ss:$16 sps:$4 sm:$0xff]  }
 0x2e5   :  { %3867 = vmatpush1.bf16.msra.mxu0 %v6542_v36  ;;  %4039 = vmatpush1.bf16.msra.mxu1 %v6545_v46  ;;  %v2085_v32 = vpop.f32.mrb[8].mxu0  ;;  %v6592_v36 = vld [vmem:[#allocation6 + $0x6a4] ss:$16 sps:$4 sm:$0xff]   ;;  %v6595_v46 = vld [vmem:[#allocation6 + $0x6ac] ss:$16 sps:$4 sm:$0xff]  }
 0x2e6   :  { %v2171_v61 = vpop.f32.mrb[8].mxu1  ;;  %v2087_v62 = vpop.f32.mrb[9].mxu0  ;;  %3868 = vmatprep.subr.bf16.mxu0 %v6550_v28  ;;  %4040 = vmatprep.subr.bf16.mxu1 %v6553_v29  ;;  %v6180_v39 = vadd.f32 %v2085_v32, %v535_v30  ;;  %v6598_v28 = vld [vmem:[#allocation6 + $0x6c4] ss:$16 sps:$4 sm:$0xff]   ;;  %v6601_v29 = vld [vmem:[#allocation6 + $0x6cc] ss:$16 sps:$4 sm:$0xff]  }
 0x2e7   :  { %v2173_v38 = vpop.f32.mrb[9].mxu1  ;;  %v2089_v49 = vpop.f32.mrb[10].mxu0  ;;  %v7247_v40 = vadd.f32 %v2171_v61, %v543_v31  ;;  %v6181_v44 = vadd.f32 %v2087_v62, %v539_v33  ;;  %v6604_v32 = vld [vmem:[#allocation6 + $0x6e4] ss:$16 sps:$4 sm:$0xff]   ;;  %v6613_v62 = vld [vmem:[#allocation6 + $0x70c] ss:$16 sps:$4 sm:$0xff]  }
 0x2e8   :  { %v6182_v41 = vadd.f32 %v2089_v49, %v535_v30  ;;  %v2175_v42 = vpop.f32.mrb[10].mxu1  ;;  %v2091_v43 = vpop.f32.mrb[11].mxu0  ;;  %v6185_v54 = vadd.f32 %v2173_v38, %v547_v7  ;;  %v6596_v30 = vld [vmem:[#allocation6 + $0x6c0] ss:$16 sps:$4 sm:$0xff]   ;;  %v6610_v61 = vld [vmem:[#allocation6 + $0x704] ss:$16 sps:$4 sm:$0xff]  }
 0x2e9   :  { %v7249_v45 = vadd.f32 %v2175_v42, %v543_v31  ;;  %v6183_v48 = vadd.f32 %v2091_v43, %v539_v33  ;;  %v2177_v52 = vpop.f32.mrb[11].mxu1  ;;  %3869 = vmatpush1.bf16.msra.mxu0 %v6548_v34  ;;  %4041 = vmatpush1.bf16.msra.mxu1 %v6551_v35  ;;  %v6599_v31 = vld [vmem:[#allocation6 + $0x6c8] ss:$16 sps:$4 sm:$0xff]   ;;  %v6607_v33 = vld [vmem:[#allocation6 + $0x6ec] ss:$16 sps:$4 sm:$0xff]  }
 0x2ea   :  { %v2184_v51 = vpack.c.bf16 %v6182_v41, %v6180_v39  ;;  %v6187_v55 = vadd.f32 %v2177_v52, %v547_v7  ;;  %3870 = vmatprep.subr.bf16.mxu0 %v6556_v17  ;;  %4042 = vmatprep.subr.bf16.mxu1 %v6559_v37  ;;  %v6602_v34 = vld [vmem:[#allocation6 + $0x6e0] ss:$16 sps:$4 sm:$0xff]   ;;  %v6605_v35 = vld [vmem:[#allocation6 + $0x6e8] ss:$16 sps:$4 sm:$0xff]   ;;  %v6616_v37 = vld [vmem:[#allocation6 + $0x724] ss:$16 sps:$4 sm:$0xff]  }
 0x2eb   :  { %v2186_v57 = vpack.c.bf16 %v7249_v45, %v7247_v40  ;;  %v2185_v58 = vpack.c.bf16 %v6183_v48, %v6181_v44  ;;  %v6608_v7 = vld [vmem:[#allocation6 + $0x700] ss:$16 sps:$4 sm:$0xff]   ;;  %v6611_v17 = vld [vmem:[#allocation6 + $0x708] ss:$16 sps:$4 sm:$0xff]   ;;  %v6619_v38 = vld [vmem:[#allocation6 + $0x72c] ss:$16 sps:$4 sm:$0xff]  }
 0x2ec   :  { %v2187_v60 = vpack.c.bf16 %v6187_v55, %v6185_v54  ;;  %v2192_v2 = vmax.bf16 %v7032_v0, %v2184_v51  ;;  %v6614_v49 = vld [vmem:[#allocation6 + $0x720] ss:$16 sps:$4 sm:$0xff]   ;;  %v6617_v39 = vld [vmem:[#allocation6 + $0x728] ss:$16 sps:$4 sm:$0xff]   ;;  %v6622_v41 = vld [vmem:[#allocation6 + $0x744] ss:$16 sps:$4 sm:$0xff]  }
 0x2ed   :  { %3871 = vmatpush1.bf16.msra.mxu0 %v6554_v47  ;;  %4043 = vmatpush1.bf16.msra.mxu1 %v6557_v53  ;;  %v2193_v59 = vmax.bf16 %v7032_v0, %v2185_v58  ;;  %v6625_v42 = vld [vmem:[#allocation6 + $0x74c] ss:$16 sps:$4 sm:$0xff]   ;;  %v6620_v43 = vld [vmem:[#allocation6 + $0x740] ss:$16 sps:$4 sm:$0xff]   ;;  %v6623_v44 = vld [vmem:[#allocation6 + $0x748] ss:$16 sps:$4 sm:$0xff]  }
 0x2ee   :  { %3883 = vmatprep.subr.bf16.mxu0 %v6562_v14  ;;  %4055 = vmatprep.subr.bf16.mxu1 %v6565_v56  ;;  %v2195_v5 = vmax.bf16 %v7032_v0, %v2187_v60  ;;  %v6628_v48 = vld [vmem:[#allocation6 + $0x764] ss:$16 sps:$4 sm:$0xff]   ;;  %v6631_v52 = vld [vmem:[#allocation6 + $0x76c] ss:$16 sps:$4 sm:$0xff]   ;;  %v6626_v47 = vld [vmem:[#allocation6 + $0x760] ss:$16 sps:$4 sm:$0xff]  }
 0x2ef   :  { %3872 = vmatprep.mubr.bf16.mxu0 %v2193_v59  ;;  %4044 = vmatprep.mubr.bf16.mxu1 %v2193_v59  ;;  %v6629_v53 = vld [vmem:[#allocation6 + $0x768] ss:$16 sps:$4 sm:$0xff]   ;;  %v6634_v54 = vld [vmem:[#allocation6 + $0x784] ss:$16 sps:$4 sm:$0xff]   ;;  %v6637_v51 = vld [vmem:[#allocation6 + $0x78c] ss:$16 sps:$4 sm:$0xff]  }
 0x2f0   :  { %3873 = vmatmul.mubr.bf16.vlgmr.msra.gmra.mrb[12].mxu0 %v2192_v2  ;;  %4045 = vmatmul.mubr.bf16.vlgmr.msra.gmra.mrb[12].mxu1 %v2192_v2  ;;  %v6632_v55 = vld [vmem:[#allocation6 + $0x780] ss:$16 sps:$4 sm:$0xff]   ;;  %v6635_v14 = vld [vmem:[#allocation6 + $0x788] ss:$16 sps:$4 sm:$0xff]   ;;  %v6640_v56 = vld [vmem:[#allocation6 + $0x7a4] ss:$16 sps:$4 sm:$0xff]  }
 0x2f1   :  { %3884 = vmatpush1.bf16.msra.mxu0 %v6560_v63  ;;  %4056 = vmatpush1.bf16.msra.mxu1 %v6563_v1  ;;  %v6643_v58 = vld [vmem:[#allocation6 + $0x7ac] ss:$16 sps:$4 sm:$0xff]   ;;  %v6638_v60 = vld [vmem:[#allocation6 + $0x7a0] ss:$16 sps:$4 sm:$0xff]   ;;  %v6641_v59 = vld [vmem:[#allocation6 + $0x7a8] ss:$16 sps:$4 sm:$0xff]  }
 0x2f2   :  { %3915 = vmatprep.mubr.bf16.mxu0 %v2195_v5  ;;  %4087 = vmatprep.mubr.bf16.mxu1 %v2195_v5  ;;  %v6646_v63 = vld [vmem:[#allocation6 + $0x7c4] ss:$16 sps:$4 sm:$0xff]   ;;  %v6649_v1 = vld [vmem:[#allocation6 + $0x7cc] ss:$16 sps:$4 sm:$0xff]   ;;  %v6644_v2 = vld [vmem:[#allocation6 + $0x7c0] ss:$16 sps:$4 sm:$0xff]  }
 0x2f3   :  { %3885 = vmatprep.subr.bf16.mxu0 %v6568_v3  ;;  %4057 = vmatprep.subr.bf16.mxu1 %v6571_v4  ;;  %v6647_v3 = vld [vmem:[#allocation6 + $0x7c8] ss:$16 sps:$4 sm:$0xff]   ;;  %v6652_v4 = vld [vmem:[#allocation6 + $0x7e4] ss:$16 sps:$4 sm:$0xff]   ;;  %v6655_v5 = vld [vmem:[#allocation6 + $0x7ec] ss:$16 sps:$4 sm:$0xff]  }
 0x2f4   :  { %v6671_v40 = vld [vmem:[#allocation7 + $0x48] ss:$16 sps:$4 sm:$0xff]   ;;  %v6676_v45 = vld [vmem:[#allocation7 + $0x64] ss:$16 sps:$4 sm:$0xff]  }
 0x2f5   :  { %3886 = vmatpush1.bf16.msra.mxu0 %v6566_v6  ;;  %4058 = vmatpush1.bf16.msra.mxu1 %v6569_v8  ;;  %v6650_v6 = vld [vmem:[#allocation6 + $0x7e0] ss:$16 sps:$4 sm:$0xff]   ;;  %v6653_v8 = vld [vmem:[#allocation6 + $0x7e8] ss:$16 sps:$4 sm:$0xff]  }
 0x2f6   :  { %3887 = vmatprep.subr.bf16.mxu0 %v6574_v9  ;;  %4059 = vmatprep.subr.bf16.mxu1 %v6577_v10  ;;  %v6658_v9 = vld [vmem:[#allocation7 + $0x4] ss:$16 sps:$4 sm:$0xff]   ;;  %v6661_v10 = vld [vmem:[#allocation7 + $0xc] ss:$16 sps:$4 sm:$0xff]  }
 0x2f9   :  { %3888 = vmatpush1.bf16.msra.mxu0 %v6572_v11  ;;  %4060 = vmatpush1.bf16.msra.mxu1 %v6575_v12  ;;  %v6656_v11 = vld [vmem:[#allocation7] ss:$16 sps:$4 sm:$0xff]   ;;  %v6659_v12 = vld [vmem:[#allocation7 + $0x8] ss:$16 sps:$4 sm:$0xff]  }
 0x2fa   :  { %3889 = vmatprep.subr.bf16.mxu0 %v6580_v13  ;;  %4061 = vmatprep.subr.bf16.mxu1 %v6583_v15  ;;  %v2194_v13 = vmax.bf16 %v7032_v0, %v2186_v57  ;;  %v6664_v15 = vld [vmem:[#allocation7 + $0x24] ss:$16 sps:$4 sm:$0xff]   ;;  %v6679_v57 = vld [vmem:[#allocation7 + $0x6c] ss:$16 sps:$4 sm:$0xff]  }
 0x2fd   :  { %3890 = vmatpush1.bf16.msra.mxu0 %v6578_v16  ;;  %4062 = vmatpush1.bf16.msra.mxu1 %v6581_v19  ;;  %v6667_v16 = vld [vmem:[#allocation7 + $0x2c] ss:$16 sps:$4 sm:$0xff]   ;;  %v6662_v19 = vld [vmem:[#allocation7 + $0x20] ss:$16 sps:$4 sm:$0xff]  }
 0x2fe   :  { %3891 = vmatprep.subr.bf16.mxu0 %v6586_v23  ;;  %4063 = vmatprep.subr.bf16.mxu1 %v6589_v24  ;;  %v6665_v23 = vld [vmem:[#allocation7 + $0x28] ss:$16 sps:$4 sm:$0xff]   ;;  %v6670_v24 = vld [vmem:[#allocation7 + $0x44] ss:$16 sps:$4 sm:$0xff]  }
 0x301   :  { %3892 = vmatpush1.bf16.msra.mxu0 %v6584_v25  ;;  %4064 = vmatpush1.bf16.msra.mxu1 %v6587_v26  ;;  %v6673_v25 = vld [vmem:[#allocation7 + $0x4c] ss:$16 sps:$4 sm:$0xff]   ;;  %v6668_v26 = vld [vmem:[#allocation7 + $0x40] ss:$16 sps:$4 sm:$0xff]  }
 0x302   :  { %3893 = vmatprep.subr.bf16.mxu0 %v6592_v36  ;;  %4065 = vmatprep.subr.bf16.mxu1 %v6595_v46  ;;  %v6674_v36 = vld [vmem:[#allocation7 + $0x60] ss:$16 sps:$4 sm:$0xff]   ;;  %v6677_v46 = vld [vmem:[#allocation7 + $0x68] ss:$16 sps:$4 sm:$0xff]  }
 0x305   :  { %3894 = vmatpush1.bf16.msra.mxu0 %v6590_v50  ;;  %4066 = vmatpush1.bf16.msra.mxu1 %v6593_v27  ;;  %v6682_v50 = vld [vmem:[#allocation7 + $0x84] ss:$16 sps:$4 sm:$0xff]   ;;  %v6685_v27 = vld [vmem:[#allocation7 + $0x8c] ss:$16 sps:$4 sm:$0xff]  }
 0x306   :  { %3895 = vmatprep.subr.bf16.mxu0 %v6598_v28  ;;  %4067 = vmatprep.subr.bf16.mxu1 %v6601_v29  ;;  %v6680_v28 = vld [vmem:[#allocation7 + $0x80] ss:$16 sps:$4 sm:$0xff]   ;;  %v6683_v29 = vld [vmem:[#allocation7 + $0x88] ss:$16 sps:$4 sm:$0xff]  }
 0x309   :  { %3896 = vmatpush1.bf16.msra.mxu0 %v6596_v30  ;;  %4068 = vmatpush1.bf16.msra.mxu1 %v6599_v31  ;;  %v6688_v30 = vld [vmem:[#allocation7 + $0xa4] ss:$16 sps:$4 sm:$0xff]   ;;  %v6691_v31 = vld [vmem:[#allocation7 + $0xac] ss:$16 sps:$4 sm:$0xff]  }
 0x30a   :  { %3897 = vmatprep.subr.bf16.mxu0 %v6604_v32  ;;  %4069 = vmatprep.subr.bf16.mxu1 %v6607_v33  ;;  %v6686_v32 = vld [vmem:[#allocation7 + $0xa0] ss:$16 sps:$4 sm:$0xff]   ;;  %v6689_v33 = vld [vmem:[#allocation7 + $0xa8] ss:$16 sps:$4 sm:$0xff]  }
 0x30d   :  { %3898 = vmatpush1.bf16.msra.mxu0 %v6602_v34  ;;  %4070 = vmatpush1.bf16.msra.mxu1 %v6605_v35  ;;  %v6694_v34 = vld [vmem:[#allocation7 + $0xc4] ss:$16 sps:$4 sm:$0xff]   ;;  %v6697_v35 = vld [vmem:[#allocation7 + $0xcc] ss:$16 sps:$4 sm:$0xff]  }
 0x30e   :  { %3899 = vmatprep.subr.bf16.mxu0 %v6610_v61  ;;  %4071 = vmatprep.subr.bf16.mxu1 %v6613_v62  ;;  %v6692_v61 = vld [vmem:[#allocation7 + $0xc0] ss:$16 sps:$4 sm:$0xff]   ;;  %v6695_v62 = vld [vmem:[#allocation7 + $0xc8] ss:$16 sps:$4 sm:$0xff]  }
 0x311   :  { %3900 = vmatpush1.bf16.msra.mxu0 %v6608_v7  ;;  %4072 = vmatpush1.bf16.msra.mxu1 %v6611_v17  ;;  %v6700_v7 = vld [vmem:[#allocation7 + $0xe4] ss:$16 sps:$4 sm:$0xff]   ;;  %v6703_v17 = vld [vmem:[#allocation7 + $0xec] ss:$16 sps:$4 sm:$0xff]  }
 0x312   :  { %3901 = vmatprep.subr.bf16.mxu0 %v6616_v37  ;;  %4073 = vmatprep.subr.bf16.mxu1 %v6619_v38  ;;  %v6698_v37 = vld [vmem:[#allocation7 + $0xe0] ss:$16 sps:$4 sm:$0xff]   ;;  %v6701_v38 = vld [vmem:[#allocation7 + $0xe8] ss:$16 sps:$4 sm:$0xff]  }
 0x315   :  { %3902 = vmatpush1.bf16.msra.mxu0 %v6614_v49  ;;  %4074 = vmatpush1.bf16.msra.mxu1 %v6617_v39  ;;  %v6706_v49 = vld [vmem:[#allocation7 + $0x104] ss:$16 sps:$4 sm:$0xff]   ;;  %v6709_v39 = vld [vmem:[#allocation7 + $0x10c] ss:$16 sps:$4 sm:$0xff]  }
 0x316   :  { %3903 = vmatprep.subr.bf16.mxu0 %v6622_v41  ;;  %4075 = vmatprep.subr.bf16.mxu1 %v6625_v42  ;;  %v6704_v41 = vld [vmem:[#allocation7 + $0x100] ss:$16 sps:$4 sm:$0xff]   ;;  %v6707_v42 = vld [vmem:[#allocation7 + $0x108] ss:$16 sps:$4 sm:$0xff]  }
 0x319   :  { %3904 = vmatpush1.bf16.msra.mxu0 %v6620_v43  ;;  %4076 = vmatpush1.bf16.msra.mxu1 %v6623_v44  ;;  %v6712_v43 = vld [vmem:[#allocation7 + $0x124] ss:$16 sps:$4 sm:$0xff]   ;;  %v6715_v44 = vld [vmem:[#allocation7 + $0x12c] ss:$16 sps:$4 sm:$0xff]  }
 0x31a   :  { %3905 = vmatprep.subr.bf16.mxu0 %v6628_v48  ;;  %4077 = vmatprep.subr.bf16.mxu1 %v6631_v52  ;;  %v6710_v48 = vld [vmem:[#allocation7 + $0x120] ss:$16 sps:$4 sm:$0xff]   ;;  %v6713_v52 = vld [vmem:[#allocation7 + $0x128] ss:$16 sps:$4 sm:$0xff]  }
 0x31d   :  { %3906 = vmatpush1.bf16.msra.mxu0 %v6626_v47  ;;  %4078 = vmatpush1.bf16.msra.mxu1 %v6629_v53  ;;  %v6718_v47 = vld [vmem:[#allocation7 + $0x144] ss:$16 sps:$4 sm:$0xff]   ;;  %v6721_v53 = vld [vmem:[#allocation7 + $0x14c] ss:$16 sps:$4 sm:$0xff]  }
 0x31e   :  { %3907 = vmatprep.subr.bf16.mxu0 %v6634_v54  ;;  %4079 = vmatprep.subr.bf16.mxu1 %v6637_v51  ;;  %v6716_v54 = vld [vmem:[#allocation7 + $0x140] ss:$16 sps:$4 sm:$0xff]   ;;  %v6719_v51 = vld [vmem:[#allocation7 + $0x148] ss:$16 sps:$4 sm:$0xff]  }
 0x321   :  { %3908 = vmatpush1.bf16.msra.mxu0 %v6632_v55  ;;  %4080 = vmatpush1.bf16.msra.mxu1 %v6635_v14  ;;  %v6724_v55 = vld [vmem:[#allocation7 + $0x164] ss:$16 sps:$4 sm:$0xff]   ;;  %v6727_v14 = vld [vmem:[#allocation7 + $0x16c] ss:$16 sps:$4 sm:$0xff]  }
 0x322   :  { %3909 = vmatprep.subr.bf16.mxu0 %v6640_v56  ;;  %4081 = vmatprep.subr.bf16.mxu1 %v6643_v58  ;;  %v6722_v56 = vld [vmem:[#allocation7 + $0x160] ss:$16 sps:$4 sm:$0xff]   ;;  %v6725_v58 = vld [vmem:[#allocation7 + $0x168] ss:$16 sps:$4 sm:$0xff]  }
 0x325   :  { %3910 = vmatpush1.bf16.msra.mxu0 %v6638_v60  ;;  %4082 = vmatpush1.bf16.msra.mxu1 %v6641_v59  ;;  %v6730_v60 = vld [vmem:[#allocation7 + $0x184] ss:$16 sps:$4 sm:$0xff]   ;;  %v6733_v59 = vld [vmem:[#allocation7 + $0x18c] ss:$16 sps:$4 sm:$0xff]  }
 0x326   :  { %3911 = vmatprep.subr.bf16.mxu0 %v6646_v63  ;;  %4083 = vmatprep.subr.bf16.mxu1 %v6649_v1  ;;  %v6728_v63 = vld [vmem:[#allocation7 + $0x180] ss:$16 sps:$4 sm:$0xff]   ;;  %v6731_v1 = vld [vmem:[#allocation7 + $0x188] ss:$16 sps:$4 sm:$0xff]  }
 0x329   :  { %3912 = vmatpush1.bf16.msra.mxu0 %v6644_v2  ;;  %4084 = vmatpush1.bf16.msra.mxu1 %v6647_v3  ;;  %v6736_v2 = vld [vmem:[#allocation7 + $0x1a4] ss:$16 sps:$4 sm:$0xff]   ;;  %v6739_v3 = vld [vmem:[#allocation7 + $0x1ac] ss:$16 sps:$4 sm:$0xff]  }
 0x32a   :  { %3913 = vmatprep.subr.bf16.mxu0 %v6652_v4  ;;  %4085 = vmatprep.subr.bf16.mxu1 %v6655_v5  ;;  %v6734_v4 = vld [vmem:[#allocation7 + $0x1a0] ss:$16 sps:$4 sm:$0xff]   ;;  %v6737_v5 = vld [vmem:[#allocation7 + $0x1a8] ss:$16 sps:$4 sm:$0xff]  }
 0x32d   :  { %3914 = vmatpush1.bf16.msra.mxu0 %v6650_v6  ;;  %4086 = vmatpush1.bf16.msra.mxu1 %v6653_v8  ;;  %v6742_v6 = vld [vmem:[#allocation7 + $0x1c4] ss:$16 sps:$4 sm:$0xff]   ;;  %v6745_v8 = vld [vmem:[#allocation7 + $0x1cc] ss:$16 sps:$4 sm:$0xff]  }
 0x32e   :  { %4896 = vmatprep.subr.bf16.mxu0 %v6658_v9  ;;  %4982 = vmatprep.subr.bf16.mxu1 %v6661_v10  ;;  %v6740_v9 = vld [vmem:[#allocation7 + $0x1c0] ss:$16 sps:$4 sm:$0xff]   ;;  %v6743_v10 = vld [vmem:[#allocation7 + $0x1c8] ss:$16 sps:$4 sm:$0xff]  }
 0x330   :  { %3916 = vmatmul.mubr.bf16.vlgmr.msra.gmra.mrb[12].mxu0 %v2194_v13  ;;  %4088 = vmatmul.mubr.bf16.vlgmr.msra.gmra.mrb[12].mxu1 %v2194_v13  ;;  %v6746_v13 = vld [vmem:[#allocation7 + $0x1e0] ss:$16 sps:$4 sm:$0xff]  }
 0x331   :  { %4897 = vmatpush1.bf16.msra.mxu0 %v6656_v11  ;;  %4983 = vmatpush1.bf16.msra.mxu1 %v6659_v12  ;;  %v6748_v11 = vld [vmem:[#allocation7 + $0x1e4] ss:$16 sps:$4 sm:$0xff]   ;;  %v6751_v12 = vld [vmem:[#allocation7 + $0x1ec] ss:$16 sps:$4 sm:$0xff]  }
 0x332   :  { %4898 = vmatprep.subr.bf16.mxu0 %v6664_v15  ;;  %4984 = vmatprep.subr.bf16.mxu1 %v6667_v16  ;;  %v6749_v15 = vld [vmem:[#allocation7 + $0x1e8] ss:$16 sps:$4 sm:$0xff]   ;;  %v6754_v16 = vld [vmem:[#allocation7 + $0x204] ss:$16 sps:$4 sm:$0xff]  }
 0x335   :  { %4899 = vmatpush1.bf16.msra.mxu0 %v6662_v19  ;;  %4985 = vmatpush1.bf16.msra.mxu1 %v6665_v23  ;;  %v6757_v19 = vld [vmem:[#allocation7 + $0x20c] ss:$16 sps:$4 sm:$0xff]  }
 0x336   :  { %4900 = vmatprep.subr.bf16.mxu0 %v6670_v24  ;;  %4986 = vmatprep.subr.bf16.mxu1 %v6673_v25  ;;  %v2452_v23 = vld [vmem:[#allocation10 + $0xc] sm:$0xf] }
 0x337   :  { %v2457_v24 = vrot.slane %v2452_v23, %v7164_v18  ;;  %v2465_v25 = vrot.slane %v2452_v23, %v7170_v21 }
 0x339   :  { %4901 = vmatpush1.bf16.msra.mxu0 %v6668_v26  ;;  %4987 = vmatpush1.bf16.msra.mxu1 %v6671_v40 }
 0x33a   :  { %4902 = vmatprep.subr.bf16.mxu0 %v6676_v45  ;;  %4988 = vmatprep.subr.bf16.mxu1 %v6679_v57  ;;  %v2461_v45 = vrot.slane %v2452_v23, %v7167_v20  ;;  %v2469_v57 = vrot.slane %v2452_v23, %v7173_v22  ;;  %v6805_v23 = vld [vmem:[#allocation7 + $0x30c] ss:$16 sps:$4 sm:$0xff]  }
 0x33d   :  { %4903 = vmatpush1.bf16.msra.mxu0 %v6674_v36  ;;  %4989 = vmatpush1.bf16.msra.mxu1 %v6677_v46 }
 0x33e   :  { %4904 = vmatprep.subr.bf16.mxu0 %v6682_v50  ;;  %4990 = vmatprep.subr.bf16.mxu1 %v6685_v27 }
 0x341   :  { %4905 = vmatpush1.bf16.msra.mxu0 %v6680_v28  ;;  %4991 = vmatpush1.bf16.msra.mxu1 %v6683_v29 }
 0x342   :  { %4906 = vmatprep.subr.bf16.mxu0 %v6688_v30  ;;  %4992 = vmatprep.subr.bf16.mxu1 %v6691_v31 }
 0x345   :  { %4907 = vmatpush1.bf16.msra.mxu0 %v6686_v32  ;;  %4993 = vmatpush1.bf16.msra.mxu1 %v6689_v33 }
 0x346   :  { %4908 = vmatprep.subr.bf16.mxu0 %v6694_v34  ;;  %4994 = vmatprep.subr.bf16.mxu1 %v6697_v35 }
 0x349   :  { %4909 = vmatpush1.bf16.msra.mxu0 %v6692_v61  ;;  %4995 = vmatpush1.bf16.msra.mxu1 %v6695_v62 }
 0x34a   :  { %4910 = vmatprep.subr.bf16.mxu0 %v6700_v7  ;;  %4996 = vmatprep.subr.bf16.mxu1 %v6703_v17 }
 0x34d   :  { %4911 = vmatpush1.bf16.msra.mxu0 %v6698_v37  ;;  %4997 = vmatpush1.bf16.msra.mxu1 %v6701_v38 }
 0x34e   :  { %4912 = vmatprep.subr.bf16.mxu0 %v6706_v49  ;;  %4998 = vmatprep.subr.bf16.mxu1 %v6709_v39  ;;  %v6752_v39 = vld [vmem:[#allocation7 + $0x200] ss:$16 sps:$4 sm:$0xff]  }
 0x351   :  { %4913 = vmatpush1.bf16.msra.mxu0 %v6704_v41  ;;  %4999 = vmatpush1.bf16.msra.mxu1 %v6707_v42  ;;  %v6755_v41 = vld [vmem:[#allocation7 + $0x208] ss:$16 sps:$4 sm:$0xff]  }
 0x352   :  { %4914 = vmatprep.subr.bf16.mxu0 %v6712_v43  ;;  %5000 = vmatprep.subr.bf16.mxu1 %v6715_v44  ;;  %v6760_v43 = vld [vmem:[#allocation7 + $0x224] ss:$16 sps:$4 sm:$0xff]   ;;  %v6763_v44 = vld [vmem:[#allocation7 + $0x22c] ss:$16 sps:$4 sm:$0xff]  }
 0x355   :  { %4915 = vmatpush1.bf16.msra.mxu0 %v6710_v48  ;;  %5001 = vmatpush1.bf16.msra.mxu1 %v6713_v52  ;;  %v6758_v52 = vld [vmem:[#allocation7 + $0x220] ss:$16 sps:$4 sm:$0xff]  }
 0x356   :  { %4916 = vmatprep.subr.bf16.mxu0 %v6718_v47  ;;  %5002 = vmatprep.subr.bf16.mxu1 %v6721_v53  ;;  %v6761_v47 = vld [vmem:[#allocation7 + $0x228] ss:$16 sps:$4 sm:$0xff]   ;;  %v6766_v53 = vld [vmem:[#allocation7 + $0x244] ss:$16 sps:$4 sm:$0xff]  }
 0x359   :  { %4917 = vmatpush1.bf16.msra.mxu0 %v6716_v54  ;;  %5003 = vmatpush1.bf16.msra.mxu1 %v6719_v51  ;;  %v6769_v54 = vld [vmem:[#allocation7 + $0x24c] ss:$16 sps:$4 sm:$0xff]   ;;  %v6764_v51 = vld [vmem:[#allocation7 + $0x240] ss:$16 sps:$4 sm:$0xff]  }
 0x35a   :  { %4918 = vmatprep.subr.bf16.mxu0 %v6724_v55  ;;  %5004 = vmatprep.subr.bf16.mxu1 %v6727_v14  ;;  %v6767_v55 = vld [vmem:[#allocation7 + $0x248] ss:$16 sps:$4 sm:$0xff]   ;;  %v6772_v14 = vld [vmem:[#allocation7 + $0x264] ss:$16 sps:$4 sm:$0xff]  }
 0x35d   :  { %4919 = vmatpush1.bf16.msra.mxu0 %v6722_v56  ;;  %5005 = vmatpush1.bf16.msra.mxu1 %v6725_v58  ;;  %v6775_v56 = vld [vmem:[#allocation7 + $0x26c] ss:$16 sps:$4 sm:$0xff]   ;;  %v6770_v58 = vld [vmem:[#allocation7 + $0x260] ss:$16 sps:$4 sm:$0xff]  }
 0x35e   :  { %4920 = vmatprep.subr.bf16.mxu0 %v6730_v60  ;;  %5006 = vmatprep.subr.bf16.mxu1 %v6733_v59  ;;  %v6773_v60 = vld [vmem:[#allocation7 + $0x268] ss:$16 sps:$4 sm:$0xff]   ;;  %v6778_v59 = vld [vmem:[#allocation7 + $0x284] ss:$16 sps:$4 sm:$0xff]  }
 0x361   :  { %4921 = vmatpush1.bf16.msra.mxu0 %v6728_v63  ;;  %5007 = vmatpush1.bf16.msra.mxu1 %v6731_v1  ;;  %v6781_v63 = vld [vmem:[#allocation7 + $0x28c] ss:$16 sps:$4 sm:$0xff]   ;;  %v6776_v1 = vld [vmem:[#allocation7 + $0x280] ss:$16 sps:$4 sm:$0xff]  }
 0x362   :  { %4922 = vmatprep.subr.bf16.mxu0 %v6736_v2  ;;  %5008 = vmatprep.subr.bf16.mxu1 %v6739_v3  ;;  %v6779_v2 = vld [vmem:[#allocation7 + $0x288] ss:$16 sps:$4 sm:$0xff]   ;;  %v6784_v3 = vld [vmem:[#allocation7 + $0x2a4] ss:$16 sps:$4 sm:$0xff]  }
 0x365   :  { %4923 = vmatpush1.bf16.msra.mxu0 %v6734_v4  ;;  %5009 = vmatpush1.bf16.msra.mxu1 %v6737_v5  ;;  %v6787_v4 = vld [vmem:[#allocation7 + $0x2ac] ss:$16 sps:$4 sm:$0xff]   ;;  %v6782_v5 = vld [vmem:[#allocation7 + $0x2a0] ss:$16 sps:$4 sm:$0xff]  }
 0x366   :  { %4924 = vmatprep.subr.bf16.mxu0 %v6742_v6  ;;  %5010 = vmatprep.subr.bf16.mxu1 %v6745_v8  ;;  %v6785_v6 = vld [vmem:[#allocation7 + $0x2a8] ss:$16 sps:$4 sm:$0xff]   ;;  %v6790_v8 = vld [vmem:[#allocation7 + $0x2c4] ss:$16 sps:$4 sm:$0xff]  }
 0x369   :  { %4925 = vmatpush1.bf16.msra.mxu0 %v6740_v9  ;;  %5011 = vmatpush1.bf16.msra.mxu1 %v6743_v10  ;;  %v6793_v9 = vld [vmem:[#allocation7 + $0x2cc] ss:$16 sps:$4 sm:$0xff]   ;;  %v6788_v10 = vld [vmem:[#allocation7 + $0x2c0] ss:$16 sps:$4 sm:$0xff]  }
 0x36a   :  { %4926 = vmatprep.subr.bf16.mxu0 %v6748_v11  ;;  %5012 = vmatprep.subr.bf16.mxu1 %v6751_v12  ;;  %v6791_v11 = vld [vmem:[#allocation7 + $0x2c8] ss:$16 sps:$4 sm:$0xff]   ;;  %v6796_v12 = vld [vmem:[#allocation7 + $0x2e4] ss:$16 sps:$4 sm:$0xff]  }
 0x36d   :  { %4927 = vmatpush1.bf16.msra.mxu0 %v6746_v13  ;;  %5013 = vmatpush1.bf16.msra.mxu1 %v6749_v15  ;;  %v6799_v13 = vld [vmem:[#allocation7 + $0x2ec] ss:$16 sps:$4 sm:$0xff]   ;;  %v6794_v15 = vld [vmem:[#allocation7 + $0x2e0] ss:$16 sps:$4 sm:$0xff]  }
 0x36e   :  { %4939 = vmatprep.subr.bf16.mxu0 %v6754_v16  ;;  %5025 = vmatprep.subr.bf16.mxu1 %v6757_v19  ;;  %v6797_v16 = vld [vmem:[#allocation7 + $0x2e8] ss:$16 sps:$4 sm:$0xff]   ;;  %v6802_v19 = vld [vmem:[#allocation7 + $0x304] ss:$16 sps:$4 sm:$0xff]  }
 0x403   :  { %v3917_v26 = vpop.f32.mrb[12].mxu0  ;;  %v4089_v40 = vpop.f32.mrb[12].mxu1 }
 0x404   :  { %v3919_v36 = vpop.f32.mrb[13].mxu0  ;;  %v4091_v46 = vpop.f32.mrb[13].mxu1  ;;  %v6188_v28 = vadd.f32 %v3917_v26, %v2457_v24  ;;  %v7264_v29 = vadd.f32 %v4089_v40, %v2465_v25  ;;  %v6808_v26 = vld [vmem:[#allocation7 + $0x324] ss:$16 sps:$4 sm:$0xff]   ;;  %v6811_v40 = vld [vmem:[#allocation7 + $0x32c] ss:$16 sps:$4 sm:$0xff]  }
 0x405   :  { %v3921_v50 = vpop.f32.mrb[14].mxu0  ;;  %v4093_v27 = vpop.f32.mrb[14].mxu1  ;;  %v6189_v34 = vadd.f32 %v3919_v36, %v2461_v45  ;;  %v6193_v35 = vadd.f32 %v4091_v46, %v2469_v57  ;;  %v6814_v36 = vld [vmem:[#allocation7 + $0x344] ss:$16 sps:$4 sm:$0xff]   ;;  %v6817_v46 = vld [vmem:[#allocation7 + $0x34c] ss:$16 sps:$4 sm:$0xff]  }
 0x406   :  { %v6190_v30 = vadd.f32 %v3921_v50, %v2457_v24  ;;  %v7266_v31 = vadd.f32 %v4093_v27, %v2465_v25  ;;  %v3923_v32 = vpop.f32.mrb[15].mxu0  ;;  %v4095_v33 = vpop.f32.mrb[15].mxu1  ;;  %v6800_v24 = vld [vmem:[#allocation7 + $0x300] ss:$16 sps:$4 sm:$0xff]   ;;  %v6803_v25 = vld [vmem:[#allocation7 + $0x308] ss:$16 sps:$4 sm:$0xff]  }
 0x407   :  { %v6191_v61 = vadd.f32 %v3923_v32, %v2461_v45  ;;  %v6195_v62 = vadd.f32 %v4095_v33, %v2469_v57  ;;  %v6806_v45 = vld [vmem:[#allocation7 + $0x320] ss:$16 sps:$4 sm:$0xff]   ;;  %v6809_v57 = vld [vmem:[#allocation7 + $0x328] ss:$16 sps:$4 sm:$0xff]  }
 0x408   :  { %v4098_v7 = vpack.c.bf16 %v6190_v30, %v6188_v28  ;;  %v4100_v17 = vpack.c.bf16 %v7266_v31, %v7264_v29  ;;  %v6812_v50 = vld [vmem:[#allocation7 + $0x340] ss:$16 sps:$4 sm:$0xff]   ;;  %v6815_v27 = vld [vmem:[#allocation7 + $0x348] ss:$16 sps:$4 sm:$0xff]   ;;  %v6820_v28 = vld [vmem:[#allocation7 + $0x364] ss:$16 sps:$4 sm:$0xff]  }
 0x409   :  { %v4099_v37 = vpack.c.bf16 %v6191_v61, %v6189_v34  ;;  %v4101_v38 = vpack.c.bf16 %v6195_v62, %v6193_v35  ;;  %v6823_v30 = vld [vmem:[#allocation7 + $0x36c] ss:$16 sps:$4 sm:$0xff]   ;;  %v6818_v32 = vld [vmem:[#allocation7 + $0x360] ss:$16 sps:$4 sm:$0xff]   ;;  %v6821_v33 = vld [vmem:[#allocation7 + $0x368] ss:$16 sps:$4 sm:$0xff]  }
 0x40a   :  { %v4102_v42 = vmax.bf16 %v7032_v0, %v4098_v7  ;;  %v6826_v34 = vld [vmem:[#allocation7 + $0x384] ss:$16 sps:$4 sm:$0xff]   ;;  %v6829_v35 = vld [vmem:[#allocation7 + $0x38c] ss:$16 sps:$4 sm:$0xff]   ;;  %v6824_v61 = vld [vmem:[#allocation7 + $0x380] ss:$16 sps:$4 sm:$0xff]  }
 0x40b   :  { %v4103_v49 = vmax.bf16 %v7032_v0, %v4099_v37  ;;  %v4105_v48 = vmax.bf16 %v7032_v0, %v4101_v38  ;;  %v6827_v62 = vld [vmem:[#allocation7 + $0x388] ss:$16 sps:$4 sm:$0xff]   ;;  %v6832_v7 = vld [vmem:[#allocation7 + $0x3a4] ss:$16 sps:$4 sm:$0xff]   ;;  %v6835_v37 = vld [vmem:[#allocation7 + $0x3ac] ss:$16 sps:$4 sm:$0xff]  }
 0x40c   :  { %v6830_v38 = vld [vmem:[#allocation7 + $0x3a0] ss:$16 sps:$4 sm:$0xff]   ;;  %v6860_v31 = vld [vmem:[#allocation9 + $0x58] sm:$0xff]  }
 0x40d   :  { %4928 = vmatprep.mubr.bf16.mxu0 %v4103_v49  ;;  %5014 = vmatprep.mubr.bf16.mxu1 %v4103_v49  ;;  %v6833_v49 = vld [vmem:[#allocation7 + $0x3a8] ss:$16 sps:$4 sm:$0xff]   ;;  %v6859_v29 = vld [vmem:[#allocation9 + $0x90] sm:$0xff]  }
 0x40e   :  { %4929 = vmatmul.mubr.bf16.vlgmr.msra.gmra.mrb[16].mxu0 %v4102_v42  ;;  %5015 = vmatmul.mubr.bf16.vlgmr.msra.gmra.mrb[16].mxu1 %v4102_v42  ;;  %v6836_v42 = vld [vmem:[#allocation7 + $0x3c0] ss:$16 sps:$4 sm:$0xff]  }
 0x40f   :  { %4940 = vmatpush1.bf16.msra.mxu0 %v6752_v39  ;;  %5026 = vmatpush1.bf16.msra.mxu1 %v6755_v41  ;;  %v6838_v39 = vld [vmem:[#allocation7 + $0x3c4] ss:$16 sps:$4 sm:$0xff]   ;;  %v6841_v41 = vld [vmem:[#allocation7 + $0x3cc] ss:$16 sps:$4 sm:$0xff]  }
 0x410   :  { %4971 = vmatprep.mubr.bf16.mxu0 %v4105_v48  ;;  %5057 = vmatprep.mubr.bf16.mxu1 %v4105_v48  ;;  %v6847_v48 = vld [vmem:[#allocation7 + $0x3ec] ss:$16 sps:$4 sm:$0xff]  }
 0x411   :  { %4941 = vmatprep.subr.bf16.mxu0 %v6760_v43  ;;  %5027 = vmatprep.subr.bf16.mxu1 %v6763_v44  ;;  %v6839_v43 = vld [vmem:[#allocation7 + $0x3c8] ss:$16 sps:$4 sm:$0xff]   ;;  %v6844_v44 = vld [vmem:[#allocation7 + $0x3e4] ss:$16 sps:$4 sm:$0xff]  }
 0x413   :  { %4942 = vmatpush1.bf16.msra.mxu0 %v6758_v52  ;;  %5028 = vmatpush1.bf16.msra.mxu1 %v6761_v47  ;;  %v6842_v52 = vld [vmem:[#allocation7 + $0x3e0] ss:$16 sps:$4 sm:$0xff]   ;;  %v6845_v47 = vld [vmem:[#allocation7 + $0x3e8] ss:$16 sps:$4 sm:$0xff]  }
 0x414   :  { %4943 = vmatprep.subr.bf16.mxu0 %v6766_v53  ;;  %5029 = vmatprep.subr.bf16.mxu1 %v6769_v54  ;;  %v6848_v53 = vld [vmem:[#allocation9 + $0x40] sm:$0xff]  }
 0x415   :  { %v6849_v54 = vld [vmem:[#allocation9 + $0xc0] sm:$0xff]  }
 0x417   :  { %4944 = vmatpush1.bf16.msra.mxu0 %v6764_v51  ;;  %5030 = vmatpush1.bf16.msra.mxu1 %v6767_v55  ;;  %v6850_v51 = vld [vmem:[#allocation9] sm:$0xff]  }
 0x418   :  { %4945 = vmatprep.subr.bf16.mxu0 %v6772_v14  ;;  %5031 = vmatprep.subr.bf16.mxu1 %v6775_v56  ;;  %v6851_v55 = vld [vmem:[#allocation9 + $0x80] sm:$0xff]   ;;  %v4104_v14 = vmax.bf16 %v7032_v0, %v4100_v17  ;;  %v6852_v56 = vld [vmem:[#allocation9 + $0x48] sm:$0xff]   ;;  %v6861_v17 = vld [vmem:[#allocation9 + $0xd8] sm:$0xff]  }
 0x41b   :  { %4946 = vmatpush1.bf16.msra.mxu0 %v6770_v58  ;;  %5032 = vmatpush1.bf16.msra.mxu1 %v6773_v60  ;;  %v6853_v58 = vld [vmem:[#allocation9 + $0xc8] sm:$0xff]  }
 0x41c   :  { %4947 = vmatprep.subr.bf16.mxu0 %v6778_v59  ;;  %5033 = vmatprep.subr.bf16.mxu1 %v6781_v63  ;;  %v6854_v60 = vld [vmem:[#allocation9 + $0x8] sm:$0xff]   ;;  %v6856_v63 = vld [vmem:[#allocation9 + $0x50] sm:$0xff]  }
 0x41d   :  { %v6855_v59 = vld [vmem:[#allocation9 + $0x88] sm:$0xff]  }
 0x41f   :  { %4948 = vmatpush1.bf16.msra.mxu0 %v6776_v1  ;;  %5034 = vmatpush1.bf16.msra.mxu1 %v6779_v2  ;;  %v6857_v1 = vld [vmem:[#allocation9 + $0xd0] sm:$0xff]  }
 0x420   :  { %4949 = vmatprep.subr.bf16.mxu0 %v6784_v3  ;;  %5035 = vmatprep.subr.bf16.mxu1 %v6787_v4  ;;  %v6858_v2 = vld [vmem:[#allocation9 + $0x10] sm:$0xff]   ;;  %v6862_v3 = vld [vmem:[#allocation9 + $0x18] sm:$0xff]  }
 0x421   :  { %v6863_v4 = vld [vmem:[#allocation9 + $0x98] sm:$0xff]  }
 0x423   :  { %4950 = vmatpush1.bf16.msra.mxu0 %v6782_v5  ;;  %5036 = vmatpush1.bf16.msra.mxu1 %v6785_v6  ;;  %v6864_v5 = vld [vmem:[#allocation9 + $0x60] sm:$0xff]  }
 0x424   :  { %4951 = vmatprep.subr.bf16.mxu0 %v6790_v8  ;;  %5037 = vmatprep.subr.bf16.mxu1 %v6793_v9  ;;  %v6865_v6 = vld [vmem:[#allocation9 + $0xe0] sm:$0xff]  }
 0x425   :  { %v6866_v8 = vld [vmem:[#allocation9 + $0x20] sm:$0xff]  }
 0x426   :  { %v6867_v9 = vld [vmem:[#allocation9 + $0xa0] sm:$0xff]  }
 0x427   :  { %4952 = vmatpush1.bf16.msra.mxu0 %v6788_v10  ;;  %5038 = vmatpush1.bf16.msra.mxu1 %v6791_v11  ;;  %v6868_v10 = vld [vmem:[#allocation9 + $0x68] sm:$0xff]  }
 0x428   :  { %4953 = vmatprep.subr.bf16.mxu0 %v6796_v12  ;;  %5039 = vmatprep.subr.bf16.mxu1 %v6799_v13  ;;  %v6869_v11 = vld [vmem:[#allocation9 + $0xe8] sm:$0xff]  }
 0x429   :  { %v6870_v12 = vld [vmem:[#allocation9 + $0x28] sm:$0xff]  }
 0x42a   :  { %v6871_v13 = vld [vmem:[#allocation9 + $0xa8] sm:$0xff]  }
 0x42b   :  { %4954 = vmatpush1.bf16.msra.mxu0 %v6794_v15  ;;  %5040 = vmatpush1.bf16.msra.mxu1 %v6797_v16  ;;  %v6872_v15 = vld [vmem:[#allocation9 + $0x70] sm:$0xff]  }
 0x42c   :  { %4955 = vmatprep.subr.bf16.mxu0 %v6802_v19  ;;  %5041 = vmatprep.subr.bf16.mxu1 %v6805_v23  ;;  %v6873_v16 = vld [vmem:[#allocation9 + $0xf0] sm:$0xff]  }
 0x42d   :  { %v6874_v19 = vld [vmem:[#allocation9 + $0x30] sm:$0xff]  }
 0x42e   :  { %v6875_v23 = vld [vmem:[#allocation9 + $0xb0] sm:$0xff]  }
 0x42f   :  { %4956 = vmatpush1.bf16.msra.mxu0 %v6800_v24  ;;  %5042 = vmatpush1.bf16.msra.mxu1 %v6803_v25  ;;  %v6876_v24 = vld [vmem:[#allocation9 + $0x78] sm:$0xff]  }
 0x430   :  { %4957 = vmatprep.subr.bf16.mxu0 %v6808_v26  ;;  %5043 = vmatprep.subr.bf16.mxu1 %v6811_v40  ;;  %v6877_v25 = vld [vmem:[#allocation9 + $0xf8] sm:$0xff]  }
 0x431   :  { %v6878_v26 = vld [vmem:[#allocation9 + $0x38] sm:$0xff]  }
 0x432   :  { %v6879_v40 = vld [vmem:[#allocation9 + $0xb8] sm:$0xff]  }
 0x433   :  { %4958 = vmatpush1.bf16.msra.mxu0 %v6806_v45  ;;  %5044 = vmatpush1.bf16.msra.mxu1 %v6809_v57  ;;  %v4234_v45 = vld [vmem:[#allocation10 + $0x10] sm:$0xf] }
 0x434   :  { %4959 = vmatprep.subr.bf16.mxu0 %v6814_v36  ;;  %5045 = vmatprep.subr.bf16.mxu1 %v6817_v46  ;;  %v4239_v57 = vrot.slane %v4234_v45, %v7164_v18  ;;  %v4247_v36 = vrot.slane %v4234_v45, %v7170_v21 }
 0x437   :  { %4960 = vmatpush1.bf16.msra.mxu0 %v6812_v50  ;;  %5046 = vmatpush1.bf16.msra.mxu1 %v6815_v27  ;;  %v4243_v27 = vrot.slane %v4234_v45, %v7167_v20 }
 0x438   :  { %4961 = vmatprep.subr.bf16.mxu0 %v6820_v28  ;;  %5047 = vmatprep.subr.bf16.mxu1 %v6823_v30  ;;  %v4251_v28 = vrot.slane %v4234_v45, %v7173_v22 }
 0x43b   :  { %4962 = vmatpush1.bf16.msra.mxu0 %v6818_v32  ;;  %5048 = vmatpush1.bf16.msra.mxu1 %v6821_v33 }
 0x43c   :  { %4963 = vmatprep.subr.bf16.mxu0 %v6826_v34  ;;  %5049 = vmatprep.subr.bf16.mxu1 %v6829_v35 }
 0x43f   :  { %4964 = vmatpush1.bf16.msra.mxu0 %v6824_v61  ;;  %5050 = vmatpush1.bf16.msra.mxu1 %v6827_v62 }
 0x440   :  { %4965 = vmatprep.subr.bf16.mxu0 %v6832_v7  ;;  %5051 = vmatprep.subr.bf16.mxu1 %v6835_v37 }
 0x443   :  { %4966 = vmatpush1.bf16.msra.mxu0 %v6830_v38  ;;  %5052 = vmatpush1.bf16.msra.mxu1 %v6833_v49 }
 0x444   :  { %4967 = vmatprep.subr.bf16.mxu0 %v6838_v39  ;;  %5053 = vmatprep.subr.bf16.mxu1 %v6841_v41 }
 0x447   :  { %4968 = vmatpush1.bf16.msra.mxu0 %v6836_v42  ;;  %5054 = vmatpush1.bf16.msra.mxu1 %v6839_v43 }
 0x448   :  { %4969 = vmatprep.subr.bf16.mxu0 %v6844_v44  ;;  %5055 = vmatprep.subr.bf16.mxu1 %v6847_v48 }
 0x44b   :  { %4970 = vmatpush1.bf16.msra.mxu0 %v6842_v52  ;;  %5056 = vmatpush1.bf16.msra.mxu1 %v6845_v47 }
 0x44c   :  { %6128 = vmatprep.subr.bf16.mxu0 %v6848_v53  ;;  %6150 = vmatprep.subr.bf16.mxu1 %v6849_v54  ;;  %v6086_v54 = vld [vmem:[#allocation10 + $0x14] ss:$0 sm:$0xff] }
 0x44e   :  { %4972 = vmatmul.mubr.bf16.vlgmr.msra.gmra.mrb[16].mxu0 %v4104_v14  ;;  %5058 = vmatmul.mubr.bf16.vlgmr.msra.gmra.mrb[16].mxu1 %v4104_v14 }
 0x44f   :  { %6129 = vmatpush3.bf16.msra.mxu0 %v6850_v51  ;;  %6151 = vmatpush3.bf16.msra.mxu1 %v6851_v55 }
 0x450   :  { %6130 = vmatprep.subr.bf16.mxu0 %v6852_v56  ;;  %6152 = vmatprep.subr.bf16.mxu1 %v6853_v58 }
 0x453   :  { %6131 = vmatpush3.bf16.msra.mxu0 %v6854_v60  ;;  %6153 = vmatpush3.bf16.msra.mxu1 %v6855_v59 }
 0x454   :  { %6132 = vmatprep.subr.bf16.mxu0 %v6856_v63  ;;  %6154 = vmatprep.subr.bf16.mxu1 %v6857_v1 }
 0x457   :  { %6133 = vmatpush3.bf16.msra.mxu0 %v6858_v2  ;;  %6155 = vmatpush3.bf16.msra.mxu1 %v6859_v29 }
 0x458   :  { %6134 = vmatprep.subr.bf16.mxu0 %v6860_v31  ;;  %6156 = vmatprep.subr.bf16.mxu1 %v6861_v17 }
 0x45b   :  { %6135 = vmatpush3.bf16.msra.mxu0 %v6862_v3  ;;  %6157 = vmatpush3.bf16.msra.mxu1 %v6863_v4 }
 0x45c   :  { %6136 = vmatprep.subr.bf16.mxu0 %v6864_v5  ;;  %6158 = vmatprep.subr.bf16.mxu1 %v6865_v6 }
 0x45f   :  { %6137 = vmatpush3.bf16.msra.mxu0 %v6866_v8  ;;  %6159 = vmatpush3.bf16.msra.mxu1 %v6867_v9 }
 0x460   :  { %6138 = vmatprep.subr.bf16.mxu0 %v6868_v10  ;;  %6160 = vmatprep.subr.bf16.mxu1 %v6869_v11 }
 0x463   :  { %6139 = vmatpush3.bf16.msra.mxu0 %v6870_v12  ;;  %6161 = vmatpush3.bf16.msra.mxu1 %v6871_v13 }
 0x464   :  { %6140 = vmatprep.subr.bf16.mxu0 %v6872_v15  ;;  %6162 = vmatprep.subr.bf16.mxu1 %v6873_v16 }
 0x467   :  { %6141 = vmatpush3.bf16.msra.mxu0 %v6874_v19  ;;  %6163 = vmatpush3.bf16.msra.mxu1 %v6875_v23 }
 0x468   :  { %6142 = vmatprep.subr.bf16.mxu0 %v6876_v24  ;;  %6164 = vmatprep.subr.bf16.mxu1 %v6877_v25 }
 0x46b   :  { %6143 = vmatpush3.bf16.msra.mxu0 %v6878_v26  ;;  %6165 = vmatpush3.bf16.msra.mxu1 %v6879_v40 }
 0x521   :  { %v4973_v46 = vpop.f32.mrb[16].mxu0  ;;  %v5059_v50 = vpop.f32.mrb[16].mxu1 }
 0x522   :  { %v4975_v30 = vpop.f32.mrb[17].mxu0  ;;  %v5061_v32 = vpop.f32.mrb[17].mxu1  ;;  %v6196_v35 = vadd.f32 %v4973_v46, %v4239_v57  ;;  %v6200_v61 = vadd.f32 %v5059_v50, %v4247_v36 }
 0x523   :  { %v4977_v33 = vpop.f32.mrb[18].mxu0  ;;  %v5063_v34 = vpop.f32.mrb[18].mxu1  ;;  %v6197_v49 = vadd.f32 %v4975_v30, %v4243_v27  ;;  %v6201_v18 = vadd.f32 %v5061_v32, %v4251_v28 }
 0x524   :  { %v6198_v62 = vadd.f32 %v4977_v33, %v4239_v57  ;;  %v6202_v7 = vadd.f32 %v5063_v34, %v4247_v36  ;;  %v4979_v37 = vpop.f32.mrb[19].mxu0  ;;  %v5065_v38 = vpop.f32.mrb[19].mxu1 }
 0x525   :  { %v6199_v39 = vadd.f32 %v4979_v37, %v4243_v27  ;;  %v6203_v21 = vadd.f32 %v5065_v38, %v4251_v28 }
 0x526   :  { %v5068_v41 = vpack.c.bf16 %v6198_v62, %v6196_v35  ;;  %v5070_v42 = vpack.c.bf16 %v6202_v7, %v6200_v61 }
 0x527   :  { %v5069_v43 = vpack.c.bf16 %v6199_v39, %v6197_v49  ;;  %v5071_v20 = vpack.c.bf16 %v6203_v21, %v6201_v18 }
 0x528   :  { %v5072_v48 = vmax.bf16 %v7032_v0, %v5068_v41  ;;  %v5074_v52 = vmax.bf16 %v7032_v0, %v5070_v42 }
 0x529   :  { %v5073_v22 = vmax.bf16 %v7032_v0, %v5069_v43  ;;  %v5075_v44 = vmax.bf16 %v7032_v0, %v5071_v20 }
 0x52b   :  { %5371 = vmatprep.mubr.bf16.mxu0 %v5073_v22  ;;  %5412 = vmatprep.mubr.bf16.mxu1 %v5075_v44 }
 0x52c   :  { %5372 = vmatmul.mubr.bf16.vlgmr.msra.gmra.mrb[20].mxu0 %v5072_v48  ;;  %5413 = vmatmul.mubr.bf16.vlgmr.msra.gmra.mrb[20].mxu1 %v5074_v52 }
 0x5ff   :  { %v6144_v47 = vpop.f32.mrb[20].mxu0  ;;  %v6166_v53 = vpop.f32.mrb[20].mxu1 }
 0x600   :  { %v6145_v51 = vpop.f32.mrb[21].mxu0  ;;  %v6167_v55 = vpop.f32.mrb[21].mxu1 }
 0x601   :  { %v6146_v14 = vadd.f32 %v6145_v51, %v6144_v47  ;;  %v6168_v56 = vadd.f32 %v6167_v55, %v6166_v53  ;;  %v6147_v58 = vpop.f32.mrb[22].mxu0  ;;  %v6169_v60 = vpop.f32.mrb[22].mxu1 }
 0x602   :  { %v6148_v59 = vpop.f32.mrb[23].mxu0  ;;  %v6170_v63 = vpop.f32.mrb[23].mxu1 }
 0x603   :  { %v5374_v1 = vadd.f32 %v6146_v14, %v6086_v54  ;;  %v6149_v2 = vadd.f32 %v6148_v59, %v6147_v58  ;;  %v6171_v29 = vadd.f32 %v6170_v63, %v6169_v60 }
 0x605   :  { %v5415_v31 = vadd.f32 %v6168_v56, %v5374_v1  ;;  %v5377_v0 = vadd.f32 %v6149_v2, %v6086_v54 }
 0x607   :  { %v5418_v17 = vadd.f32 %v6171_v29, %v5377_v0 }
 0x609   :  { %v6126_v3 = vpack.c.bf16 %v5418_v17, %v5415_v31 }
 0x60b   :  { %6127 = vst [vmem:[%s7295_s7] sm:$0xff] %v6126_v3  }
 0x60c   :  { %5435 = vsyncpa [#allocation3], 1 }
 0x60d   :  { %5436 = vsyncpa [#allocation5], 1 }
 0x60e   :  { %5437 = vsyncpa [#allocation8], 1 }
 0x60f   :  { %5438 = vsyncpa [#allocation11], 1 }

</bundles_post_ra>
